<compile_context>
chip_gen: v7x
topology: tpu7x:2x2x1
jax: 0.10.0
libtpu: 0.0.40
codegen_flags: <defaults>
</compile_context>

<pallas_src>
import functools

import jax
import jax.numpy as jnp
from jax.experimental import pallas as pl
from jax.experimental.pallas import tpu as pltpu


# ---------------------------------------------------------------------------
# Kernel
# ---------------------------------------------------------------------------
def classifier_kernel(x_ref,
                      w1_ref, b1_ref,
                      w2_ref, b2_ref,
                      w3_ref, b3_ref,
                      w4_ref, b4_ref,
                      out_ref):
    # x tile arrives already padded + bf16 from the wrapper.
    x = x_ref[...]

    # fc1 + ReLU (bf16 activations, f32 accumulation on the MXU)
    h = jnp.dot(x, w1_ref[...], preferred_element_type=jnp.float32) + b1_ref[...]
    h = jnp.maximum(h, 0.0).astype(jnp.bfloat16)

    # fc2 + ReLU
    h = jnp.dot(h, w2_ref[...], preferred_element_type=jnp.float32) + b2_ref[...]
    h = jnp.maximum(h, 0.0).astype(jnp.bfloat16)

    # fc3 + ReLU
    h = jnp.dot(h, w3_ref[...], preferred_element_type=jnp.float32) + b3_ref[...]
    h = jnp.maximum(h, 0.0).astype(jnp.bfloat16)

    # fc4 (logits).  Padded label columns carry a -1e30 bias -> exp() == 0,
    # so they do not perturb the softmax normalizer below.
    logits = jnp.dot(h, w4_ref[...], preferred_element_type=jnp.float32) + b4_ref[...]

    # Numerically stable LogSoftmax over dim=1 (the label axis).
    m = jnp.max(logits, axis=1, keepdims=True)
    shifted = logits - m
    lse = jnp.log(jnp.sum(jnp.exp(shifted), axis=1, keepdims=True))
    out_ref[...] = shifted - lse


# ---------------------------------------------------------------------------
# Helpers
# ---------------------------------------------------------------------------
def _round_up(n, m):
    return ((n + m - 1) // m) * m


def _pick_tile(B, tb_max=512):
    """Choose (TB, B_pad).

    Tiny batches: a single tile rounded up to 16 rows (bf16 sublane packing).
    Otherwise TB is a multiple of 128 (MXU-friendly), chosen to
      1) minimize padded rows,
      2) prefer >=2 grid steps (v7x megacore sharding),
      3) prefer the largest tile (amortize per-step overhead).
    """
    B16 = _round_up(B, 16)
    if B16 <= 128:
        return B16, B16

    best = None
    for t in range(128, tb_max + 1, 128):
        bp = _round_up(B, t)
        nsteps = bp // t
        key = (bp, 0 if nsteps >= 2 else 1, -t)
        if best is None or key < best[0]:
            best = (key, t, bp)
    return best[1], best[2]


def prepare_params(params, input_dim, num_labels):
    """Pad weights/biases to multiples of 128 and cast weights to bf16.

    Zero-padding on inner (K) dims and ReLU'd hidden dims is exact; padded
    label columns get bias -1e30 so they vanish under softmax.
    Returns (padded_params, padded_dims).
    """
    dims = [input_dim, 1280, 630, 300, num_labels]
    pdims = [_round_up(d, 128) for d in dims]

    out = {}
    for i in range(4):
        w = params[f"w{i + 1}"]
        b = params[f"b{i + 1}"]
        d_in, d_out = dims[i], dims[i + 1]
        p_in, p_out = pdims[i], pdims[i + 1]

        wp = jnp.zeros((p_in, p_out), jnp.float32).at[:d_in, :d_out].set(w)
        if i == 3:
            # Padded logit columns -> effectively -inf.
            bp = jnp.full((1, p_out), -1e30, jnp.float32).at[:, :d_out].set(b)
        else:
            bp = jnp.zeros((1, p_out), jnp.float32).at[:, :d_out].set(b)

        out[f"w{i + 1}"] = wp.astype(jnp.bfloat16)
        out[f"b{i + 1}"] = bp  # keep f32
    return out, pdims


# ---------------------------------------------------------------------------
# Wrapper
# ---------------------------------------------------------------------------
@functools.partial(jax.jit, static_argnames=("input_dim", "num_labels", "tb"))
def classifier_forward(x, padded_params, *, input_dim, num_labels, tb=512):
    """x: (B, input_dim) any float dtype; returns (B, num_labels) f32 log-probs."""
    B = x.shape[0]
    p = padded_params
    d_in_p = p["w1"].shape[0]
    d1, d2, d3 = p["w2"].shape[0], p["w3"].shape[0], p["w4"].shape[0]
    d_out_p = p["w4"].shape[1]

    TB, B_pad = _pick_tile(B, tb)

    # Mirror `x.type(torch.float32)`, then cast to bf16 once in the wrapper so
    # the kernel DMA moves half the bytes and does no per-tile cast.
    x = x.astype(jnp.float32).astype(jnp.bfloat16)
    x_p = jnp.zeros((B_pad, d_in_p), jnp.bfloat16).at[:B, :input_dim].set(x)

    grid = (B_pad // TB,)

    in_specs = [
        pl.BlockSpec((TB, d_in_p), lambda i: (i, 0)),            # x tile
        pl.BlockSpec(p["w1"].shape, lambda i: (0, 0)),           # weights stay
        pl.BlockSpec(p["b1"].shape, lambda i: (0, 0)),           # resident in
        pl.BlockSpec(p["w2"].shape, lambda i: (0, 0)),           # VMEM across
        pl.BlockSpec(p["b2"].shape, lambda i: (0, 0)),           # grid steps
        pl.BlockSpec(p["w3"].shape, lambda i: (0, 0)),
        pl.BlockSpec(p["b3"].shape, lambda i: (0, 0)),
        pl.BlockSpec(p["w4"].shape, lambda i: (0, 0)),
        pl.BlockSpec(p["b4"].shape, lambda i: (0, 0)),
    ]
    out_spec = pl.BlockSpec((TB, d_out_p), lambda i: (i, 0))

    weight_bytes = sum(int(p[f"w{k}"].size) * 2 + int(p[f"b{k}"].size) * 4
                       for k in range(1, 5))
    flops = 2 * B_pad * (d_in_p * d1 + d1 * d2 + d2 * d3 + d3 * d_out_p)
    cost = pl.CostEstimate(
        flops=flops,
        transcendentals=B_pad * (d_out_p + 1),              # exp rows + log
        bytes_accessed=weight_bytes + x_p.size * 2 + B_pad * d_out_p * 4,
    )

    out_padded = pl.pallas_call(
        classifier_kernel,
        out_shape=jax.ShapeDtypeStruct((B_pad, d_out_p), jnp.float32),
        grid=grid,
        in_specs=in_specs,
        out_specs=out_spec,
        compiler_params=pltpu.CompilerParams(
            dimension_semantics=("parallel",),
            vmem_limit_bytes=32 * 1024 * 1024,
        ),
        cost_estimate=cost,
    )(x_p, p["w1"], p["b1"], p["w2"], p["b2"],
      p["w3"], p["b3"], p["w4"], p["b4"])

    return out_padded[:B, :num_labels]


# ---------------------------------------------------------------------------
# Param init (matches nn.Linear default: U(+-1/sqrt(fan_in)), stored as (in,out))
# ---------------------------------------------------------------------------
def init_params(key, input_dim, num_labels=130):
    dims = [(input_dim, 1280), (1280, 630), (630, 300), (300, num_labels)]
    params = {}
    keys = jax.random.split(key, 2 * len(dims))
    for i, (fan_in, fan_out) in enumerate(dims):
        bound = 1.0 / jnp.sqrt(jnp.float32(fan_in))
        params[f"w{i + 1}"] = jax.random.uniform(
            keys[2 * i], (fan_in, fan_out), minval=-bound, maxval=bound,
            dtype=jnp.float32)
        params[f"b{i + 1}"] = jax.random.uniform(
            keys[2 * i + 1], (1, fan_out), minval=-bound, maxval=bound,
            dtype=jnp.float32)
    return params


def reference_forward(x, padded_params, input_dim, num_labels):
    """Pure-JAX reference using the same padded bf16 params (same math)."""
    p = padded_params
    d_in_p = p["w1"].shape[0]
    x = x.astype(jnp.float32).astype(jnp.bfloat16)
    xp = jnp.zeros((x.shape[0], d_in_p), jnp.bfloat16).at[:, :input_dim].set(x)
    h = xp
    for i in range(1, 4):
        h = jnp.dot(h, p[f"w{i}"], preferred_element_type=jnp.float32) + p[f"b{i}"]
        h = jnp.maximum(h, 0.0).astype(jnp.bfloat16)
    logits = jnp.dot(h, p["w4"], preferred_element_type=jnp.float32) + p["b4"]
    out = jax.nn.log_softmax(logits, axis=1)
    return out[:, :num_labels]


if __name__ == "__main__":
    key = jax.random.PRNGKey(0)
    k_x, k_p = jax.random.split(key)

    batch = 8
    input_dim = 64
    num_labels = 130

    x = jax.random.normal(k_x, (batch, input_dim), dtype=jnp.float32)
    params = init_params(k_p, input_dim, num_labels)
    padded_params, _ = prepare_params(params, input_dim, num_labels)

    out = classifier_forward(x, padded_params,
                             input_dim=input_dim, num_labels=num_labels)
    out = jax.block_until_ready(out)

    # Sanity 1: shape and log-softmax rows sum (in prob space) to ~1.
    assert out.shape == (batch, num_labels)
    row_sums = jnp.sum(jnp.exp(out), axis=1)
    assert bool(jnp.all(jnp.abs(row_sums - 1.0) < 1e-3)), row_sums

    # Sanity 2: matches pure-JAX reference with identical padded bf16 params.
    ref = reference_forward(x, padded_params, input_dim, num_labels)
    assert bool(jnp.all(jnp.abs(out - ref) < 1e-2)), float(jnp.max(jnp.abs(out - ref)))

    print("KERNEL_OK")
</pallas_src>

<mosaic_0001>
module attributes {stable_mosaic.version = 11 : i64} {
  func.func @classifier_kernel(%arg0: i32, %arg1: memref<16x128xbf16, #tpu.memory_space<vmem>>, %arg2: memref<128x1280xbf16, #tpu.memory_space<vmem>>, %arg3: memref<1x1280xf32, #tpu.memory_space<vmem>>, %arg4: memref<1280x640xbf16, #tpu.memory_space<vmem>>, %arg5: memref<1x640xf32, #tpu.memory_space<vmem>>, %arg6: memref<640x384xbf16, #tpu.memory_space<vmem>>, %arg7: memref<1x384xf32, #tpu.memory_space<vmem>>, %arg8: memref<384x256xbf16, #tpu.memory_space<vmem>>, %arg9: memref<1x256xf32, #tpu.memory_space<vmem>>, %arg10: memref<16x256xf32, #tpu.memory_space<vmem>>) attributes {dimension_semantics = [#tpu.dimension_semantics<parallel>], iteration_bounds = array<i64: 1>, scalar_prefetch = 0 : i64, scratch_operands = 0 : i64, tpu.core_type = #tpu.core_type<tc>, window_params = [{transform_indices = @transform_0, window_bounds = array<i64: 16, 128>}, {pipeline_mode = #tpu.pipeline_mode<synchronous>, transform_indices = @transform_1, window_bounds = array<i64: 128, 1280>}, {pipeline_mode = #tpu.pipeline_mode<synchronous>, transform_indices = @transform_2, window_bounds = array<i64: 1, 1280>}, {pipeline_mode = #tpu.pipeline_mode<synchronous>, transform_indices = @transform_3, window_bounds = array<i64: 1280, 640>}, {pipeline_mode = #tpu.pipeline_mode<synchronous>, transform_indices = @transform_4, window_bounds = array<i64: 1, 640>}, {pipeline_mode = #tpu.pipeline_mode<synchronous>, transform_indices = @transform_5, window_bounds = array<i64: 640, 384>}, {pipeline_mode = #tpu.pipeline_mode<synchronous>, transform_indices = @transform_6, window_bounds = array<i64: 1, 384>}, {pipeline_mode = #tpu.pipeline_mode<synchronous>, transform_indices = @transform_7, window_bounds = array<i64: 384, 256>}, {pipeline_mode = #tpu.pipeline_mode<synchronous>, transform_indices = @transform_8, window_bounds = array<i64: 1, 256>}, {transform_indices = @transform_9, window_bounds = array<i64: 16, 256>}]} {
    %c0 = arith.constant 0 : index
    %c0_0 = arith.constant 0 : index
    %0 = vector.load %arg1[%c0, %c0_0] : memref<16x128xbf16, #tpu.memory_space<vmem>>, vector<16x128xbf16>
    %c0_1 = arith.constant 0 : index
    %c0_2 = arith.constant 0 : index
    %1 = vector.load %arg2[%c0_1, %c0_2] : memref<128x1280xbf16, #tpu.memory_space<vmem>>, vector<128x1280xbf16>
    %cst = arith.constant dense<0.000000e+00> : vector<16x1280xf32>
    %2 = tpu.matmul %0, %1, %cst {dimension_numbers = #tpu.dot_dimension_numbers<[1], [0], [0], [1], [0, 0, 1, 1], [], []>} : vector<16x128xbf16>, vector<128x1280xbf16>, vector<16x1280xf32> -> vector<16x1280xf32>
    %c0_3 = arith.constant 0 : index
    %c0_4 = arith.constant 0 : index
    %3 = vector.load %arg3[%c0_3, %c0_4] : memref<1x1280xf32, #tpu.memory_space<vmem>>, vector<1x1280xf32>
    %4 = vector.broadcast %3 : vector<1x1280xf32> to vector<16x1280xf32>
    %5 = arith.addf %2, %4 : vector<16x1280xf32>
    %cst_5 = arith.constant 0.000000e+00 : f32
    %6 = vector.broadcast %cst_5 : f32 to vector<16x1280xf32>
    %7 = arith.maximumf %5, %6 : vector<16x1280xf32>
    %8 = arith.truncf %7 : vector<16x1280xf32> to vector<16x1280xbf16>
    %c0_6 = arith.constant 0 : index
    %c0_7 = arith.constant 0 : index
    %9 = vector.load %arg4[%c0_6, %c0_7] : memref<1280x640xbf16, #tpu.memory_space<vmem>>, vector<1280x640xbf16>
    %cst_8 = arith.constant dense<0.000000e+00> : vector<16x640xf32>
    %10 = tpu.matmul %8, %9, %cst_8 {dimension_numbers = #tpu.dot_dimension_numbers<[1], [0], [0], [1], [0, 0, 1, 1], [], []>} : vector<16x1280xbf16>, vector<1280x640xbf16>, vector<16x640xf32> -> vector<16x640xf32>
    %c0_9 = arith.constant 0 : index
    %c0_10 = arith.constant 0 : index
    %11 = vector.load %arg5[%c0_9, %c0_10] : memref<1x640xf32, #tpu.memory_space<vmem>>, vector<1x640xf32>
    %12 = vector.broadcast %11 : vector<1x640xf32> to vector<16x640xf32>
    %13 = arith.addf %10, %12 : vector<16x640xf32>
    %cst_11 = arith.constant 0.000000e+00 : f32
    %14 = vector.broadcast %cst_11 : f32 to vector<16x640xf32>
    %15 = arith.maximumf %13, %14 : vector<16x640xf32>
    %16 = arith.truncf %15 : vector<16x640xf32> to vector<16x640xbf16>
    %c0_12 = arith.constant 0 : index
    %c0_13 = arith.constant 0 : index
    %17 = vector.load %arg6[%c0_12, %c0_13] : memref<640x384xbf16, #tpu.memory_space<vmem>>, vector<640x384xbf16>
    %cst_14 = arith.constant dense<0.000000e+00> : vector<16x384xf32>
    %18 = tpu.matmul %16, %17, %cst_14 {dimension_numbers = #tpu.dot_dimension_numbers<[1], [0], [0], [1], [0, 0, 1, 1], [], []>} : vector<16x640xbf16>, vector<640x384xbf16>, vector<16x384xf32> -> vector<16x384xf32>
    %c0_15 = arith.constant 0 : index
    %c0_16 = arith.constant 0 : index
    %19 = vector.load %arg7[%c0_15, %c0_16] : memref<1x384xf32, #tpu.memory_space<vmem>>, vector<1x384xf32>
    %20 = vector.broadcast %19 : vector<1x384xf32> to vector<16x384xf32>
    %21 = arith.addf %18, %20 : vector<16x384xf32>
    %cst_17 = arith.constant 0.000000e+00 : f32
    %22 = vector.broadcast %cst_17 : f32 to vector<16x384xf32>
    %23 = arith.maximumf %21, %22 : vector<16x384xf32>
    %24 = arith.truncf %23 : vector<16x384xf32> to vector<16x384xbf16>
    %c0_18 = arith.constant 0 : index
    %c0_19 = arith.constant 0 : index
    %25 = vector.load %arg8[%c0_18, %c0_19] : memref<384x256xbf16, #tpu.memory_space<vmem>>, vector<384x256xbf16>
    %cst_20 = arith.constant dense<0.000000e+00> : vector<16x256xf32>
    %26 = tpu.matmul %24, %25, %cst_20 {dimension_numbers = #tpu.dot_dimension_numbers<[1], [0], [0], [1], [0, 0, 1, 1], [], []>} : vector<16x384xbf16>, vector<384x256xbf16>, vector<16x256xf32> -> vector<16x256xf32>
    %c0_21 = arith.constant 0 : index
    %c0_22 = arith.constant 0 : index
    %27 = vector.load %arg9[%c0_21, %c0_22] : memref<1x256xf32, #tpu.memory_space<vmem>>, vector<1x256xf32>
    %28 = vector.broadcast %27 : vector<1x256xf32> to vector<16x256xf32>
    %29 = arith.addf %26, %28 : vector<16x256xf32>
    %cst_23 = arith.constant dense<0xFF800000> : vector<16xf32>
    %30 = vector.multi_reduction <maximumf>, %29, %cst_23 [1] : vector<16x256xf32> to vector<16xf32>
    %31 = vector.shape_cast %30 : vector<16xf32> to vector<16x1xf32>
    %32 = vector.broadcast %31 : vector<16x1xf32> to vector<16x256xf32>
    %33 = arith.subf %29, %32 : vector<16x256xf32>
    %34 = math.exp %33 : vector<16x256xf32>
    %cst_24 = arith.constant dense<0.000000e+00> : vector<16xf32>
    %35 = vector.multi_reduction <add>, %34, %cst_24 [1] : vector<16x256xf32> to vector<16xf32>
    %36 = vector.shape_cast %35 : vector<16xf32> to vector<16x1xf32>
    %37 = math.log %36 : vector<16x1xf32>
    %38 = vector.broadcast %37 : vector<16x1xf32> to vector<16x256xf32>
    %39 = arith.subf %33, %38 : vector<16x256xf32>
    %c0_25 = arith.constant 0 : index
    %c0_26 = arith.constant 0 : index
    %40 = vector.load %arg10[%c0_25, %c0_26] : memref<16x256xf32, #tpu.memory_space<vmem>>, vector<16x256xf32>
    tpu.vector_store %arg10[%c0_25, %c0_26], %39 {strides = array<i32>} : memref<16x256xf32, #tpu.memory_space<vmem>>, vector<16x256xf32>,
    return
  }
  func.func @transform_0(%arg0: i32) -> (i32, i32) {
    %c0_i32 = arith.constant 0 : i32
    %c0_i32_0 = arith.constant 0 : i32
    return %arg0, %c0_i32 : i32, i32
  }
  func.func @transform_1(%arg0: i32) -> (i32, i32) {
    %c0_i32 = arith.constant 0 : i32
    %c0_i32_0 = arith.constant 0 : i32
    %c0_i32_1 = arith.constant 0 : i32
    return %c0_i32, %c0_i32_0 : i32, i32
  }
  func.func @transform_2(%arg0: i32) -> (i32, i32) {
    %c0_i32 = arith.constant 0 : i32
    %c0_i32_0 = arith.constant 0 : i32
    %c0_i32_1 = arith.constant 0 : i32
    return %c0_i32, %c0_i32_0 : i32, i32
  }
  func.func @transform_3(%arg0: i32) -> (i32, i32) {
    %c0_i32 = arith.constant 0 : i32
    %c0_i32_0 = arith.constant 0 : i32
    %c0_i32_1 = arith.constant 0 : i32
    return %c0_i32, %c0_i32_0 : i32, i32
  }
  func.func @transform_4(%arg0: i32) -> (i32, i32) {
    %c0_i32 = arith.constant 0 : i32
    %c0_i32_0 = arith.constant 0 : i32
    %c0_i32_1 = arith.constant 0 : i32
    return %c0_i32, %c0_i32_0 : i32, i32
  }
  func.func @transform_5(%arg0: i32) -> (i32, i32) {
    %c0_i32 = arith.constant 0 : i32
    %c0_i32_0 = arith.constant 0 : i32
    %c0_i32_1 = arith.constant 0 : i32
    return %c0_i32, %c0_i32_0 : i32, i32
  }
  func.func @transform_6(%arg0: i32) -> (i32, i32) {
    %c0_i32 = arith.constant 0 : i32
    %c0_i32_0 = arith.constant 0 : i32
    %c0_i32_1 = arith.constant 0 : i32
    return %c0_i32, %c0_i32_0 : i32, i32
  }
  func.func @transform_7(%arg0: i32) -> (i32, i32) {
    %c0_i32 = arith.constant 0 : i32
    %c0_i32_0 = arith.constant 0 : i32
    %c0_i32_1 = arith.constant 0 : i32
    return %c0_i32, %c0_i32_0 : i32, i32
  }
  func.func @transform_8(%arg0: i32) -> (i32, i32) {
    %c0_i32 = arith.constant 0 : i32
    %c0_i32_0 = arith.constant 0 : i32
    %c0_i32_1 = arith.constant 0 : i32
    return %c0_i32, %c0_i32_0 : i32, i32
  }
  func.func @transform_9(%arg0: i32) -> (i32, i32) {
    %c0_i32 = arith.constant 0 : i32
    %c0_i32_0 = arith.constant 0 : i32
    return %arg0, %c0_i32 : i32, i32
  }
}

</mosaic_0001>

<bundles_post_ra>
// kernel: classifier_forward.1
= control target key start
LH: loop header
LB: loop body
LE: loop exit
PB: predicated region body
PF: predicated region fallthrough
CT: control target
= control target key end

     0   :  { %14 = vsyncpa [#allocation3], 0  ;;  %s8013_s0 = inlined_call_operand.vmem [shape: bf16[16,128], index: 0, kind: input, shape index: {}]   ;;  %s8014_s1 = inlined_call_operand.hbm [shape: bf16[128,1280], index: 1, kind: input, shape index: {}]   ;;  %s8015_s2 = inlined_call_operand.hbm [shape: f32[1,1280], index: 2, kind: input, shape index: {}]   ;;  %s8016_s3 = inlined_call_operand.hbm [shape: bf16[1280,640], index: 3, kind: input, shape index: {}]   ;;  %s8017_s4 = inlined_call_operand.hbm [shape: f32[1,640], index: 4, kind: input, shape index: {}]   ;;  %s8018_s5 = inlined_call_operand.hbm [shape: bf16[640,384], index: 5, kind: input, shape index: {}]   ;;  %s8019_s6 = inlined_call_operand.hbm [shape: f32[1,384], index: 6, kind: input, shape index: {}]   ;;  %s8020_s7 = inlined_call_operand.hbm [shape: bf16[384,256], index: 7, kind: input, shape index: {}]   ;;  %s8021_s8 = inlined_call_operand.hbm [shape: f32[1,256], index: 8, kind: input, shape index: {}]   ;;  %s8022_s9 = inlined_call_operand.vmem [shape: f32[16,256], index: 9, kind: output, shape index: {}]  }
   0x1   :  { %15 = vsyncpa [#allocation5], 0 }
   0x2   :  { %16 = vsyncpa [#allocation8], 0 }
   0x3   :  { %17 = vsyncpa [#allocation11], 0 }
   0x4   :  { %18 = vsyncpa [#allocation14], 0  ;;  %s7689_s30 = smov [#allocation4]   ;;  %s7690_s11 = smov [#allocation7]  }
   0x5   :  { %s39_s10 = sshll.u32 %s7689_s30, 4  ;;  %s61_s12 = sshll.u32 %s7690_s11, 4  ;;  %s40_s10 = int_to_ptr.vmem [resolvable:$true] %s39_s10  ;;  %s62_s12 = int_to_ptr.vmem [resolvable:$true] %s61_s12 }
   0x6   :  { %s7503_s15 = scalar_lea.hbm %s8015_s2, 160 }
   0x7   :  { %p7504_p0 = scmp.ne.s32.totalorder %s8015_s2, %s7503_s15  ;;  %p7507_p1 = scmp.lt.u32.totalorder %s7503_s15, %s8015_s2 }
   0x9   :  { %p7509_p2 = pnand %p7507_p1, %p7504_p0 }
   0xb   :  { %7512 = shalt.err (!%p7509_p2)
}
   0xc   :  { %s7513_s20 = scalar_lea.vmem %s40_s10, 160  ;;  %p7518_p4 = scmp.lt.s32.totalorder %s40_s10, %s40_s10 }
   0xd   :  { %p7514_p3 = scmp.ne.s32.totalorder %s40_s10, %s7513_s20  ;;  %p7519_p5 = scmp.lt.s32.totalorder %s7513_s20, %s7513_s20 }
   0xf   :  { %p7520_p6 = por %p7519_p5, %p7518_p4 }
  0x11   :  { %p7521_p7 = pnand %p7520_p6, %p7514_p3 }
  0x13   :  { %7524 = shalt.err (!%p7521_p7)
}
  0x14   :  { %42 = dma.hbm_to_vmem [thread:$0]  %s8015_s2, 160, %s40_s10, [#allocation5]  }
  0x15   :  { %s7525_s25 = scalar_lea.hbm %s8017_s4, 80 }
  0x16   :  { %p7526_p8 = scmp.ne.s32.totalorder %s8017_s4, %s7525_s25  ;;  %p7529_p9 = scmp.lt.u32.totalorder %s7525_s25, %s8017_s4 }
  0x18   :  { %p7531_p10 = pnand %p7529_p9, %p7526_p8 }
  0x1a   :  { %7534 = shalt.err (!%p7531_p10)
}
  0x1b   :  { %s7535_s30 = scalar_lea.vmem %s62_s12, 80  ;;  %s7539_s11 = scalar_lea.vmem %s62_s12, 96 }
  0x1c   :  { %p7536_p11 = scmp.ne.s32.totalorder %s62_s12, %s7535_s30  ;;  %p7540_p12 = scmp.lt.s32.totalorder %s62_s12, %s62_s12 }
  0x1d   :  { %p7541_p13 = scmp.lt.s32.totalorder %s7539_s11, %s7535_s30 }
  0x1f   :  { %p7542_p0 = por %p7541_p13, %p7540_p12 }
  0x21   :  { %p7543_p1 = pnand %p7542_p0, %p7536_p11 }
  0x23   :  { %7546 = shalt.err (!%p7543_p1)
}
  0x24   :  { %64 = dma.hbm_to_vmem [thread:$0]  %s8017_s4, 80, %s62_s12, [#allocation8]  }
  0x25   :  { %s7691_s13 = smov [#allocation10]   ;;  %s7692_s15 = smov [#allocation2]  }
  0x26   :  { %s83_s14 = sshll.u32 %s7691_s13, 4  ;;  %s26_s16 = sshll.u32 %s7692_s15, 4  ;;  %s84_s14 = int_to_ptr.vmem [resolvable:$true] %s83_s14  ;;  %s7782_s16 = int_to_ptr.vmem [resolvable:$true] %s26_s16 }
  0x27   :  { %s7547_s19 = scalar_lea.hbm %s8019_s6, 48 }
  0x28   :  { %p7548_p2 = scmp.ne.s32.totalorder %s8019_s6, %s7547_s19  ;;  %p7551_p3 = scmp.lt.u32.totalorder %s7547_s19, %s8019_s6 }
  0x2a   :  { %p7553_p4 = pnand %p7551_p3, %p7548_p2 }
  0x2c   :  { %7556 = shalt.err (!%p7553_p4)
}
  0x2d   :  { %s7557_s4 = scalar_lea.vmem %s84_s14, 48  ;;  %s7561_s12 = scalar_lea.vmem %s84_s14, 64 }
  0x2e   :  { %p7558_p5 = scmp.ne.s32.totalorder %s84_s14, %s7557_s4  ;;  %p7562_p6 = scmp.lt.s32.totalorder %s84_s14, %s84_s14 }
  0x2f   :  { %p7563_p7 = scmp.lt.s32.totalorder %s7561_s12, %s7557_s4 }
  0x31   :  { %p7564_p8 = por %p7563_p7, %p7562_p6 }
  0x33   :  { %p7565_p9 = pnand %p7564_p8, %p7558_p5 }
  0x35   :  { %7568 = shalt.err (!%p7565_p9)
}
  0x36   :  { %86 = dma.hbm_to_vmem [thread:$0]  %s8019_s6, 48, %s84_s14, [#allocation11]  }
  0x37   :  { %s7569_s28 = scalar_lea.hbm %s8014_s1, 10240 }
  0x38   :  { %p7570_p10 = scmp.ne.s32.totalorder %s8014_s1, %s7569_s28  ;;  %p7573_p11 = scmp.lt.u32.totalorder %s7569_s28, %s8014_s1 }
  0x3a   :  { %p7575_p12 = pnand %p7573_p11, %p7570_p10 }
  0x3c   :  { %7578 = shalt.err (!%p7575_p12)
}
  0x3d   :  { %s7579_s10 = scalar_lea.vmem %s7782_s16, 10240  ;;  %p7584_p0 = scmp.lt.s32.totalorder %s7782_s16, %s7782_s16 }
  0x3e   :  { %p7580_p13 = scmp.ne.s32.totalorder %s7782_s16, %s7579_s10  ;;  %p7585_p1 = scmp.lt.s32.totalorder %s7579_s10, %s7579_s10 }
  0x40   :  { %p7586_p2 = por %p7585_p1, %p7584_p0 }
  0x42   :  { %p7587_p3 = pnand %p7586_p2, %p7580_p13 }
  0x44   :  { %7590 = shalt.err (!%p7587_p3)
}
  0x45   :  { %s7693_s6 = smov 640   ;;  %s7694_s13 = smov 40  }
  0x46   :  { %32 = dma.hbm_to_vmem [thread:$0]  %s8014_s1, 10240, %s7782_s16, [#allocation3], %s7693_s6, %s7693_s6, %s7694_s13  }
  0x47   :  { %s7695_s17 = smov [#allocation6]   ;;  %s7591_s21 = scalar_lea.hbm %s8016_s3, 51200 }
  0x48   :  { %s48_s18 = sshll.u32 %s7695_s17, 4  ;;  %p7592_p4 = scmp.ne.s32.totalorder %s8016_s3, %s7591_s21  ;;  %s49_s18 = int_to_ptr.vmem [resolvable:$true] %s48_s18 }
  0x49   :  { %p7595_p5 = scmp.lt.u32.totalorder %s7591_s21, %s8016_s3 }
  0x4b   :  { %p7597_p6 = pnand %p7595_p5, %p7592_p4 }
  0x4d   :  { %7600 = shalt.err (!%p7597_p6)
}
  0x4e   :  { %s7601_s24 = scalar_lea.vmem %s49_s18, 51200  ;;  %p7606_p8 = scmp.lt.s32.totalorder %s49_s18, %s49_s18 }
  0x4f   :  { %p7602_p7 = scmp.ne.s32.totalorder %s49_s18, %s7601_s24  ;;  %p7607_p9 = scmp.lt.s32.totalorder %s7601_s24, %s7601_s24 }
  0x51   :  { %p7608_p10 = por %p7607_p9, %p7606_p8 }
  0x53   :  { %p7609_p11 = pnand %p7608_p10, %p7602_p7 }
  0x55   :  { %7612 = shalt.err (!%p7609_p11)
}
  0x56   :  { %s7696_s1 = smov 320   ;;  %s7697_s16 = smov 20  }
  0x57   :  { %54 = dma.hbm_to_vmem [thread:$0]  %s8016_s3, 51200, %s49_s18, [#allocation5], %s7696_s1, %s7696_s1, %s7697_s16  }
  0x58   :  { %s7698_s27 = smov [#allocation9]   ;;  %s7613_s11 = scalar_lea.hbm %s8018_s5, 15360 }
  0x59   :  { %s70_s28 = sshll.u32 %s7698_s27, 4  ;;  %p7614_p12 = scmp.ne.s32.totalorder %s8018_s5, %s7613_s11  ;;  %s71_s28 = int_to_ptr.vmem [resolvable:$true] %s70_s28 }
  0x5a   :  { %p7617_p13 = scmp.lt.u32.totalorder %s7613_s11, %s8018_s5 }
  0x5c   :  { %p7619_p0 = pnand %p7617_p13, %p7614_p12 }
  0x5e   :  { %7622 = shalt.err (!%p7619_p0)
}
  0x5f   :  { %s7623_s14 = scalar_lea.vmem %s71_s28, 15360  ;;  %p7628_p2 = scmp.lt.s32.totalorder %s71_s28, %s71_s28 }
  0x60   :  { %p7624_p1 = scmp.ne.s32.totalorder %s71_s28, %s7623_s14  ;;  %p7629_p3 = scmp.lt.s32.totalorder %s7623_s14, %s7623_s14 }
  0x62   :  { %p7630_p4 = por %p7629_p3, %p7628_p2 }
  0x64   :  { %p7631_p5 = pnand %p7630_p4, %p7624_p1 }
  0x66   :  { %7634 = shalt.err (!%p7631_p5)
}
  0x67   :  { %s7699_s3 = smov 192   ;;  %s7700_s15 = smov 12  }
  0x68   :  { %76 = dma.hbm_to_vmem [thread:$0]  %s8018_s5, 15360, %s71_s28, [#allocation8], %s7699_s3, %s7699_s3, %s7700_s15  }
  0x69   :  { %s7701_s19 = smov [#allocation12]   ;;  %s7635_s23 = scalar_lea.hbm %s8020_s7, 6144 }
  0x6a   :  { %s92_s20 = sshll.u32 %s7701_s19, 4  ;;  %p7636_p6 = scmp.ne.s32.totalorder %s8020_s7, %s7635_s23  ;;  %s93_s20 = int_to_ptr.vmem [resolvable:$true] %s92_s20 }
  0x6b   :  { %p7639_p7 = scmp.lt.u32.totalorder %s7635_s23, %s8020_s7 }
  0x6d   :  { %p7641_p8 = pnand %p7639_p7, %p7636_p6 }
  0x6f   :  { %7644 = shalt.err (!%p7641_p8)
}
  0x70   :  { %s7645_s16 = scalar_lea.vmem %s93_s20, 6144  ;;  %p7650_p10 = scmp.lt.s32.totalorder %s93_s20, %s93_s20 }
  0x71   :  { %p7646_p9 = scmp.ne.s32.totalorder %s93_s20, %s7645_s16  ;;  %p7651_p11 = scmp.lt.s32.totalorder %s7645_s16, %s7645_s16 }
  0x73   :  { %p7652_p12 = por %p7651_p11, %p7650_p10 }
  0x75   :  { %p7653_p13 = pnand %p7652_p12, %p7646_p9 }
  0x77   :  { %7656 = shalt.err (!%p7653_p13)
}
  0x78   :  { %s7702_s5 = smov 128   ;;  %s7703_s25 = smov 8  }
  0x79   :  { %98 = dma.hbm_to_vmem [thread:$0]  %s8020_s7, 6144, %s93_s20, [#allocation11], %s7702_s5, %s7702_s5, %s7703_s25  }
  0x7a   :  { %s7704_s28 = smov [#allocation13]   ;;  %s7657_s2 = scalar_lea.hbm %s8021_s8, 32 }
  0x7b   :  { %s105_s29 = sshll.u32 %s7704_s28, 4  ;;  %p7658_p0 = scmp.ne.s32.totalorder %s8021_s8, %s7657_s2  ;;  %s106_s29 = int_to_ptr.vmem [resolvable:$true] %s105_s29 }
  0x7c   :  { %p7661_p1 = scmp.lt.u32.totalorder %s7657_s2, %s8021_s8 }
  0x7e   :  { %p7663_p2 = pnand %p7661_p1, %p7658_p0 }
  0x80   :  { %7666 = shalt.err (!%p7663_p2)
}
  0x81   :  { %s7667_s3 = scalar_lea.vmem %s106_s29, 32  ;;  %p7672_p4 = scmp.lt.s32.totalorder %s106_s29, %s106_s29 }
  0x82   :  { %p7668_p3 = scmp.ne.s32.totalorder %s106_s29, %s7667_s3  ;;  %p7673_p5 = scmp.lt.s32.totalorder %s7667_s3, %s7667_s3 }
  0x84   :  { %p7674_p6 = por %p7673_p5, %p7672_p4 }
  0x86   :  { %p7675_p7 = pnand %p7674_p6, %p7668_p3 }
  0x88   :  { %7678 = shalt.err (!%p7675_p7)
}
  0x89   :  { %108 = dma.hbm_to_vmem [thread:$0]  %s8021_s8, 32, %s106_s29, [#allocation14]  }
  0x8a   :  { %7679 = dma.done.wait [#allocation3], 10240  }
  0x8b   :  { %7680 = vsyncadd [#allocation3], 4294957056 }
  0x8c   :  { %7681 = dma.done.wait [#allocation5], 51360  }
  0x8d   :  { %7682 = vsyncadd [#allocation5], 4294915936 }
  0x8e   :  { %7683 = dma.done.wait [#allocation8], 15440  }
  0x8f   :  { %7684 = vsyncadd [#allocation8], 4294951856 }
  0x90   :  { %7685 = dma.done.wait [#allocation11], 6192  }
  0x91   :  { %7686 = vsyncadd [#allocation11], 4294961104 }
  0x92   :  { %7687 = dma.done.wait [#allocation14], 32  }
  0x93   :  { %7688 = vsyncadd [#allocation14], 4294967264  ;;  %v7705_v0 = vmov 0   ;;  %v6578_v1 = vld [vmem:[#allocation2 + $0x4] ss:$40 sps:$4 sm:$0xff]   ;;  %vm7707_vm0 = vmmov 0  }
  0x94   :  { %708 = vmatprep.mubr.bf16.mxu0 %v7705_v0  ;;  %751 = vmatprep.mubr.bf16.mxu1 %v7705_v0  ;;  %v6580_v2 = vld [vmem:[#allocation2] ss:$40 sps:$4 sm:$0xff]   ;;  %v6581_v3 = vld [vmem:[#allocation2 + $0x54] ss:$40 sps:$4 sm:$0xff]   ;;  %v6583_v4 = vld [vmem:[#allocation2 + $0x50] ss:$40 sps:$4 sm:$0xff]  }
  0x95   :  { %676 = vmatprep.subr.bf16.mxu0 %v6578_v1  ;;  %v6584_v5 = vld [vmem:[#allocation2 + $0xa4] ss:$40 sps:$4 sm:$0xff]   ;;  %v6586_v6 = vld [vmem:[#allocation2 + $0xa0] ss:$40 sps:$4 sm:$0xff]   ;;  %v6587_v7 = vld [vmem:[#allocation2 + $0xf4] ss:$40 sps:$4 sm:$0xff]  }
  0x96   :  { %677 = vmatpush1.bf16.msra.mxu0 %v6580_v2  ;;  %v6589_v8 = vld [vmem:[#allocation2 + $0xf0] ss:$40 sps:$4 sm:$0xff]   ;;  %v6590_v9 = vld [vmem:[#allocation2 + $0x144] ss:$40 sps:$4 sm:$0xff]   ;;  %v6592_v13 = vld [vmem:[#allocation2 + $0x140] ss:$40 sps:$4 sm:$0xff]  }
  0x97   :  { %678 = vmatprep.subr.bf16.mxu0 %v6581_v3  ;;  %v6603_v10 = vld [vmem:[#allocation2 + $0xc] ss:$40 sps:$4 sm:$0xff]   ;;  %v6605_v11 = vld [vmem:[#allocation2 + $0x8] ss:$40 sps:$4 sm:$0xff]   ;;  %v6606_v12 = vld [vmem:[#allocation2 + $0x5c] ss:$40 sps:$4 sm:$0xff]  }
  0x98   :  { %719 = vmatprep.subr.bf16.mxu1 %v6603_v10  ;;  %v6608_v14 = vld [vmem:[#allocation2 + $0x58] ss:$40 sps:$4 sm:$0xff]   ;;  %v6593_v15 = vld [vmem:[#allocation2 + $0x194] ss:$40 sps:$4 sm:$0xff]   ;;  %v6611_v18 = vld [vmem:[#allocation2 + $0xa8] ss:$40 sps:$4 sm:$0xff]  }
  0x99   :  { %720 = vmatpush1.bf16.msra.mxu1 %v6605_v11  ;;  %v6609_v16 = vld [vmem:[#allocation2 + $0xac] ss:$40 sps:$4 sm:$0xff]   ;;  %v6595_v17 = vld [vmem:[#allocation2 + $0x190] ss:$40 sps:$4 sm:$0xff]   ;;  %v6612_v20 = vld [vmem:[#allocation2 + $0xfc] ss:$40 sps:$4 sm:$0xff]  }
  0x9a   :  { %679 = vmatpush1.bf16.msra.mxu0 %v6583_v4  ;;  %721 = vmatprep.subr.bf16.mxu1 %v6606_v12  ;;  %v6596_v19 = vld [vmem:[#allocation2 + $0x1e4] ss:$40 sps:$4 sm:$0xff]   ;;  %v6598_v21 = vld [vmem:[#allocation2 + $0x1e0] ss:$40 sps:$4 sm:$0xff]   ;;  %v6599_v23 = vld [vmem:[#allocation2 + $0x234] ss:$40 sps:$4 sm:$0xff]  }
  0x9b   :  { %680 = vmatprep.subr.bf16.mxu0 %v6584_v5  ;;  %v6614_v22 = vld [vmem:[#allocation2 + $0xf8] ss:$40 sps:$4 sm:$0xff]   ;;  %v6615_v24 = vld [vmem:[#allocation2 + $0x14c] ss:$40 sps:$4 sm:$0xff]   ;;  %v6617_v26 = vld [vmem:[#allocation2 + $0x148] ss:$40 sps:$4 sm:$0xff]  }
  0x9c   :  { %v6601_v25 = vld [vmem:[#allocation2 + $0x230] ss:$40 sps:$4 sm:$0xff]   ;;  %v6618_v27 = vld [vmem:[#allocation2 + $0x19c] ss:$40 sps:$4 sm:$0xff]   ;;  %v6621_v32 = vld [vmem:[#allocation2 + $0x1ec] ss:$40 sps:$4 sm:$0xff]  }
  0x9d   :  { %722 = vmatpush1.bf16.msra.mxu1 %v6608_v14  ;;  %v6629_v28 = vld [vmem:[#allocation2 + $0x14] ss:$40 sps:$4 sm:$0xff]   ;;  %v7866_v29 = vld [vmem:[%s8013_s0] sm:$0xff]   ;;  %v6627_v31 = vld [vmem:[#allocation2 + $0x10] ss:$40 sps:$4 sm:$0xff]  }
  0x9e   :  { %681 = vmatpush1.bf16.msra.mxu0 %v6586_v6  ;;  %723 = vmatprep.subr.bf16.mxu1 %v6609_v16  ;;  %v6620_v30 = vld [vmem:[#allocation2 + $0x198] ss:$40 sps:$4 sm:$0xff]   ;;  %v6632_v33 = vld [vmem:[#allocation2 + $0x64] ss:$40 sps:$4 sm:$0xff]   ;;  %v6623_v34 = vld [vmem:[#allocation2 + $0x1e8] ss:$40 sps:$4 sm:$0xff]  }
  0x9f   :  { %682 = vmatprep.subr.bf16.mxu0 %v6587_v7  ;;  %v6630_v35 = vld [vmem:[#allocation2 + $0x60] ss:$40 sps:$4 sm:$0xff]   ;;  %v6624_v36 = vld [vmem:[#allocation2 + $0x23c] ss:$40 sps:$4 sm:$0xff]   ;;  %v6633_v39 = vld [vmem:[#allocation2 + $0xb0] ss:$40 sps:$4 sm:$0xff]  }
  0xa0   :  { %v6635_v37 = vld [vmem:[#allocation2 + $0xb4] ss:$40 sps:$4 sm:$0xff]   ;;  %v6626_v38 = vld [vmem:[#allocation2 + $0x238] ss:$40 sps:$4 sm:$0xff]   ;;  %v6638_v40 = vld [vmem:[#allocation2 + $0x104] ss:$40 sps:$4 sm:$0xff]  }
  0xa1   :  { %724 = vmatpush1.bf16.msra.mxu1 %v6611_v18  ;;  %v6653_v41 = vld [vmem:[#allocation2 + $0x1c] ss:$40 sps:$4 sm:$0xff]   ;;  %v6636_v42 = vld [vmem:[#allocation2 + $0x100] ss:$40 sps:$4 sm:$0xff]   ;;  %v6659_v45 = vld [vmem:[#allocation2 + $0x6c] ss:$40 sps:$4 sm:$0xff]  }
  0xa2   :  { %683 = vmatpush1.bf16.msra.mxu0 %v6589_v8  ;;  %725 = vmatprep.subr.bf16.mxu1 %v6612_v20  ;;  %v6651_v43 = vld [vmem:[#allocation2 + $0x18] ss:$40 sps:$4 sm:$0xff]   ;;  %v6641_v44 = vld [vmem:[#allocation2 + $0x154] ss:$40 sps:$4 sm:$0xff]   ;;  %v6657_v47 = vld [vmem:[#allocation2 + $0x68] ss:$40 sps:$4 sm:$0xff]  }
  0xa3   :  { %684 = vmatprep.subr.bf16.mxu0 %v6590_v9  ;;  %v6639_v46 = vld [vmem:[#allocation2 + $0x150] ss:$40 sps:$4 sm:$0xff]   ;;  %v6644_v48 = vld [vmem:[#allocation2 + $0x1a4] ss:$40 sps:$4 sm:$0xff]   ;;  %v6642_v50 = vld [vmem:[#allocation2 + $0x1a0] ss:$40 sps:$4 sm:$0xff]  }
  0xa4   :  { %v6665_v49 = vld [vmem:[#allocation2 + $0xbc] ss:$40 sps:$4 sm:$0xff]   ;;  %v6663_v51 = vld [vmem:[#allocation2 + $0xb8] ss:$40 sps:$4 sm:$0xff]   ;;  %v6671_v53 = vld [vmem:[#allocation2 + $0x10c] ss:$40 sps:$4 sm:$0xff]  }
  0xa5   :  { %726 = vmatpush1.bf16.msra.mxu1 %v6614_v22  ;;  %v6647_v52 = vld [vmem:[#allocation2 + $0x1f4] ss:$40 sps:$4 sm:$0xff]   ;;  %v6645_v54 = vld [vmem:[#allocation2 + $0x1f0] ss:$40 sps:$4 sm:$0xff]   ;;  %v6650_v56 = vld [vmem:[#allocation2 + $0x244] ss:$40 sps:$4 sm:$0xff]  }
  0xa6   :  { %685 = vmatpush1.bf16.msra.mxu0 %v6592_v13  ;;  %727 = vmatprep.subr.bf16.mxu1 %v6615_v24  ;;  %v6669_v55 = vld [vmem:[#allocation2 + $0x108] ss:$40 sps:$4 sm:$0xff]   ;;  %v6677_v57 = vld [vmem:[#allocation2 + $0x15c] ss:$40 sps:$4 sm:$0xff]   ;;  %v6675_v59 = vld [vmem:[#allocation2 + $0x158] ss:$40 sps:$4 sm:$0xff]  }
  0xa7   :  { %686 = vmatprep.subr.bf16.mxu0 %v6593_v15  ;;  %v6648_v58 = vld [vmem:[#allocation2 + $0x240] ss:$40 sps:$4 sm:$0xff]   ;;  %v6656_v60 = vld [vmem:[#allocation2 + $0x24] ss:$40 sps:$4 sm:$0xff]   ;;  %v6662_v1 = vld [vmem:[#allocation2 + $0x74] ss:$40 sps:$4 sm:$0xff]  }
  0xa8   :  { %v6683_v61 = vld [vmem:[#allocation2 + $0x1ac] ss:$40 sps:$4 sm:$0xff]   ;;  %v6654_v62 = vld [vmem:[#allocation2 + $0x20] ss:$40 sps:$4 sm:$0xff]   ;;  %v6689_v2 = vld [vmem:[#allocation2 + $0x1fc] ss:$40 sps:$4 sm:$0xff]  }
  0xa9   :  { %728 = vmatpush1.bf16.msra.mxu1 %v6617_v26  ;;  %v6681_v63 = vld [vmem:[#allocation2 + $0x1a8] ss:$40 sps:$4 sm:$0xff]   ;;  %v6687_v4 = vld [vmem:[#allocation2 + $0x1f8] ss:$40 sps:$4 sm:$0xff]   ;;  %v6668_v5 = vld [vmem:[#allocation2 + $0xc4] ss:$40 sps:$4 sm:$0xff]  }
  0xaa   :  { %687 = vmatpush1.bf16.msra.mxu0 %v6595_v17  ;;  %729 = vmatprep.subr.bf16.mxu1 %v6618_v27  ;;  %v6660_v3 = vld [vmem:[#allocation2 + $0x70] ss:$40 sps:$4 sm:$0xff]   ;;  %v6695_v6 = vld [vmem:[#allocation2 + $0x24c] ss:$40 sps:$4 sm:$0xff]   ;;  %v6666_v7 = vld [vmem:[#allocation2 + $0xc0] ss:$40 sps:$4 sm:$0xff]  }
  0xab   :  { %688 = vmatprep.subr.bf16.mxu0 %v6596_v19  ;;  %v6693_v8 = vld [vmem:[#allocation2 + $0x248] ss:$40 sps:$4 sm:$0xff]   ;;  %v6674_v9 = vld [vmem:[#allocation2 + $0x114] ss:$40 sps:$4 sm:$0xff]   ;;  %v6680_v13 = vld [vmem:[#allocation2 + $0x164] ss:$40 sps:$4 sm:$0xff]  }
  0xac   :  { %v6701_v10 = vld [vmem:[#allocation6 + $0x4] ss:$20 sps:$4 sm:$0xff]   ;;  %v6699_v12 = vld [vmem:[#allocation6] ss:$20 sps:$4 sm:$0xff]   ;;  %v6705_v16 = vld [vmem:[#allocation6 + $0x28] ss:$20 sps:$4 sm:$0xff]  }
  0xad   :  { %730 = vmatpush1.bf16.msra.mxu1 %v6620_v30  ;;  %v6672_v11 = vld [vmem:[#allocation2 + $0x110] ss:$40 sps:$4 sm:$0xff]   ;;  %v6678_v15 = vld [vmem:[#allocation2 + $0x160] ss:$40 sps:$4 sm:$0xff]   ;;  %v6686_v17 = vld [vmem:[#allocation2 + $0x1b4] ss:$40 sps:$4 sm:$0xff]  }
  0xae   :  { %689 = vmatpush1.bf16.msra.mxu0 %v6598_v21  ;;  %731 = vmatprep.subr.bf16.mxu1 %v6621_v32  ;;  %v6707_v14 = vld [vmem:[#allocation6 + $0x2c] ss:$20 sps:$4 sm:$0xff]   ;;  %v6713_v18 = vld [vmem:[#allocation6 + $0x54] ss:$20 sps:$4 sm:$0xff]   ;;  %v6711_v20 = vld [vmem:[#allocation6 + $0x50] ss:$20 sps:$4 sm:$0xff]  }
  0xaf   :  { %690 = vmatprep.subr.bf16.mxu0 %v6599_v23  ;;  %v6684_v19 = vld [vmem:[#allocation2 + $0x1b0] ss:$40 sps:$4 sm:$0xff]   ;;  %v6692_v21 = vld [vmem:[#allocation2 + $0x204] ss:$40 sps:$4 sm:$0xff]   ;;  %v6690_v23 = vld [vmem:[#allocation2 + $0x200] ss:$40 sps:$4 sm:$0xff]  }
  0xb0   :  { %v6719_v22 = vld [vmem:[#allocation6 + $0x7c] ss:$20 sps:$4 sm:$0xff]   ;;  %v6717_v24 = vld [vmem:[#allocation6 + $0x78] ss:$20 sps:$4 sm:$0xff]   ;;  %v6723_v30 = vld [vmem:[#allocation6 + $0xa0] ss:$20 sps:$4 sm:$0xff]  }
  0xb1   :  { %732 = vmatpush1.bf16.msra.mxu1 %v6623_v34  ;;  %v6725_v26 = vld [vmem:[#allocation6 + $0xa4] ss:$20 sps:$4 sm:$0xff]   ;;  %v6702_v32 = vld [vmem:[#allocation6 + $0x8] ss:$20 sps:$4 sm:$0xff]  }
  0xb2   :  { %691 = vmatpush1.bf16.msra.mxu0 %v6601_v25  ;;  %733 = vmatprep.subr.bf16.mxu1 %v6624_v36  ;;  %v6698_v25 = vld [vmem:[#allocation2 + $0x254] ss:$40 sps:$4 sm:$0xff]   ;;  %v6696_v27 = vld [vmem:[#allocation2 + $0x250] ss:$40 sps:$4 sm:$0xff]  }
  0xb3   :  { %762 = vmatprep.subr.bf16.mxu0 %v6629_v28  ;;  %v6704_v28 = vld [vmem:[#allocation6 + $0xc] ss:$20 sps:$4 sm:$0xff]   ;;  %v6710_v34 = vld [vmem:[#allocation6 + $0x34] ss:$20 sps:$4 sm:$0xff]   ;;  %v6708_v36 = vld [vmem:[#allocation6 + $0x30] ss:$20 sps:$4 sm:$0xff]  }
  0xb5   :  { %709 = vmatmul.mubr.bf16.vlgmr.msra.gmra.mrb[0].mxu0 %v7866_v29  ;;  %734 = vmatpush1.bf16.msra.mxu1 %v6626_v38  ;;  %v6716_v38 = vld [vmem:[#allocation6 + $0x5c] ss:$20 sps:$4 sm:$0xff]  }
  0xb6   :  { %763 = vmatpush1.bf16.msra.mxu0 %v6627_v31  ;;  %794 = vmatprep.mubr.bf16.mxu0 %v7705_v0  ;;  %v6731_v31 = vld [vmem:[#allocation6 + $0xcc] ss:$20 sps:$4 sm:$0xff]  }
  0xb7   :  { %764 = vmatprep.subr.bf16.mxu0 %v6632_v33  ;;  %805 = vmatprep.subr.bf16.mxu1 %v6653_v41  ;;  %v6729_v33 = vld [vmem:[#allocation6 + $0xc8] ss:$20 sps:$4 sm:$0xff]   ;;  %v6741_v41 = vld [vmem:[#allocation6 + $0x118] ss:$20 sps:$4 sm:$0xff]  }
  0xb8   :  { %752 = vmatmul.mubr.bf16.vlgmr.msra.gmra.mrb[0].mxu1 %v7866_v29 }
  0xb9   :  { %806 = vmatpush1.bf16.msra.mxu1 %v6651_v43  ;;  %837 = vmatprep.mubr.bf16.mxu1 %v7705_v0  ;;  %v6749_v43 = vld [vmem:[#allocation6 + $0x144] ss:$20 sps:$4 sm:$0xff]  }
  0xba   :  { %765 = vmatpush1.bf16.msra.mxu0 %v6630_v35  ;;  %807 = vmatprep.subr.bf16.mxu1 %v6659_v45  ;;  %v6737_v35 = vld [vmem:[#allocation6 + $0xf4] ss:$20 sps:$4 sm:$0xff]  }
  0xbb   :  { %766 = vmatprep.subr.bf16.mxu0 %v6635_v37  ;;  %v6735_v37 = vld [vmem:[#allocation6 + $0xf0] ss:$20 sps:$4 sm:$0xff]   ;;  %v6747_v45 = vld [vmem:[#allocation6 + $0x140] ss:$20 sps:$4 sm:$0xff]  }
  0xbd   :  { %808 = vmatpush1.bf16.msra.mxu1 %v6657_v47  ;;  %v6755_v47 = vld [vmem:[#allocation6 + $0x16c] ss:$20 sps:$4 sm:$0xff]  }
  0xbe   :  { %767 = vmatpush1.bf16.msra.mxu0 %v6633_v39  ;;  %809 = vmatprep.subr.bf16.mxu1 %v6665_v49  ;;  %v6743_v39 = vld [vmem:[#allocation6 + $0x11c] ss:$20 sps:$4 sm:$0xff]   ;;  %v6734_v49 = vld [vmem:[#allocation6 + $0xd4] ss:$20 sps:$4 sm:$0xff]  }
  0xbf   :  { %768 = vmatprep.subr.bf16.mxu0 %v6638_v40  ;;  %v6714_v40 = vld [vmem:[#allocation6 + $0x58] ss:$20 sps:$4 sm:$0xff]  }
  0xc1   :  { %810 = vmatpush1.bf16.msra.mxu1 %v6663_v51  ;;  %v6732_v51 = vld [vmem:[#allocation6 + $0xd0] ss:$20 sps:$4 sm:$0xff]  }
  0xc2   :  { %769 = vmatpush1.bf16.msra.mxu0 %v6636_v42  ;;  %811 = vmatprep.subr.bf16.mxu1 %v6671_v53  ;;  %v6722_v42 = vld [vmem:[#allocation6 + $0x84] ss:$20 sps:$4 sm:$0xff]   ;;  %v6740_v53 = vld [vmem:[#allocation6 + $0xfc] ss:$20 sps:$4 sm:$0xff]  }
  0xc3   :  { %770 = vmatprep.subr.bf16.mxu0 %v6641_v44  ;;  %v6720_v44 = vld [vmem:[#allocation6 + $0x80] ss:$20 sps:$4 sm:$0xff]  }
  0xc5   :  { %812 = vmatpush1.bf16.msra.mxu1 %v6669_v55  ;;  %v6738_v55 = vld [vmem:[#allocation6 + $0xf8] ss:$20 sps:$4 sm:$0xff]  }
  0xc6   :  { %771 = vmatpush1.bf16.msra.mxu0 %v6639_v46  ;;  %813 = vmatprep.subr.bf16.mxu1 %v6677_v57  ;;  %v6728_v46 = vld [vmem:[#allocation6 + $0xac] ss:$20 sps:$4 sm:$0xff]  }
  0xc7   :  { %772 = vmatprep.subr.bf16.mxu0 %v6644_v48  ;;  %v6753_v48 = vld [vmem:[#allocation6 + $0x168] ss:$20 sps:$4 sm:$0xff]   ;;  %v6765_v57 = vld [vmem:[#allocation6 + $0x1b8] ss:$20 sps:$4 sm:$0xff]  }
  0xc9   :  { %814 = vmatpush1.bf16.msra.mxu1 %v6675_v59  ;;  %v6744_v59 = vld [vmem:[#allocation6 + $0x120] ss:$20 sps:$4 sm:$0xff]  }
  0xca   :  { %773 = vmatpush1.bf16.msra.mxu0 %v6642_v50  ;;  %815 = vmatprep.subr.bf16.mxu1 %v6683_v61  ;;  %v6761_v50 = vld [vmem:[#allocation6 + $0x194] ss:$20 sps:$4 sm:$0xff]  }
  0xcb   :  { %774 = vmatprep.subr.bf16.mxu0 %v6647_v52  ;;  %v6759_v52 = vld [vmem:[#allocation6 + $0x190] ss:$20 sps:$4 sm:$0xff]   ;;  %v6771_v61 = vld [vmem:[#allocation6 + $0x1e0] ss:$20 sps:$4 sm:$0xff]  }
  0xcd   :  { %816 = vmatpush1.bf16.msra.mxu1 %v6681_v63  ;;  %v6750_v63 = vld [vmem:[#allocation6 + $0x148] ss:$20 sps:$4 sm:$0xff]  }
  0xce   :  { %775 = vmatpush1.bf16.msra.mxu0 %v6645_v54  ;;  %817 = vmatprep.subr.bf16.mxu1 %v6689_v2  ;;  %v6767_v54 = vld [vmem:[#allocation6 + $0x1bc] ss:$20 sps:$4 sm:$0xff]  }
  0xcf   :  { %776 = vmatprep.subr.bf16.mxu0 %v6650_v56  ;;  %v6746_v56 = vld [vmem:[#allocation6 + $0x124] ss:$20 sps:$4 sm:$0xff]   ;;  %v6777_v2 = vld [vmem:[#allocation6 + $0x208] ss:$20 sps:$4 sm:$0xff]  }
  0xd1   :  { %818 = vmatpush1.bf16.msra.mxu1 %v6687_v4  ;;  %v6756_v4 = vld [vmem:[#allocation6 + $0x170] ss:$20 sps:$4 sm:$0xff]  }
  0xd2   :  { %777 = vmatpush1.bf16.msra.mxu0 %v6648_v58  ;;  %819 = vmatprep.subr.bf16.mxu1 %v6695_v6  ;;  %v6773_v58 = vld [vmem:[#allocation6 + $0x1e4] ss:$20 sps:$4 sm:$0xff]  }
  0xd3   :  { %848 = vmatprep.subr.bf16.mxu0 %v6656_v60  ;;  %v6752_v60 = vld [vmem:[#allocation6 + $0x14c] ss:$20 sps:$4 sm:$0xff]   ;;  %v6783_v6 = vld [vmem:[#allocation6 + $0x230] ss:$20 sps:$4 sm:$0xff]  }
  0xd5   :  { %795 = vmatmul.mubr.bf16.vlgmr.msra.gmra.mrb[4].mxu0 %v7866_v29  ;;  %820 = vmatpush1.bf16.msra.mxu1 %v6693_v8  ;;  %v6762_v8 = vld [vmem:[#allocation6 + $0x198] ss:$20 sps:$4 sm:$0xff]  }
  0xd6   :  { %849 = vmatpush1.bf16.msra.mxu0 %v6654_v62  ;;  %880 = vmatprep.mubr.bf16.mxu0 %v7705_v0  ;;  %v6779_v62 = vld [vmem:[#allocation6 + $0x20c] ss:$20 sps:$4 sm:$0xff]  }
  0xd7   :  { %850 = vmatprep.subr.bf16.mxu0 %v6662_v1  ;;  %3508 = vmatprep.subr.bf16.mxu1 %v6701_v10  ;;  %v6758_v1 = vld [vmem:[#allocation6 + $0x174] ss:$20 sps:$4 sm:$0xff]   ;;  %v6789_v10 = vld [vmem:[#allocation6 + $0x258] ss:$20 sps:$4 sm:$0xff]  }
  0xd8   :  { %838 = vmatmul.mubr.bf16.vlgmr.msra.gmra.mrb[4].mxu1 %v7866_v29 }
  0xd9   :  { %3509 = vmatpush1.bf16.msra.mxu1 %v6699_v12  ;;  %v6768_v12 = vld [vmem:[#allocation6 + $0x1c0] ss:$20 sps:$4 sm:$0xff]  }
  0xda   :  { %851 = vmatpush1.bf16.msra.mxu0 %v6660_v3  ;;  %3510 = vmatprep.subr.bf16.mxu1 %v6707_v14  ;;  %v6785_v3 = vld [vmem:[#allocation6 + $0x234] ss:$20 sps:$4 sm:$0xff]  }
  0xdb   :  { %852 = vmatprep.subr.bf16.mxu0 %v6668_v5  ;;  %v6764_v5 = vld [vmem:[#allocation6 + $0x19c] ss:$20 sps:$4 sm:$0xff]  }
  0xdc   :  { %v6774_v14 = vld [vmem:[#allocation6 + $0x1e8] ss:$20 sps:$4 sm:$0xff]  }
  0xdd   :  { %3511 = vmatpush1.bf16.msra.mxu1 %v6705_v16  ;;  %v6780_v16 = vld [vmem:[#allocation6 + $0x210] ss:$20 sps:$4 sm:$0xff]  }
  0xde   :  { %853 = vmatpush1.bf16.msra.mxu0 %v6666_v7  ;;  %3512 = vmatprep.subr.bf16.mxu1 %v6713_v18  ;;  %v6791_v7 = vld [vmem:[#allocation6 + $0x25c] ss:$20 sps:$4 sm:$0xff]   ;;  %v6786_v18 = vld [vmem:[#allocation6 + $0x238] ss:$20 sps:$4 sm:$0xff]  }
  0xdf   :  { %854 = vmatprep.subr.bf16.mxu0 %v6674_v9  ;;  %v6770_v9 = vld [vmem:[#allocation6 + $0x1c4] ss:$20 sps:$4 sm:$0xff]  }
  0xe1   :  { %3513 = vmatpush1.bf16.msra.mxu1 %v6711_v20  ;;  %v6792_v20 = vld [vmem:[#allocation6 + $0x260] ss:$20 sps:$4 sm:$0xff]  }
  0xe2   :  { %855 = vmatpush1.bf16.msra.mxu0 %v6672_v11  ;;  %3514 = vmatprep.subr.bf16.mxu1 %v6719_v22  ;;  %v6797_v11 = vld [vmem:[#allocation6 + $0x284] ss:$20 sps:$4 sm:$0xff]   ;;  %v220_v22 = vlaneseq }
  0xe3   :  { %856 = vmatprep.subr.bf16.mxu0 %v6680_v13  ;;  %v6776_v13 = vld [vmem:[#allocation6 + $0x1ec] ss:$20 sps:$4 sm:$0xff]  }
  0xe5   :  { %3515 = vmatpush1.bf16.msra.mxu1 %v6717_v24  ;;  %v7878_v24 = vld [vmem:[#allocation4] sm:$0xff] }
  0xe6   :  { %857 = vmatpush1.bf16.msra.mxu0 %v6678_v15  ;;  %3516 = vmatprep.subr.bf16.mxu1 %v6725_v26  ;;  %v6782_v15 = vld [vmem:[#allocation6 + $0x214] ss:$20 sps:$4 sm:$0xff]  }
  0xe7   :  { %858 = vmatprep.subr.bf16.mxu0 %v6686_v17  ;;  %v6788_v17 = vld [vmem:[#allocation6 + $0x23c] ss:$20 sps:$4 sm:$0xff]  }
  0xe9   :  { %3517 = vmatpush1.bf16.msra.mxu1 %v6723_v30 }
  0xea   :  { %859 = vmatpush1.bf16.msra.mxu0 %v6684_v19  ;;  %3518 = vmatprep.subr.bf16.mxu1 %v6731_v31  ;;  %v6794_v19 = vld [vmem:[#allocation6 + $0x264] ss:$20 sps:$4 sm:$0xff]  }
  0xeb   :  { %860 = vmatprep.subr.bf16.mxu0 %v6692_v21  ;;  %v6800_v21 = vld [vmem:[#allocation6 + $0x28c] ss:$20 sps:$4 sm:$0xff]  }
  0xed   :  { %3519 = vmatpush1.bf16.msra.mxu1 %v6729_v33 }
  0xee   :  { %861 = vmatpush1.bf16.msra.mxu0 %v6690_v23  ;;  %3520 = vmatprep.subr.bf16.mxu1 %v6737_v35  ;;  %v7876_v23 = vshrl.u32 %v220_v22, 7  ;;  %v6833_v22 = vld [vmem:[#allocation6 + $0x374] ss:$20 sps:$4 sm:$0xff]  }
  0xef   :  { %862 = vmatprep.subr.bf16.mxu0 %v6698_v25 }
  0xf0   :  { %v7881_v25 = vsub.s32 0, %v7876_v23  ;;  %v7884_v26 = vsub.s32 1, %v7876_v23 }
  0xf1   :  { %3521 = vmatpush1.bf16.msra.mxu1 %v6735_v37 }
  0xf2   :  { %863 = vmatpush1.bf16.msra.mxu0 %v6696_v27  ;;  %3522 = vmatprep.subr.bf16.mxu1 %v6743_v39  ;;  %v223_v27 = vrot.slane %v7878_v24, %v7881_v25 }
  0xf3   :  { %3723 = vmatprep.subr.bf16.mxu0 %v6704_v28  ;;  %v227_v28 = vrot.slane %v7878_v24, %v7884_v26 }
  0xf5   :  { %881 = vmatmul.mubr.bf16.vlgmr.msra.gmra.mrb[8].mxu0 %v7866_v29  ;;  %3523 = vmatpush1.bf16.msra.mxu1 %v6741_v41  ;;  %v6726_v29 = vld [vmem:[#allocation6 + $0xa8] ss:$20 sps:$4 sm:$0xff]  }
  0xf6   :  { %3724 = vmatpush1.bf16.msra.mxu0 %v6702_v32  ;;  %3524 = vmatprep.subr.bf16.mxu1 %v6749_v43 }
  0xf7   :  { %3725 = vmatprep.subr.bf16.mxu0 %v6710_v34 }
  0xf9   :  { %3525 = vmatpush1.bf16.msra.mxu1 %v6747_v45  ;;  %v6798_v45 = vld [vmem:[#allocation6 + $0x288] ss:$20 sps:$4 sm:$0xff]  }
  0xfa   :  { %3726 = vmatpush1.bf16.msra.mxu0 %v6708_v36  ;;  %3526 = vmatprep.subr.bf16.mxu1 %v6755_v47 }
  0xfb   :  { %3727 = vmatprep.subr.bf16.mxu0 %v6716_v38  ;;  %v7891_v38 = vsub.s32 2, %v7876_v23 }
  0xfd   :  { %3527 = vmatpush1.bf16.msra.mxu1 %v6753_v48  ;;  %v6806_v48 = vld [vmem:[#allocation6 + $0x2b4] ss:$20 sps:$4 sm:$0xff]  }
  0xfe   :  { %3728 = vmatpush1.bf16.msra.mxu0 %v6714_v40  ;;  %3528 = vmatprep.subr.bf16.mxu1 %v6761_v50 }
  0xff   :  { %3729 = vmatprep.subr.bf16.mxu0 %v6722_v42  ;;  %v234_v42 = vsub.s32 3, %v7876_v23 }
 0x101   :  { %3529 = vmatpush1.bf16.msra.mxu1 %v6759_v52  ;;  %v235_v50 = vrot.slane %v7878_v24, %v234_v42  ;;  %v6804_v52 = vld [vmem:[#allocation6 + $0x2b0] ss:$20 sps:$4 sm:$0xff]  }
 0x102   :  { %3730 = vmatpush1.bf16.msra.mxu0 %v6720_v44  ;;  %3530 = vmatprep.subr.bf16.mxu1 %v6767_v54  ;;  %v6795_v44 = vld [vmem:[#allocation6 + $0x280] ss:$20 sps:$4 sm:$0xff]  }
 0x103   :  { %3731 = vmatprep.subr.bf16.mxu0 %v6728_v46  ;;  %v6809_v54 = vld [vmem:[#allocation6 + $0x2d4] ss:$20 sps:$4 sm:$0xff]  }
 0x105   :  { %3531 = vmatpush1.bf16.msra.mxu1 %v6765_v57 }
 0x106   :  { %3732 = vmatpush1.bf16.msra.mxu0 %v6726_v29  ;;  %3532 = vmatprep.subr.bf16.mxu1 %v6773_v58  ;;  %v6803_v29 = vld [vmem:[#allocation6 + $0x2ac] ss:$20 sps:$4 sm:$0xff]  }
 0x107   :  { %3733 = vmatprep.subr.bf16.mxu0 %v6734_v49  ;;  %v231_v49 = vrot.slane %v7878_v24, %v7891_v38 }
 0x109   :  { %3533 = vmatpush1.bf16.msra.mxu1 %v6771_v61 }
 0x10a   :  { %3734 = vmatpush1.bf16.msra.mxu0 %v6732_v51  ;;  %3534 = vmatprep.subr.bf16.mxu1 %v6779_v62  ;;  %v6801_v51 = vld [vmem:[#allocation6 + $0x2a8] ss:$20 sps:$4 sm:$0xff]  }
 0x10b   :  { %3735 = vmatprep.subr.bf16.mxu0 %v6740_v53 }
 0x10d   :  { %3535 = vmatpush1.bf16.msra.mxu1 %v6777_v2 }
 0x10e   :  { %3736 = vmatpush1.bf16.msra.mxu0 %v6738_v55  ;;  %3536 = vmatprep.subr.bf16.mxu1 %v6785_v3  ;;  %v6812_v55 = vld [vmem:[#allocation6 + $0x2dc] ss:$20 sps:$4 sm:$0xff]  }
 0x10f   :  { %3737 = vmatprep.subr.bf16.mxu0 %v6746_v56 }
 0x111   :  { %3537 = vmatpush1.bf16.msra.mxu1 %v6783_v6 }
 0x112   :  { %3738 = vmatpush1.bf16.msra.mxu0 %v6744_v59  ;;  %3538 = vmatprep.subr.bf16.mxu1 %v6791_v7 }
 0x113   :  { %3739 = vmatprep.subr.bf16.mxu0 %v6752_v60 }
 0x115   :  { %3539 = vmatpush1.bf16.msra.mxu1 %v6789_v10  ;;  %v6816_v10 = vld [vmem:[#allocation6 + $0x300] ss:$20 sps:$4 sm:$0xff]  }
 0x116   :  { %3740 = vmatpush1.bf16.msra.mxu0 %v6750_v63  ;;  %3551 = vmatprep.subr.bf16.mxu1 %v6797_v11  ;;  %v6807_v63 = vld [vmem:[#allocation6 + $0x2d0] ss:$20 sps:$4 sm:$0xff]  }
 0x117   :  { %3741 = vmatprep.subr.bf16.mxu0 %v6758_v1  ;;  %v6810_v1 = vld [vmem:[#allocation6 + $0x2d8] ss:$20 sps:$4 sm:$0xff]  }
 0x11a   :  { %3742 = vmatpush1.bf16.msra.mxu0 %v6756_v4  ;;  %v6815_v4 = vld [vmem:[#allocation6 + $0x2fc] ss:$20 sps:$4 sm:$0xff]  }
 0x11b   :  { %3743 = vmatprep.subr.bf16.mxu0 %v6764_v5  ;;  %v6818_v5 = vld [vmem:[#allocation6 + $0x304] ss:$20 sps:$4 sm:$0xff]  }
 0x11e   :  { %3744 = vmatpush1.bf16.msra.mxu0 %v6762_v8 }
 0x11f   :  { %3745 = vmatprep.subr.bf16.mxu0 %v6770_v9  ;;  %v6813_v9 = vld [vmem:[#allocation6 + $0x2f8] ss:$20 sps:$4 sm:$0xff]  }
 0x122   :  { %3746 = vmatpush1.bf16.msra.mxu0 %v6768_v12  ;;  %v6821_v12 = vld [vmem:[#allocation6 + $0x324] ss:$20 sps:$4 sm:$0xff]  }
 0x123   :  { %3747 = vmatprep.subr.bf16.mxu0 %v6776_v13  ;;  %v6824_v13 = vld [vmem:[#allocation6 + $0x32c] ss:$20 sps:$4 sm:$0xff]  }
 0x126   :  { %3748 = vmatpush1.bf16.msra.mxu0 %v6774_v14  ;;  %v6819_v14 = vld [vmem:[#allocation6 + $0x320] ss:$20 sps:$4 sm:$0xff]  }
 0x127   :  { %3749 = vmatprep.subr.bf16.mxu0 %v6782_v15  ;;  %v6822_v15 = vld [vmem:[#allocation6 + $0x328] ss:$20 sps:$4 sm:$0xff]  }
 0x12a   :  { %3750 = vmatpush1.bf16.msra.mxu0 %v6780_v16  ;;  %v6827_v16 = vld [vmem:[#allocation6 + $0x34c] ss:$20 sps:$4 sm:$0xff]  }
 0x12b   :  { %3751 = vmatprep.subr.bf16.mxu0 %v6788_v17  ;;  %v6830_v17 = vld [vmem:[#allocation6 + $0x354] ss:$20 sps:$4 sm:$0xff]  }
 0x12e   :  { %3752 = vmatpush1.bf16.msra.mxu0 %v6786_v18  ;;  %v238_v18 = vsub.s32 4, %v7876_v23 }
 0x12f   :  { %3753 = vmatprep.subr.bf16.mxu0 %v6794_v19  ;;  %v242_v19 = vsub.s32 5, %v7876_v23 }
 0x132   :  { %3754 = vmatpush1.bf16.msra.mxu0 %v6792_v20  ;;  %v6825_v20 = vld [vmem:[#allocation6 + $0x348] ss:$20 sps:$4 sm:$0xff]  }
 0x133   :  { %3766 = vmatprep.subr.bf16.mxu0 %v6800_v21  ;;  %v6828_v21 = vld [vmem:[#allocation6 + $0x350] ss:$20 sps:$4 sm:$0xff]  }
 0x188   :  { %v710_v30 = vpop.f32.mrb[0].mxu0 }
 0x189   :  { %v711_v31 = vadd.f32 %v710_v30, %v223_v27  ;;  %v712_v32 = vpop.f32.mrb[1].mxu0  ;;  %v243_v30 = vrot.slane %v7878_v24, %v242_v19  ;;  %v6863_v19 = vld [vmem:[#allocation6 + $0x43c] ss:$20 sps:$4 sm:$0xff]  }
 0x18a   :  { %v713_v33 = vadd.f32 %v712_v32, %v227_v28  ;;  %v714_v34 = vpop.f32.mrb[2].mxu0  ;;  %v6834_v32 = vld [vmem:[#allocation6 + $0x378] ss:$20 sps:$4 sm:$0xff]  }
 0x18b   :  { %v715_v35 = vadd.f32 %v714_v34, %v223_v27  ;;  %v716_v36 = vpop.f32.mrb[3].mxu0  ;;  %v891_v39 = vmax.f32 %v711_v31, 0.0  ;;  %v753_v53 = vpop.f32.mrb[0].mxu1  ;;  %v6836_v27 = vld [vmem:[#allocation6 + $0x37c] ss:$20 sps:$4 sm:$0xff]  }
 0x18c   :  { %v717_v37 = vadd.f32 %v716_v36, %v227_v28  ;;  %v892_v40 = vmax.f32 %v713_v33, 0.0  ;;  %v754_v56 = vadd.f32 %v753_v53, %v231_v49  ;;  %v755_v57 = vpop.f32.mrb[1].mxu1  ;;  %v239_v28 = vrot.slane %v7878_v24, %v238_v18  ;;  %v6831_v31 = vld [vmem:[#allocation6 + $0x370] ss:$20 sps:$4 sm:$0xff]  }
 0x18d   :  { %v901_v41 = vmax.f32 %v715_v35, 0.0  ;;  %v756_v58 = vadd.f32 %v755_v57, %v235_v50  ;;  %v757_v59 = vpop.f32.mrb[2].mxu1  ;;  %v6839_v34 = vld [vmem:[#allocation6 + $0x39c] ss:$20 sps:$4 sm:$0xff]   ;;  %v6842_v35 = vld [vmem:[#allocation6 + $0x3a4] ss:$20 sps:$4 sm:$0xff]  }
 0x18e   :  { %v902_v43 = vmax.f32 %v717_v37, 0.0  ;;  %v893_v60 = vmax.f32 %v754_v56, 0.0  ;;  %v758_v61 = vadd.f32 %v757_v59, %v231_v49  ;;  %v759_v62 = vpop.f32.mrb[3].mxu1  ;;  %v246_v53 = vsub.s32 6, %v7876_v23  ;;  %v6843_v57 = vld [vmem:[#allocation6 + $0x3c0] ss:$20 sps:$4 sm:$0xff]  }
 0x18f   :  { %v7894_v46 = vpack.c.bf16 %v901_v41, %v891_v39  ;;  %v894_v2 = vmax.f32 %v756_v58, 0.0  ;;  %v760_v3 = vadd.f32 %v759_v62, %v235_v50  ;;  %v6837_v39 = vld [vmem:[#allocation6 + $0x398] ss:$20 sps:$4 sm:$0xff]   ;;  %v6846_v58 = vld [vmem:[#allocation6 + $0x3c8] ss:$20 sps:$4 sm:$0xff]  }
 0x190   :  { %v7896_v47 = vpack.c.bf16 %v902_v43, %v892_v40  ;;  %v903_v6 = vmax.f32 %v758_v61, 0.0  ;;  %v6854_v61 = vld [vmem:[#allocation6 + $0x3f4] ss:$20 sps:$4 sm:$0xff]   ;;  %v247_v62 = vrot.slane %v7878_v24, %v246_v53 }
 0x191   :  { %v904_v7 = vmax.f32 %v760_v3, 0.0 }
 0x192   :  { %3540 = vmatprep.mubr.bf16.mxu1 %v7896_v47  ;;  %3755 = vmatprep.mubr.bf16.mxu0 %v7896_v47  ;;  %v7907_v8 = vpack.c.bf16 %v903_v6, %v893_v60  ;;  %v6851_v60 = vld [vmem:[#allocation6 + $0x3ec] ss:$20 sps:$4 sm:$0xff]  }
 0x193   :  { %3541 = vmatmul.mubr.bf16.vlgmr.msra.gmra.mrb[8].mxu1 %v7894_v46  ;;  %3756 = vmatmul.mubr.bf16.vlgmr.msra.gmra.mrb[12].mxu0 %v7894_v46  ;;  %v7909_v11 = vpack.c.bf16 %v904_v7, %v894_v2  ;;  %v6852_v2 = vld [vmem:[#allocation6 + $0x3f0] ss:$20 sps:$4 sm:$0xff]  }
 0x194   :  { %3552 = vmatpush1.bf16.msra.mxu1 %v6795_v44  ;;  %3767 = vmatpush1.bf16.msra.mxu0 %v6798_v45 }
 0x195   :  { %3553 = vmatprep.subr.bf16.mxu1 %v6803_v29  ;;  %3768 = vmatprep.subr.bf16.mxu0 %v6806_v48  ;;  %v6840_v29 = vld [vmem:[#allocation6 + $0x3a0] ss:$20 sps:$4 sm:$0xff]   ;;  %v6845_v48 = vld [vmem:[#allocation6 + $0x3c4] ss:$20 sps:$4 sm:$0xff]  }
 0x196   :  { %3583 = vmatprep.mubr.bf16.mxu1 %v7909_v11  ;;  %3798 = vmatprep.mubr.bf16.mxu0 %v7909_v11 }
 0x198   :  { %3554 = vmatpush1.bf16.msra.mxu1 %v6801_v51  ;;  %3769 = vmatpush1.bf16.msra.mxu0 %v6804_v52  ;;  %v6848_v51 = vld [vmem:[#allocation6 + $0x3cc] ss:$20 sps:$4 sm:$0xff]  }
 0x199   :  { %3555 = vmatprep.subr.bf16.mxu1 %v6809_v54  ;;  %3770 = vmatprep.subr.bf16.mxu0 %v6812_v55  ;;  %v250_v54 = vsub.s32 7, %v7876_v23  ;;  %v7358_v23 = vld [vmem:[#allocation9 + $0x228] ss:$12 sps:$4 sm:$0xff]  }
 0x19c   :  { %3556 = vmatpush1.bf16.msra.mxu1 %v6807_v63  ;;  %3771 = vmatpush1.bf16.msra.mxu0 %v6810_v1  ;;  %v251_v63 = vrot.slane %v7878_v24, %v250_v54  ;;  %v6849_v1 = vld [vmem:[#allocation6 + $0x3e8] ss:$20 sps:$4 sm:$0xff]   ;;  %v6858_v24 = vld [vmem:[#allocation6 + $0x418] ss:$20 sps:$4 sm:$0xff]  }
 0x19d   :  { %3557 = vmatprep.subr.bf16.mxu1 %v6815_v4  ;;  %3772 = vmatprep.subr.bf16.mxu0 %v6818_v5  ;;  %v6857_v4 = vld [vmem:[#allocation6 + $0x414] ss:$20 sps:$4 sm:$0xff]   ;;  %v6860_v5 = vld [vmem:[#allocation6 + $0x41c] ss:$20 sps:$4 sm:$0xff]  }
 0x1a0   :  { %3558 = vmatpush1.bf16.msra.mxu1 %v6813_v9  ;;  %3773 = vmatpush1.bf16.msra.mxu0 %v6816_v10 }
 0x1a1   :  { %3559 = vmatprep.subr.bf16.mxu1 %v6821_v12  ;;  %3774 = vmatprep.subr.bf16.mxu0 %v6824_v13 }
 0x1a4   :  { %3560 = vmatpush1.bf16.msra.mxu1 %v6819_v14  ;;  %3775 = vmatpush1.bf16.msra.mxu0 %v6822_v15  ;;  %v6855_v15 = vld [vmem:[#allocation6 + $0x410] ss:$20 sps:$4 sm:$0xff]  }
 0x1a5   :  { %3561 = vmatprep.subr.bf16.mxu1 %v6827_v16  ;;  %3776 = vmatprep.subr.bf16.mxu0 %v6830_v17 }
 0x1a8   :  { %3562 = vmatpush1.bf16.msra.mxu1 %v6825_v20  ;;  %3777 = vmatpush1.bf16.msra.mxu0 %v6828_v21  ;;  %v796_v33 = vpop.f32.mrb[4].mxu0  ;;  %v6866_v20 = vld [vmem:[#allocation6 + $0x444] ss:$20 sps:$4 sm:$0xff]  }
 0x1a9   :  { %3563 = vmatprep.subr.bf16.mxu1 %v6833_v22  ;;  %3778 = vmatprep.subr.bf16.mxu0 %v6836_v27  ;;  %v797_v36 = vadd.f32 %v796_v33, %v239_v28  ;;  %v798_v37 = vpop.f32.mrb[5].mxu0  ;;  %v6872_v33 = vld [vmem:[#allocation6 + $0x46c] ss:$20 sps:$4 sm:$0xff]  }
 0x1aa   :  { %v799_v40 = vadd.f32 %v798_v37, %v243_v30  ;;  %v800_v41 = vpop.f32.mrb[6].mxu0  ;;  %v6878_v37 = vld [vmem:[#allocation6 + $0x494] ss:$20 sps:$4 sm:$0xff]  }
 0x1ab   :  { %v895_v43 = vmax.f32 %v797_v36, 0.0  ;;  %v801_v44 = vadd.f32 %v800_v41, %v239_v28  ;;  %v802_v45 = vpop.f32.mrb[7].mxu0  ;;  %v839_v3 = vpop.f32.mrb[4].mxu1  ;;  %v6861_v28 = vld [vmem:[#allocation6 + $0x438] ss:$20 sps:$4 sm:$0xff]  }
 0x1ac   :  { %3564 = vmatpush1.bf16.msra.mxu1 %v6831_v31  ;;  %3779 = vmatpush1.bf16.msra.mxu0 %v6834_v32  ;;  %v896_v49 = vmax.f32 %v799_v40, 0.0  ;;  %v803_v50 = vadd.f32 %v802_v45, %v243_v30  ;;  %v840_v6 = vadd.f32 %v839_v3, %v247_v62  ;;  %v841_v7 = vpop.f32.mrb[5].mxu1  ;;  %v6864_v30 = vld [vmem:[#allocation6 + $0x440] ss:$20 sps:$4 sm:$0xff]   ;;  %v6869_v32 = vld [vmem:[#allocation6 + $0x464] ss:$20 sps:$4 sm:$0xff]  }
 0x1ad   :  { %3565 = vmatprep.subr.bf16.mxu1 %v6839_v34  ;;  %3780 = vmatprep.subr.bf16.mxu0 %v6842_v35  ;;  %v905_v52 = vmax.f32 %v801_v44, 0.0  ;;  %v842_v9 = vadd.f32 %v841_v7, %v251_v63  ;;  %v843_v10 = vpop.f32.mrb[6].mxu1  ;;  %v6867_v34 = vld [vmem:[#allocation6 + $0x460] ss:$20 sps:$4 sm:$0xff]   ;;  %v6870_v35 = vld [vmem:[#allocation6 + $0x468] ss:$20 sps:$4 sm:$0xff]  }
 0x1ae   :  { %v906_v55 = vmax.f32 %v803_v50, 0.0  ;;  %v897_v12 = vmax.f32 %v840_v6, 0.0  ;;  %v844_v13 = vadd.f32 %v843_v10, %v247_v62  ;;  %v845_v14 = vpop.f32.mrb[7].mxu1  ;;  %v6875_v36 = vld [vmem:[#allocation6 + $0x48c] ss:$20 sps:$4 sm:$0xff]  }
 0x1af   :  { %v7921_v56 = vpack.c.bf16 %v905_v52, %v895_v43  ;;  %v898_v16 = vmax.f32 %v842_v9, 0.0  ;;  %v846_v17 = vadd.f32 %v845_v14, %v251_v63  ;;  %v6873_v40 = vld [vmem:[#allocation6 + $0x488] ss:$20 sps:$4 sm:$0xff]   ;;  %v6876_v41 = vld [vmem:[#allocation6 + $0x490] ss:$20 sps:$4 sm:$0xff]  }
 0x1b0   :  { %3566 = vmatpush1.bf16.msra.mxu1 %v6837_v39  ;;  %3781 = vmatpush1.bf16.msra.mxu0 %v6840_v29  ;;  %v7923_v59 = vpack.c.bf16 %v906_v55, %v896_v49  ;;  %v907_v21 = vmax.f32 %v844_v13, 0.0  ;;  %v217_v39 = vld [vmem:[#allocation4 + $0x8] sm:$0x3]  ;;  %v6881_v43 = vld [vmem:[#allocation6 + $0x4b4] ss:$20 sps:$4 sm:$0xff]  }
 0x1b1   :  { %3567 = vmatprep.subr.bf16.mxu1 %v6845_v48  ;;  %3782 = vmatprep.subr.bf16.mxu0 %v6848_v51  ;;  %v908_v22 = vmax.f32 %v846_v17, 0.0  ;;  %v6884_v44 = vld [vmem:[#allocation6 + $0x4bc] ss:$20 sps:$4 sm:$0xff]   ;;  %v255_v45 = vrot.slane %v217_v39, %v7881_v25  ;;  %v259_v29 = vrot.slane %v217_v39, %v7884_v26  ;;  %v6882_v49 = vld [vmem:[#allocation6 + $0x4b8] ss:$20 sps:$4 sm:$0xff]  }
 0x1b2   :  { %v7927_v27 = vpack.c.bf16 %v907_v21, %v897_v12  ;;  %v6879_v48 = vld [vmem:[#allocation6 + $0x4b0] ss:$20 sps:$4 sm:$0xff]   ;;  %v6885_v62 = vld [vmem:[#allocation6 + $0x4d8] ss:$20 sps:$4 sm:$0xff]   ;;  %v6888_v63 = vld [vmem:[#allocation6 + $0x4e0] ss:$20 sps:$4 sm:$0xff]  }
 0x1b3   :  { %v7929_v31 = vpack.c.bf16 %v908_v22, %v898_v16  ;;  %v6887_v51 = vld [vmem:[#allocation6 + $0x4dc] ss:$20 sps:$4 sm:$0xff]   ;;  %v6890_v52 = vld [vmem:[#allocation6 + $0x4e4] ss:$20 sps:$4 sm:$0xff]   ;;  %v6891_v6 = vld [vmem:[#allocation6 + $0x500] ss:$20 sps:$4 sm:$0xff]  }
 0x1b4   :  { %3568 = vmatpush1.bf16.msra.mxu1 %v6843_v57  ;;  %3783 = vmatpush1.bf16.msra.mxu0 %v6846_v58  ;;  %v6893_v3 = vld [vmem:[#allocation6 + $0x504] ss:$20 sps:$4 sm:$0xff]   ;;  %v6894_v7 = vld [vmem:[#allocation6 + $0x508] ss:$20 sps:$4 sm:$0xff]   ;;  %v6899_v13 = vld [vmem:[#allocation6 + $0x52c] ss:$20 sps:$4 sm:$0xff]  }
 0x1b5   :  { %3569 = vmatprep.subr.bf16.mxu1 %v6851_v60  ;;  %3784 = vmatprep.subr.bf16.mxu0 %v6854_v61  ;;  %v6902_v14 = vld [vmem:[#allocation6 + $0x534] ss:$20 sps:$4 sm:$0xff]   ;;  %v6908_v17 = vld [vmem:[#allocation6 + $0x55c] ss:$20 sps:$4 sm:$0xff]   ;;  %v6914_v22 = vld [vmem:[#allocation6 + $0x584] ss:$20 sps:$4 sm:$0xff]  }
 0x1b6   :  { %v6905_v16 = vld [vmem:[#allocation6 + $0x554] ss:$20 sps:$4 sm:$0xff]   ;;  %v6911_v21 = vld [vmem:[#allocation6 + $0x57c] ss:$20 sps:$4 sm:$0xff]  }
 0x1b7   :  { %v6921_v39 = vld [vmem:[#allocation6 + $0x5c8] ss:$20 sps:$4 sm:$0xff]  }
 0x1b8   :  { %3570 = vmatpush1.bf16.msra.mxu1 %v6849_v1  ;;  %3785 = vmatpush1.bf16.msra.mxu0 %v6852_v2 }
 0x1b9   :  { %3571 = vmatprep.subr.bf16.mxu1 %v6857_v4  ;;  %3786 = vmatprep.subr.bf16.mxu0 %v6860_v5  ;;  %v6896_v4 = vld [vmem:[#allocation6 + $0x50c] ss:$20 sps:$4 sm:$0xff]  }
 0x1bc   :  { %3572 = vmatpush1.bf16.msra.mxu1 %v6855_v15  ;;  %3787 = vmatpush1.bf16.msra.mxu0 %v6858_v24  ;;  %v6897_v15 = vld [vmem:[#allocation6 + $0x528] ss:$20 sps:$4 sm:$0xff]   ;;  %v6900_v24 = vld [vmem:[#allocation6 + $0x530] ss:$20 sps:$4 sm:$0xff]  }
 0x1bd   :  { %3573 = vmatprep.subr.bf16.mxu1 %v6863_v19  ;;  %3788 = vmatprep.subr.bf16.mxu0 %v6866_v20  ;;  %v6903_v19 = vld [vmem:[#allocation6 + $0x550] ss:$20 sps:$4 sm:$0xff]   ;;  %v6906_v20 = vld [vmem:[#allocation6 + $0x558] ss:$20 sps:$4 sm:$0xff]  }
 0x1c0   :  { %3574 = vmatpush1.bf16.msra.mxu1 %v6861_v28  ;;  %3789 = vmatpush1.bf16.msra.mxu0 %v6864_v30  ;;  %v6909_v28 = vld [vmem:[#allocation6 + $0x578] ss:$20 sps:$4 sm:$0xff]   ;;  %v6912_v30 = vld [vmem:[#allocation6 + $0x580] ss:$20 sps:$4 sm:$0xff]  }
 0x1c1   :  { %3575 = vmatprep.subr.bf16.mxu1 %v6869_v32  ;;  %3790 = vmatprep.subr.bf16.mxu0 %v6872_v33  ;;  %v6917_v32 = vld [vmem:[#allocation6 + $0x5a4] ss:$20 sps:$4 sm:$0xff]   ;;  %v6920_v33 = vld [vmem:[#allocation6 + $0x5ac] ss:$20 sps:$4 sm:$0xff]  }
 0x1c4   :  { %3576 = vmatpush1.bf16.msra.mxu1 %v6867_v34  ;;  %3791 = vmatpush1.bf16.msra.mxu0 %v6870_v35  ;;  %v6915_v34 = vld [vmem:[#allocation6 + $0x5a0] ss:$20 sps:$4 sm:$0xff]   ;;  %v6918_v35 = vld [vmem:[#allocation6 + $0x5a8] ss:$20 sps:$4 sm:$0xff]  }
 0x1c5   :  { %3577 = vmatprep.subr.bf16.mxu1 %v6875_v36  ;;  %3792 = vmatprep.subr.bf16.mxu0 %v6878_v37  ;;  %v6923_v36 = vld [vmem:[#allocation6 + $0x5cc] ss:$20 sps:$4 sm:$0xff]   ;;  %v6926_v37 = vld [vmem:[#allocation6 + $0x5d4] ss:$20 sps:$4 sm:$0xff]  }
 0x1c8   :  { %3578 = vmatpush1.bf16.msra.mxu1 %v6873_v40  ;;  %3793 = vmatpush1.bf16.msra.mxu0 %v6876_v41  ;;  %v882_v50 = vpop.f32.mrb[8].mxu0  ;;  %v6924_v40 = vld [vmem:[#allocation6 + $0x5d0] ss:$20 sps:$4 sm:$0xff]   ;;  %v6929_v41 = vld [vmem:[#allocation6 + $0x5f4] ss:$20 sps:$4 sm:$0xff]  }
 0x1c9   :  { %3579 = vmatprep.subr.bf16.mxu1 %v6881_v43  ;;  %3794 = vmatprep.subr.bf16.mxu0 %v6884_v44  ;;  %v883_v53 = vadd.f32 %v882_v50, %v255_v45  ;;  %v884_v54 = vpop.f32.mrb[9].mxu0  ;;  %v6932_v43 = vld [vmem:[#allocation6 + $0x5fc] ss:$20 sps:$4 sm:$0xff]   ;;  %v6936_v50 = vld [vmem:[#allocation6 + $0x620] ss:$20 sps:$4 sm:$0xff]  }
 0x1ca   :  { %v885_v55 = vadd.f32 %v884_v54, %v259_v29  ;;  %v886_v57 = vpop.f32.mrb[10].mxu0  ;;  %v6927_v44 = vld [vmem:[#allocation6 + $0x5f0] ss:$20 sps:$4 sm:$0xff]   ;;  %v6942_v54 = vld [vmem:[#allocation6 + $0x648] ss:$20 sps:$4 sm:$0xff]  }
 0x1cb   :  { %v899_v58 = vmax.f32 %v883_v53, 0.0  ;;  %v887_v60 = vadd.f32 %v886_v57, %v255_v45  ;;  %v888_v61 = vpop.f32.mrb[11].mxu0  ;;  %v6930_v45 = vld [vmem:[#allocation6 + $0x5f8] ss:$20 sps:$4 sm:$0xff]   ;;  %v6939_v53 = vld [vmem:[#allocation6 + $0x640] ss:$20 sps:$4 sm:$0xff]  }
 0x1cc   :  { %3580 = vmatpush1.bf16.msra.mxu1 %v6879_v48  ;;  %3795 = vmatpush1.bf16.msra.mxu0 %v6882_v49  ;;  %v900_v1 = vmax.f32 %v885_v55, 0.0  ;;  %v889_v2 = vadd.f32 %v888_v61, %v259_v29  ;;  %v6935_v29 = vld [vmem:[#allocation6 + $0x61c] ss:$20 sps:$4 sm:$0xff]   ;;  %v6938_v48 = vld [vmem:[#allocation6 + $0x624] ss:$20 sps:$4 sm:$0xff]  }
 0x1cd   :  { %3581 = vmatprep.subr.bf16.mxu1 %v6887_v51  ;;  %3796 = vmatprep.subr.bf16.mxu0 %v6890_v52  ;;  %v909_v5 = vmax.f32 %v887_v60, 0.0  ;;  %v6933_v49 = vld [vmem:[#allocation6 + $0x618] ss:$20 sps:$4 sm:$0xff]   ;;  %v6950_v57 = vld [vmem:[#allocation6 + $0x674] ss:$20 sps:$4 sm:$0xff]  }
 0x1ce   :  { %v910_v9 = vmax.f32 %v889_v2, 0.0  ;;  %v6941_v51 = vld [vmem:[#allocation6 + $0x644] ss:$20 sps:$4 sm:$0xff]   ;;  %v6944_v52 = vld [vmem:[#allocation6 + $0x64c] ss:$20 sps:$4 sm:$0xff]  }
 0x1cf   :  { %v7933_v10 = vpack.c.bf16 %v909_v5, %v899_v58  ;;  %v6947_v55 = vld [vmem:[#allocation6 + $0x66c] ss:$20 sps:$4 sm:$0xff]   ;;  %v6945_v58 = vld [vmem:[#allocation6 + $0x668] ss:$20 sps:$4 sm:$0xff]   ;;  %v6948_v60 = vld [vmem:[#allocation6 + $0x670] ss:$20 sps:$4 sm:$0xff]  }
 0x1d0   :  { %3582 = vmatpush1.bf16.msra.mxu1 %v6885_v62  ;;  %3797 = vmatpush1.bf16.msra.mxu0 %v6888_v63  ;;  %v7935_v12 = vpack.c.bf16 %v910_v9, %v900_v1  ;;  %v6953_v61 = vld [vmem:[#allocation6 + $0x694] ss:$20 sps:$4 sm:$0xff]   ;;  %v6956_v62 = vld [vmem:[#allocation6 + $0x69c] ss:$20 sps:$4 sm:$0xff]   ;;  %v6954_v1 = vld [vmem:[#allocation6 + $0x698] ss:$20 sps:$4 sm:$0xff]  }
 0x1d1   :  { %3594 = vmatprep.subr.bf16.mxu1 %v6893_v3  ;;  %3809 = vmatprep.subr.bf16.mxu0 %v6896_v4  ;;  %v6951_v63 = vld [vmem:[#allocation6 + $0x690] ss:$20 sps:$4 sm:$0xff]   ;;  %v6957_v4 = vld [vmem:[#allocation6 + $0x6b8] ss:$20 sps:$4 sm:$0xff]   ;;  %v6960_v5 = vld [vmem:[#allocation6 + $0x6c0] ss:$20 sps:$4 sm:$0xff]  }
 0x1d2   :  { %v6959_v2 = vld [vmem:[#allocation6 + $0x6bc] ss:$20 sps:$4 sm:$0xff]   ;;  %v6962_v3 = vld [vmem:[#allocation6 + $0x6c4] ss:$20 sps:$4 sm:$0xff]   ;;  %v6963_v9 = vld [vmem:[#allocation6 + $0x6e0] ss:$20 sps:$4 sm:$0xff]  }
 0x1d3   :  { %3584 = vmatmul.mubr.bf16.vlgmr.msra.gmra.mrb[8].mxu1 %v7907_v8  ;;  %3799 = vmatmul.mubr.bf16.vlgmr.msra.gmra.mrb[12].mxu0 %v7907_v8 }
 0x1d4   :  { %3595 = vmatpush1.bf16.msra.mxu1 %v6891_v6  ;;  %3810 = vmatpush1.bf16.msra.mxu0 %v6894_v7  ;;  %v6965_v6 = vld [vmem:[#allocation6 + $0x6e4] ss:$20 sps:$4 sm:$0xff]   ;;  %v6968_v7 = vld [vmem:[#allocation6 + $0x6ec] ss:$20 sps:$4 sm:$0xff]  }
 0x1d5   :  { %3596 = vmatprep.subr.bf16.mxu1 %v6899_v13  ;;  %3811 = vmatprep.subr.bf16.mxu0 %v6902_v14  ;;  %v6966_v13 = vld [vmem:[#allocation6 + $0x6e8] ss:$20 sps:$4 sm:$0xff]   ;;  %v6971_v14 = vld [vmem:[#allocation6 + $0x70c] ss:$20 sps:$4 sm:$0xff]  }
 0x1d6   :  { %3626 = vmatprep.mubr.bf16.mxu1 %v7923_v59  ;;  %3841 = vmatprep.mubr.bf16.mxu0 %v7923_v59 }
 0x1d8   :  { %3597 = vmatpush1.bf16.msra.mxu1 %v6897_v15  ;;  %3812 = vmatpush1.bf16.msra.mxu0 %v6900_v24  ;;  %v6974_v15 = vld [vmem:[#allocation6 + $0x714] ss:$20 sps:$4 sm:$0xff]  }
 0x1d9   :  { %3598 = vmatprep.subr.bf16.mxu1 %v6905_v16  ;;  %3813 = vmatprep.subr.bf16.mxu0 %v6908_v17  ;;  %v6969_v24 = vld [vmem:[#allocation6 + $0x708] ss:$20 sps:$4 sm:$0xff]   ;;  %v6972_v16 = vld [vmem:[#allocation6 + $0x710] ss:$20 sps:$4 sm:$0xff]  }
 0x1da   :  { %v6977_v17 = vld [vmem:[#allocation6 + $0x734] ss:$20 sps:$4 sm:$0xff]  }
 0x1dc   :  { %3599 = vmatpush1.bf16.msra.mxu1 %v6903_v19  ;;  %3814 = vmatpush1.bf16.msra.mxu0 %v6906_v20  ;;  %v6980_v19 = vld [vmem:[#allocation6 + $0x73c] ss:$20 sps:$4 sm:$0xff]  }
 0x1dd   :  { %3600 = vmatprep.subr.bf16.mxu1 %v6911_v21  ;;  %3815 = vmatprep.subr.bf16.mxu0 %v6914_v22  ;;  %v6975_v20 = vld [vmem:[#allocation6 + $0x730] ss:$20 sps:$4 sm:$0xff]   ;;  %v6978_v21 = vld [vmem:[#allocation6 + $0x738] ss:$20 sps:$4 sm:$0xff]  }
 0x1de   :  { %v6983_v22 = vld [vmem:[#allocation6 + $0x75c] ss:$20 sps:$4 sm:$0xff]  }
 0x1e0   :  { %3601 = vmatpush1.bf16.msra.mxu1 %v6909_v28  ;;  %3816 = vmatpush1.bf16.msra.mxu0 %v6912_v30  ;;  %v6986_v28 = vld [vmem:[#allocation6 + $0x764] ss:$20 sps:$4 sm:$0xff]  }
 0x1e1   :  { %3602 = vmatprep.subr.bf16.mxu1 %v6917_v32  ;;  %3817 = vmatprep.subr.bf16.mxu0 %v6920_v33  ;;  %v6981_v30 = vld [vmem:[#allocation6 + $0x758] ss:$20 sps:$4 sm:$0xff]   ;;  %v6984_v32 = vld [vmem:[#allocation6 + $0x760] ss:$20 sps:$4 sm:$0xff]  }
 0x1e2   :  { %v6989_v33 = vld [vmem:[#allocation6 + $0x784] ss:$20 sps:$4 sm:$0xff]  }
 0x1e4   :  { %3603 = vmatpush1.bf16.msra.mxu1 %v6915_v34  ;;  %3818 = vmatpush1.bf16.msra.mxu0 %v6918_v35  ;;  %v6992_v34 = vld [vmem:[#allocation6 + $0x78c] ss:$20 sps:$4 sm:$0xff]  }
 0x1e5   :  { %3604 = vmatprep.subr.bf16.mxu1 %v6923_v36  ;;  %3819 = vmatprep.subr.bf16.mxu0 %v6926_v37  ;;  %v6987_v35 = vld [vmem:[#allocation6 + $0x780] ss:$20 sps:$4 sm:$0xff]   ;;  %v6990_v36 = vld [vmem:[#allocation6 + $0x788] ss:$20 sps:$4 sm:$0xff]  }
 0x1e6   :  { %v6995_v37 = vld [vmem:[#allocation6 + $0x7ac] ss:$20 sps:$4 sm:$0xff]  }
 0x1e8   :  { %3605 = vmatpush1.bf16.msra.mxu1 %v6921_v39  ;;  %3820 = vmatpush1.bf16.msra.mxu0 %v6924_v40  ;;  %v6998_v39 = vld [vmem:[#allocation6 + $0x7b4] ss:$20 sps:$4 sm:$0xff]  }
 0x1e9   :  { %3606 = vmatprep.subr.bf16.mxu1 %v6929_v41  ;;  %3821 = vmatprep.subr.bf16.mxu0 %v6932_v43  ;;  %v6993_v40 = vld [vmem:[#allocation6 + $0x7a8] ss:$20 sps:$4 sm:$0xff]   ;;  %v6996_v41 = vld [vmem:[#allocation6 + $0x7b0] ss:$20 sps:$4 sm:$0xff]  }
 0x1ea   :  { %v7001_v43 = vld [vmem:[#allocation6 + $0x7d4] ss:$20 sps:$4 sm:$0xff]  }
 0x1ec   :  { %3607 = vmatpush1.bf16.msra.mxu1 %v6927_v44  ;;  %3822 = vmatpush1.bf16.msra.mxu0 %v6930_v45  ;;  %v7004_v44 = vld [vmem:[#allocation6 + $0x7dc] ss:$20 sps:$4 sm:$0xff]  }
 0x1ed   :  { %3608 = vmatprep.subr.bf16.mxu1 %v6935_v29  ;;  %3823 = vmatprep.subr.bf16.mxu0 %v6938_v48  ;;  %v6999_v45 = vld [vmem:[#allocation6 + $0x7d0] ss:$20 sps:$4 sm:$0xff]   ;;  %v7002_v29 = vld [vmem:[#allocation6 + $0x7d8] ss:$20 sps:$4 sm:$0xff]  }
 0x1ee   :  { %v7007_v48 = vld [vmem:[#allocation6 + $0x7fc] ss:$20 sps:$4 sm:$0xff]  }
 0x1f0   :  { %3609 = vmatpush1.bf16.msra.mxu1 %v6933_v49  ;;  %3824 = vmatpush1.bf16.msra.mxu0 %v6936_v50  ;;  %v7010_v49 = vld [vmem:[#allocation6 + $0x804] ss:$20 sps:$4 sm:$0xff]  }
 0x1f1   :  { %3610 = vmatprep.subr.bf16.mxu1 %v6941_v51  ;;  %3825 = vmatprep.subr.bf16.mxu0 %v6944_v52  ;;  %v7005_v50 = vld [vmem:[#allocation6 + $0x7f8] ss:$20 sps:$4 sm:$0xff]   ;;  %v7008_v51 = vld [vmem:[#allocation6 + $0x800] ss:$20 sps:$4 sm:$0xff]  }
 0x1f2   :  { %v7013_v52 = vld [vmem:[#allocation6 + $0x824] ss:$20 sps:$4 sm:$0xff]  }
 0x1f4   :  { %3611 = vmatpush1.bf16.msra.mxu1 %v6939_v53  ;;  %3826 = vmatpush1.bf16.msra.mxu0 %v6942_v54  ;;  %v7016_v53 = vld [vmem:[#allocation6 + $0x82c] ss:$20 sps:$4 sm:$0xff]  }
 0x1f5   :  { %3612 = vmatprep.subr.bf16.mxu1 %v6947_v55  ;;  %3827 = vmatprep.subr.bf16.mxu0 %v6950_v57  ;;  %v7011_v54 = vld [vmem:[#allocation6 + $0x820] ss:$20 sps:$4 sm:$0xff]   ;;  %v7014_v55 = vld [vmem:[#allocation6 + $0x828] ss:$20 sps:$4 sm:$0xff]  }
 0x1f6   :  { %v7019_v57 = vld [vmem:[#allocation6 + $0x84c] ss:$20 sps:$4 sm:$0xff]  }
 0x1f8   :  { %3613 = vmatpush1.bf16.msra.mxu1 %v6945_v58  ;;  %3828 = vmatpush1.bf16.msra.mxu0 %v6948_v60  ;;  %v7022_v58 = vld [vmem:[#allocation6 + $0x854] ss:$20 sps:$4 sm:$0xff]  }
 0x1f9   :  { %3614 = vmatprep.subr.bf16.mxu1 %v6953_v61  ;;  %3829 = vmatprep.subr.bf16.mxu0 %v6956_v62  ;;  %v7017_v60 = vld [vmem:[#allocation6 + $0x848] ss:$20 sps:$4 sm:$0xff]   ;;  %v7020_v61 = vld [vmem:[#allocation6 + $0x850] ss:$20 sps:$4 sm:$0xff]  }
 0x1fa   :  { %v7025_v62 = vld [vmem:[#allocation6 + $0x874] ss:$20 sps:$4 sm:$0xff]  }
 0x1fc   :  { %3615 = vmatpush1.bf16.msra.mxu1 %v6951_v63  ;;  %3830 = vmatpush1.bf16.msra.mxu0 %v6954_v1  ;;  %v7028_v63 = vld [vmem:[#allocation6 + $0x87c] ss:$20 sps:$4 sm:$0xff]  }
 0x1fd   :  { %3616 = vmatprep.subr.bf16.mxu1 %v6959_v2  ;;  %3831 = vmatprep.subr.bf16.mxu0 %v6962_v3  ;;  %v7023_v1 = vld [vmem:[#allocation6 + $0x870] ss:$20 sps:$4 sm:$0xff]   ;;  %v7026_v2 = vld [vmem:[#allocation6 + $0x878] ss:$20 sps:$4 sm:$0xff]  }
 0x1fe   :  { %v7031_v3 = vld [vmem:[#allocation6 + $0x89c] ss:$20 sps:$4 sm:$0xff]  }
 0x200   :  { %3617 = vmatpush1.bf16.msra.mxu1 %v6957_v4  ;;  %3832 = vmatpush1.bf16.msra.mxu0 %v6960_v5  ;;  %v7034_v4 = vld [vmem:[#allocation6 + $0x8a4] ss:$20 sps:$4 sm:$0xff]  }
 0x201   :  { %3618 = vmatprep.subr.bf16.mxu1 %v6965_v6  ;;  %3833 = vmatprep.subr.bf16.mxu0 %v6968_v7  ;;  %v7029_v5 = vld [vmem:[#allocation6 + $0x898] ss:$20 sps:$4 sm:$0xff]   ;;  %v7032_v6 = vld [vmem:[#allocation6 + $0x8a0] ss:$20 sps:$4 sm:$0xff]  }
 0x202   :  { %v7037_v7 = vld [vmem:[#allocation6 + $0x8c4] ss:$20 sps:$4 sm:$0xff]  }
 0x204   :  { %3619 = vmatpush1.bf16.msra.mxu1 %v6963_v9  ;;  %3834 = vmatpush1.bf16.msra.mxu0 %v6966_v13  ;;  %v7040_v9 = vld [vmem:[#allocation6 + $0x8cc] ss:$20 sps:$4 sm:$0xff]  }
 0x205   :  { %3620 = vmatprep.subr.bf16.mxu1 %v6971_v14  ;;  %3835 = vmatprep.subr.bf16.mxu0 %v6974_v15  ;;  %v7035_v13 = vld [vmem:[#allocation6 + $0x8c0] ss:$20 sps:$4 sm:$0xff]   ;;  %v7038_v14 = vld [vmem:[#allocation6 + $0x8c8] ss:$20 sps:$4 sm:$0xff]  }
 0x206   :  { %v7043_v15 = vld [vmem:[#allocation6 + $0x8ec] ss:$20 sps:$4 sm:$0xff]  }
 0x208   :  { %3621 = vmatpush1.bf16.msra.mxu1 %v6969_v24  ;;  %3836 = vmatpush1.bf16.msra.mxu0 %v6972_v16  ;;  %v7046_v24 = vld [vmem:[#allocation6 + $0x8f4] ss:$20 sps:$4 sm:$0xff]  }
 0x209   :  { %3622 = vmatprep.subr.bf16.mxu1 %v6977_v17  ;;  %3837 = vmatprep.subr.bf16.mxu0 %v6980_v19  ;;  %v7041_v16 = vld [vmem:[#allocation6 + $0x8e8] ss:$20 sps:$4 sm:$0xff]   ;;  %v7044_v17 = vld [vmem:[#allocation6 + $0x8f0] ss:$20 sps:$4 sm:$0xff]  }
 0x20a   :  { %v7049_v19 = vld [vmem:[#allocation6 + $0x914] ss:$20 sps:$4 sm:$0xff]  }
 0x20c   :  { %3623 = vmatpush1.bf16.msra.mxu1 %v6975_v20  ;;  %3838 = vmatpush1.bf16.msra.mxu0 %v6978_v21  ;;  %v7052_v20 = vld [vmem:[#allocation6 + $0x91c] ss:$20 sps:$4 sm:$0xff]  }
 0x20d   :  { %3624 = vmatprep.subr.bf16.mxu1 %v6983_v22  ;;  %3839 = vmatprep.subr.bf16.mxu0 %v6986_v28  ;;  %v7047_v21 = vld [vmem:[#allocation6 + $0x910] ss:$20 sps:$4 sm:$0xff]   ;;  %v7050_v22 = vld [vmem:[#allocation6 + $0x918] ss:$20 sps:$4 sm:$0xff]  }
 0x20e   :  { %v7055_v28 = vld [vmem:[#allocation6 + $0x93c] ss:$20 sps:$4 sm:$0xff]  }
 0x210   :  { %3625 = vmatpush1.bf16.msra.mxu1 %v6981_v30  ;;  %3840 = vmatpush1.bf16.msra.mxu0 %v6984_v32  ;;  %v7058_v30 = vld [vmem:[#allocation6 + $0x944] ss:$20 sps:$4 sm:$0xff]  }
 0x211   :  { %3637 = vmatprep.subr.bf16.mxu1 %v6989_v33  ;;  %3852 = vmatprep.subr.bf16.mxu0 %v6992_v34  ;;  %v7053_v32 = vld [vmem:[#allocation6 + $0x938] ss:$20 sps:$4 sm:$0xff]   ;;  %v7056_v33 = vld [vmem:[#allocation6 + $0x940] ss:$20 sps:$4 sm:$0xff]  }
 0x212   :  { %v7061_v34 = vld [vmem:[#allocation6 + $0x964] ss:$20 sps:$4 sm:$0xff]  }
 0x213   :  { %3627 = vmatmul.mubr.bf16.vlgmr.msra.gmra.mrb[8].mxu1 %v7921_v56  ;;  %3842 = vmatmul.mubr.bf16.vlgmr.msra.gmra.mrb[12].mxu0 %v7921_v56 }
 0x214   :  { %3638 = vmatpush1.bf16.msra.mxu1 %v6987_v35  ;;  %3853 = vmatpush1.bf16.msra.mxu0 %v6990_v36  ;;  %v7064_v35 = vld [vmem:[#allocation6 + $0x96c] ss:$20 sps:$4 sm:$0xff]  }
 0x215   :  { %3639 = vmatprep.subr.bf16.mxu1 %v6995_v37  ;;  %3854 = vmatprep.subr.bf16.mxu0 %v6998_v39  ;;  %v7059_v36 = vld [vmem:[#allocation6 + $0x960] ss:$20 sps:$4 sm:$0xff]   ;;  %v7062_v37 = vld [vmem:[#allocation6 + $0x968] ss:$20 sps:$4 sm:$0xff]  }
 0x216   :  { %3669 = vmatprep.mubr.bf16.mxu1 %v7929_v31  ;;  %3884 = vmatprep.mubr.bf16.mxu0 %v7929_v31  ;;  %v7067_v39 = vld [vmem:[#allocation6 + $0x98c] ss:$20 sps:$4 sm:$0xff]  }
 0x218   :  { %3640 = vmatpush1.bf16.msra.mxu1 %v6993_v40  ;;  %3855 = vmatpush1.bf16.msra.mxu0 %v6996_v41  ;;  %v7070_v40 = vld [vmem:[#allocation6 + $0x994] ss:$20 sps:$4 sm:$0xff]  }
 0x219   :  { %3641 = vmatprep.subr.bf16.mxu1 %v7001_v43  ;;  %3856 = vmatprep.subr.bf16.mxu0 %v7004_v44  ;;  %v7065_v41 = vld [vmem:[#allocation6 + $0x988] ss:$20 sps:$4 sm:$0xff]   ;;  %v7068_v43 = vld [vmem:[#allocation6 + $0x990] ss:$20 sps:$4 sm:$0xff]  }
 0x21a   :  { %v7073_v44 = vld [vmem:[#allocation6 + $0x9b4] ss:$20 sps:$4 sm:$0xff]  }
 0x21c   :  { %3642 = vmatpush1.bf16.msra.mxu1 %v6999_v45  ;;  %3857 = vmatpush1.bf16.msra.mxu0 %v7002_v29  ;;  %v7076_v45 = vld [vmem:[#allocation6 + $0x9bc] ss:$20 sps:$4 sm:$0xff]  }
 0x21d   :  { %3643 = vmatprep.subr.bf16.mxu1 %v7007_v48  ;;  %3858 = vmatprep.subr.bf16.mxu0 %v7010_v49  ;;  %v7071_v29 = vld [vmem:[#allocation6 + $0x9b0] ss:$20 sps:$4 sm:$0xff]   ;;  %v7074_v48 = vld [vmem:[#allocation6 + $0x9b8] ss:$20 sps:$4 sm:$0xff]  }
 0x21e   :  { %v7079_v49 = vld [vmem:[#allocation6 + $0x9dc] ss:$20 sps:$4 sm:$0xff]  }
 0x220   :  { %3644 = vmatpush1.bf16.msra.mxu1 %v7005_v50  ;;  %3859 = vmatpush1.bf16.msra.mxu0 %v7008_v51  ;;  %v7082_v50 = vld [vmem:[#allocation6 + $0x9e4] ss:$20 sps:$4 sm:$0xff]  }
 0x221   :  { %3645 = vmatprep.subr.bf16.mxu1 %v7013_v52  ;;  %3860 = vmatprep.subr.bf16.mxu0 %v7016_v53  ;;  %v7077_v51 = vld [vmem:[#allocation6 + $0x9d8] ss:$20 sps:$4 sm:$0xff]   ;;  %v7080_v52 = vld [vmem:[#allocation6 + $0x9e0] ss:$20 sps:$4 sm:$0xff]  }
 0x222   :  { %v7085_v53 = vld [vmem:[#allocation6 + $0xa04] ss:$20 sps:$4 sm:$0xff]  }
 0x224   :  { %3646 = vmatpush1.bf16.msra.mxu1 %v7011_v54  ;;  %3861 = vmatpush1.bf16.msra.mxu0 %v7014_v55  ;;  %v7088_v54 = vld [vmem:[#allocation6 + $0xa0c] ss:$20 sps:$4 sm:$0xff]  }
 0x225   :  { %3647 = vmatprep.subr.bf16.mxu1 %v7019_v57  ;;  %3862 = vmatprep.subr.bf16.mxu0 %v7022_v58  ;;  %v7083_v55 = vld [vmem:[#allocation6 + $0xa00] ss:$20 sps:$4 sm:$0xff]   ;;  %v7086_v57 = vld [vmem:[#allocation6 + $0xa08] ss:$20 sps:$4 sm:$0xff]  }
 0x226   :  { %v7091_v58 = vld [vmem:[#allocation6 + $0xa2c] ss:$20 sps:$4 sm:$0xff]  }
 0x228   :  { %3648 = vmatpush1.bf16.msra.mxu1 %v7017_v60  ;;  %3863 = vmatpush1.bf16.msra.mxu0 %v7020_v61  ;;  %v7094_v60 = vld [vmem:[#allocation6 + $0xa34] ss:$20 sps:$4 sm:$0xff]  }
 0x229   :  { %3649 = vmatprep.subr.bf16.mxu1 %v7025_v62  ;;  %3864 = vmatprep.subr.bf16.mxu0 %v7028_v63  ;;  %v7089_v61 = vld [vmem:[#allocation6 + $0xa28] ss:$20 sps:$4 sm:$0xff]   ;;  %v7092_v62 = vld [vmem:[#allocation6 + $0xa30] ss:$20 sps:$4 sm:$0xff]  }
 0x22a   :  { %v7097_v63 = vld [vmem:[#allocation6 + $0xa54] ss:$20 sps:$4 sm:$0xff]  }
 0x22c   :  { %3650 = vmatpush1.bf16.msra.mxu1 %v7023_v1  ;;  %3865 = vmatpush1.bf16.msra.mxu0 %v7026_v2  ;;  %v7100_v1 = vld [vmem:[#allocation6 + $0xa5c] ss:$20 sps:$4 sm:$0xff]  }
 0x22d   :  { %3651 = vmatprep.subr.bf16.mxu1 %v7031_v3  ;;  %3866 = vmatprep.subr.bf16.mxu0 %v7034_v4  ;;  %v7095_v2 = vld [vmem:[#allocation6 + $0xa50] ss:$20 sps:$4 sm:$0xff]   ;;  %v7098_v3 = vld [vmem:[#allocation6 + $0xa58] ss:$20 sps:$4 sm:$0xff]  }
 0x22e   :  { %v7103_v4 = vld [vmem:[#allocation6 + $0xa7c] ss:$20 sps:$4 sm:$0xff]  }
 0x230   :  { %3652 = vmatpush1.bf16.msra.mxu1 %v7029_v5  ;;  %3867 = vmatpush1.bf16.msra.mxu0 %v7032_v6  ;;  %v7106_v5 = vld [vmem:[#allocation6 + $0xa84] ss:$20 sps:$4 sm:$0xff]  }
 0x231   :  { %3653 = vmatprep.subr.bf16.mxu1 %v7037_v7  ;;  %3868 = vmatprep.subr.bf16.mxu0 %v7040_v9  ;;  %v7101_v6 = vld [vmem:[#allocation6 + $0xa78] ss:$20 sps:$4 sm:$0xff]   ;;  %v7104_v7 = vld [vmem:[#allocation6 + $0xa80] ss:$20 sps:$4 sm:$0xff]  }
 0x232   :  { %v7109_v9 = vld [vmem:[#allocation6 + $0xaa4] ss:$20 sps:$4 sm:$0xff]  }
 0x234   :  { %3654 = vmatpush1.bf16.msra.mxu1 %v7035_v13  ;;  %3869 = vmatpush1.bf16.msra.mxu0 %v7038_v14  ;;  %v7112_v13 = vld [vmem:[#allocation6 + $0xaac] ss:$20 sps:$4 sm:$0xff]  }
 0x235   :  { %3655 = vmatprep.subr.bf16.mxu1 %v7043_v15  ;;  %3870 = vmatprep.subr.bf16.mxu0 %v7046_v24  ;;  %v7107_v14 = vld [vmem:[#allocation6 + $0xaa0] ss:$20 sps:$4 sm:$0xff]   ;;  %v7110_v15 = vld [vmem:[#allocation6 + $0xaa8] ss:$20 sps:$4 sm:$0xff]  }
 0x236   :  { %v7115_v24 = vld [vmem:[#allocation6 + $0xacc] ss:$20 sps:$4 sm:$0xff]  }
 0x238   :  { %3656 = vmatpush1.bf16.msra.mxu1 %v7041_v16  ;;  %3871 = vmatpush1.bf16.msra.mxu0 %v7044_v17  ;;  %v7118_v16 = vld [vmem:[#allocation6 + $0xad4] ss:$20 sps:$4 sm:$0xff]  }
 0x239   :  { %3657 = vmatprep.subr.bf16.mxu1 %v7049_v19  ;;  %3872 = vmatprep.subr.bf16.mxu0 %v7052_v20  ;;  %v7113_v17 = vld [vmem:[#allocation6 + $0xac8] ss:$20 sps:$4 sm:$0xff]   ;;  %v7116_v19 = vld [vmem:[#allocation6 + $0xad0] ss:$20 sps:$4 sm:$0xff]  }
 0x23a   :  { %v7121_v20 = vld [vmem:[#allocation6 + $0xaf4] ss:$20 sps:$4 sm:$0xff]  }
 0x23c   :  { %3658 = vmatpush1.bf16.msra.mxu1 %v7047_v21  ;;  %3873 = vmatpush1.bf16.msra.mxu0 %v7050_v22  ;;  %v7124_v21 = vld [vmem:[#allocation6 + $0xafc] ss:$20 sps:$4 sm:$0xff]  }
 0x23d   :  { %3659 = vmatprep.subr.bf16.mxu1 %v7055_v28  ;;  %3874 = vmatprep.subr.bf16.mxu0 %v7058_v30  ;;  %v7119_v22 = vld [vmem:[#allocation6 + $0xaf0] ss:$20 sps:$4 sm:$0xff]   ;;  %v7122_v28 = vld [vmem:[#allocation6 + $0xaf8] ss:$20 sps:$4 sm:$0xff]  }
 0x23e   :  { %v7127_v30 = vld [vmem:[#allocation6 + $0xb1c] ss:$20 sps:$4 sm:$0xff]  }
 0x240   :  { %3660 = vmatpush1.bf16.msra.mxu1 %v7053_v32  ;;  %3875 = vmatpush1.bf16.msra.mxu0 %v7056_v33  ;;  %v7130_v32 = vld [vmem:[#allocation6 + $0xb24] ss:$20 sps:$4 sm:$0xff]  }
 0x241   :  { %3661 = vmatprep.subr.bf16.mxu1 %v7061_v34  ;;  %3876 = vmatprep.subr.bf16.mxu0 %v7064_v35  ;;  %v7125_v33 = vld [vmem:[#allocation6 + $0xb18] ss:$20 sps:$4 sm:$0xff]   ;;  %v7128_v34 = vld [vmem:[#allocation6 + $0xb20] ss:$20 sps:$4 sm:$0xff]  }
 0x242   :  { %v7133_v35 = vld [vmem:[#allocation6 + $0xb44] ss:$20 sps:$4 sm:$0xff]  }
 0x244   :  { %3662 = vmatpush1.bf16.msra.mxu1 %v7059_v36  ;;  %3877 = vmatpush1.bf16.msra.mxu0 %v7062_v37  ;;  %v7136_v36 = vld [vmem:[#allocation6 + $0xb4c] ss:$20 sps:$4 sm:$0xff]  }
 0x245   :  { %3663 = vmatprep.subr.bf16.mxu1 %v7067_v39  ;;  %3878 = vmatprep.subr.bf16.mxu0 %v7070_v40  ;;  %v7131_v37 = vld [vmem:[#allocation6 + $0xb40] ss:$20 sps:$4 sm:$0xff]   ;;  %v7134_v39 = vld [vmem:[#allocation6 + $0xb48] ss:$20 sps:$4 sm:$0xff]  }
 0x246   :  { %v7139_v40 = vld [vmem:[#allocation6 + $0xb6c] ss:$20 sps:$4 sm:$0xff]  }
 0x248   :  { %3664 = vmatpush1.bf16.msra.mxu1 %v7065_v41  ;;  %3879 = vmatpush1.bf16.msra.mxu0 %v7068_v43  ;;  %v7142_v41 = vld [vmem:[#allocation6 + $0xb74] ss:$20 sps:$4 sm:$0xff]  }
 0x249   :  { %3665 = vmatprep.subr.bf16.mxu1 %v7073_v44  ;;  %3880 = vmatprep.subr.bf16.mxu0 %v7076_v45  ;;  %v7137_v43 = vld [vmem:[#allocation6 + $0xb68] ss:$20 sps:$4 sm:$0xff]   ;;  %v7140_v44 = vld [vmem:[#allocation6 + $0xb70] ss:$20 sps:$4 sm:$0xff]  }
 0x24a   :  { %v7145_v45 = vld [vmem:[#allocation6 + $0xb94] ss:$20 sps:$4 sm:$0xff]  }
 0x24c   :  { %3666 = vmatpush1.bf16.msra.mxu1 %v7071_v29  ;;  %3881 = vmatpush1.bf16.msra.mxu0 %v7074_v48  ;;  %v7148_v29 = vld [vmem:[#allocation6 + $0xb9c] ss:$20 sps:$4 sm:$0xff]  }
 0x24d   :  { %3667 = vmatprep.subr.bf16.mxu1 %v7079_v49  ;;  %3882 = vmatprep.subr.bf16.mxu0 %v7082_v50  ;;  %v7143_v48 = vld [vmem:[#allocation6 + $0xb90] ss:$20 sps:$4 sm:$0xff]   ;;  %v7146_v49 = vld [vmem:[#allocation6 + $0xb98] ss:$20 sps:$4 sm:$0xff]  }
 0x24e   :  { %v7151_v50 = vld [vmem:[#allocation6 + $0xbbc] ss:$20 sps:$4 sm:$0xff]  }
 0x250   :  { %3668 = vmatpush1.bf16.msra.mxu1 %v7077_v51  ;;  %3883 = vmatpush1.bf16.msra.mxu0 %v7080_v52  ;;  %v7154_v51 = vld [vmem:[#allocation6 + $0xbc4] ss:$20 sps:$4 sm:$0xff]  }
 0x251   :  { %3680 = vmatprep.subr.bf16.mxu1 %v7085_v53  ;;  %3895 = vmatprep.subr.bf16.mxu0 %v7088_v54  ;;  %v7149_v52 = vld [vmem:[#allocation6 + $0xbb8] ss:$20 sps:$4 sm:$0xff]   ;;  %v7152_v53 = vld [vmem:[#allocation6 + $0xbc0] ss:$20 sps:$4 sm:$0xff]  }
 0x252   :  { %v7157_v54 = vld [vmem:[#allocation6 + $0xbe4] ss:$20 sps:$4 sm:$0xff]  }
 0x253   :  { %3670 = vmatmul.mubr.bf16.vlgmr.msra.gmra.mrb[8].mxu1 %v7927_v27  ;;  %3885 = vmatmul.mubr.bf16.vlgmr.msra.gmra.mrb[12].mxu0 %v7927_v27 }
 0x254   :  { %3681 = vmatpush1.bf16.msra.mxu1 %v7083_v55  ;;  %3712 = vmatprep.mubr.bf16.mxu1 %v7935_v12  ;;  %v7160_v55 = vld [vmem:[#allocation6 + $0xbec] ss:$20 sps:$4 sm:$0xff]  }
 0x255   :  { %3896 = vmatpush1.bf16.msra.mxu0 %v7086_v57  ;;  %3927 = vmatprep.mubr.bf16.mxu0 %v7935_v12  ;;  %v7155_v57 = vld [vmem:[#allocation6 + $0xbe0] ss:$20 sps:$4 sm:$0xff]  }
 0x256   :  { %3682 = vmatprep.subr.bf16.mxu1 %v7091_v58  ;;  %3897 = vmatprep.subr.bf16.mxu0 %v7094_v60  ;;  %v7158_v58 = vld [vmem:[#allocation6 + $0xbe8] ss:$20 sps:$4 sm:$0xff]   ;;  %v7163_v60 = vld [vmem:[#allocation6 + $0xc0c] ss:$20 sps:$4 sm:$0xff]  }
 0x258   :  { %3683 = vmatpush1.bf16.msra.mxu1 %v7089_v61  ;;  %v7166_v61 = vld [vmem:[#allocation6 + $0xc14] ss:$20 sps:$4 sm:$0xff]  }
 0x259   :  { %3898 = vmatpush1.bf16.msra.mxu0 %v7092_v62  ;;  %3684 = vmatprep.subr.bf16.mxu1 %v7097_v63  ;;  %v7161_v62 = vld [vmem:[#allocation6 + $0xc08] ss:$20 sps:$4 sm:$0xff]   ;;  %v7164_v63 = vld [vmem:[#allocation6 + $0xc10] ss:$20 sps:$4 sm:$0xff]  }
 0x25a   :  { %3899 = vmatprep.subr.bf16.mxu0 %v7100_v1  ;;  %v7169_v1 = vld [vmem:[#allocation6 + $0xc34] ss:$20 sps:$4 sm:$0xff]  }
 0x25c   :  { %3685 = vmatpush1.bf16.msra.mxu1 %v7095_v2  ;;  %v7172_v2 = vld [vmem:[#allocation6 + $0xc3c] ss:$20 sps:$4 sm:$0xff]  }
 0x25d   :  { %3900 = vmatpush1.bf16.msra.mxu0 %v7098_v3  ;;  %3686 = vmatprep.subr.bf16.mxu1 %v7103_v4  ;;  %v7167_v3 = vld [vmem:[#allocation6 + $0xc30] ss:$20 sps:$4 sm:$0xff]   ;;  %v7170_v4 = vld [vmem:[#allocation6 + $0xc38] ss:$20 sps:$4 sm:$0xff]  }
 0x25e   :  { %3901 = vmatprep.subr.bf16.mxu0 %v7106_v5  ;;  %v7175_v5 = vld [vmem:[#allocation6 + $0xc5c] ss:$20 sps:$4 sm:$0xff]  }
 0x260   :  { %3687 = vmatpush1.bf16.msra.mxu1 %v7101_v6  ;;  %v7178_v6 = vld [vmem:[#allocation6 + $0xc64] ss:$20 sps:$4 sm:$0xff]  }
 0x261   :  { %3902 = vmatpush1.bf16.msra.mxu0 %v7104_v7  ;;  %3688 = vmatprep.subr.bf16.mxu1 %v7109_v9  ;;  %v7173_v7 = vld [vmem:[#allocation6 + $0xc58] ss:$20 sps:$4 sm:$0xff]   ;;  %v7176_v9 = vld [vmem:[#allocation6 + $0xc60] ss:$20 sps:$4 sm:$0xff]  }
 0x262   :  { %3903 = vmatprep.subr.bf16.mxu0 %v7112_v13  ;;  %v7179_v13 = vld [vmem:[#allocation6 + $0x150] ss:$20 sps:$4 sm:$0xff]  }
 0x264   :  { %3689 = vmatpush1.bf16.msra.mxu1 %v7107_v14  ;;  %v7180_v14 = vld [vmem:[#allocation6 + $0x3d0] ss:$20 sps:$4 sm:$0xff]  }
 0x265   :  { %3904 = vmatpush1.bf16.msra.mxu0 %v7110_v15  ;;  %3690 = vmatprep.subr.bf16.mxu1 %v7115_v24  ;;  %v7181_v15 = vld [vmem:[#allocation6 + $0x10] ss:$20 sps:$4 sm:$0xff]  }
 0x266   :  { %3905 = vmatprep.subr.bf16.mxu0 %v7118_v16  ;;  %v7182_v24 = vld [vmem:[#allocation6 + $0x290] ss:$20 sps:$4 sm:$0xff]   ;;  %v7183_v16 = vld [vmem:[#allocation6 + $0x178] ss:$20 sps:$4 sm:$0xff]  }
 0x268   :  { %3691 = vmatpush1.bf16.msra.mxu1 %v7113_v17  ;;  %v7184_v17 = vld [vmem:[#allocation6 + $0x3f8] ss:$20 sps:$4 sm:$0xff]  }
 0x269   :  { %3906 = vmatpush1.bf16.msra.mxu0 %v7116_v19  ;;  %3692 = vmatprep.subr.bf16.mxu1 %v7121_v20  ;;  %v7185_v19 = vld [vmem:[#allocation6 + $0x38] ss:$20 sps:$4 sm:$0xff]  }
 0x26a   :  { %3907 = vmatprep.subr.bf16.mxu0 %v7124_v21  ;;  %v7186_v20 = vld [vmem:[#allocation6 + $0x2b8] ss:$20 sps:$4 sm:$0xff]   ;;  %v7187_v21 = vld [vmem:[#allocation6 + $0x1a0] ss:$20 sps:$4 sm:$0xff]  }
 0x26c   :  { %3693 = vmatpush1.bf16.msra.mxu1 %v7119_v22  ;;  %v7188_v22 = vld [vmem:[#allocation6 + $0x420] ss:$20 sps:$4 sm:$0xff]  }
 0x26d   :  { %3908 = vmatpush1.bf16.msra.mxu0 %v7122_v28  ;;  %3694 = vmatprep.subr.bf16.mxu1 %v7127_v30  ;;  %v7189_v28 = vld [vmem:[#allocation6 + $0x60] ss:$20 sps:$4 sm:$0xff]  }
 0x26e   :  { %3909 = vmatprep.subr.bf16.mxu0 %v7130_v32  ;;  %v7190_v30 = vld [vmem:[#allocation6 + $0x2e0] ss:$20 sps:$4 sm:$0xff]   ;;  %v7191_v32 = vld [vmem:[#allocation6 + $0x1c8] ss:$20 sps:$4 sm:$0xff]  }
 0x270   :  { %3695 = vmatpush1.bf16.msra.mxu1 %v7125_v33  ;;  %v7192_v33 = vld [vmem:[#allocation6 + $0x448] ss:$20 sps:$4 sm:$0xff]  }
 0x271   :  { %3910 = vmatpush1.bf16.msra.mxu0 %v7128_v34  ;;  %3696 = vmatprep.subr.bf16.mxu1 %v7133_v35  ;;  %v7193_v34 = vld [vmem:[#allocation6 + $0x88] ss:$20 sps:$4 sm:$0xff]   ;;  %v7195_v35 = vld [vmem:[#allocation6 + $0x1f0] ss:$20 sps:$4 sm:$0xff]  }
 0x272   :  { %3911 = vmatprep.subr.bf16.mxu0 %v7136_v36  ;;  %v7196_v36 = vld [vmem:[#allocation6 + $0x470] ss:$20 sps:$4 sm:$0xff]  }
 0x274   :  { %3697 = vmatpush1.bf16.msra.mxu1 %v7131_v37  ;;  %v7198_v37 = vld [vmem:[#allocation6 + $0x330] ss:$20 sps:$4 sm:$0xff]  }
 0x275   :  { %3912 = vmatpush1.bf16.msra.mxu0 %v7134_v39  ;;  %3698 = vmatprep.subr.bf16.mxu1 %v7139_v40  ;;  %v7199_v39 = vld [vmem:[#allocation6 + $0x218] ss:$20 sps:$4 sm:$0xff]  }
 0x276   :  { %3913 = vmatprep.subr.bf16.mxu0 %v7142_v41  ;;  %v7200_v40 = vld [vmem:[#allocation6 + $0x498] ss:$20 sps:$4 sm:$0xff]  }
 0x277   :  { %v7201_v41 = vld [vmem:[#allocation6 + $0xd8] ss:$20 sps:$4 sm:$0xff]  }
 0x278   :  { %3699 = vmatpush1.bf16.msra.mxu1 %v7137_v43  ;;  %v7202_v43 = vld [vmem:[#allocation6 + $0x358] ss:$20 sps:$4 sm:$0xff]  }
 0x279   :  { %3914 = vmatpush1.bf16.msra.mxu0 %v7140_v44  ;;  %3700 = vmatprep.subr.bf16.mxu1 %v7145_v45  ;;  %v7203_v44 = vld [vmem:[#allocation6 + $0x240] ss:$20 sps:$4 sm:$0xff]  }
 0x27a   :  { %3915 = vmatprep.subr.bf16.mxu0 %v7148_v29  ;;  %v7204_v45 = vld [vmem:[#allocation6 + $0x4c0] ss:$20 sps:$4 sm:$0xff]  }
 0x27b   :  { %v7205_v29 = vld [vmem:[#allocation6 + $0x100] ss:$20 sps:$4 sm:$0xff]  }
 0x27c   :  { %3701 = vmatpush1.bf16.msra.mxu1 %v7143_v48  ;;  %v7206_v48 = vld [vmem:[#allocation6 + $0x380] ss:$20 sps:$4 sm:$0xff]  }
 0x27d   :  { %3916 = vmatpush1.bf16.msra.mxu0 %v7146_v49  ;;  %3702 = vmatprep.subr.bf16.mxu1 %v7151_v50  ;;  %v7207_v49 = vld [vmem:[#allocation6 + $0x268] ss:$20 sps:$4 sm:$0xff]  }
 0x27e   :  { %3917 = vmatprep.subr.bf16.mxu0 %v7154_v51  ;;  %v7208_v50 = vld [vmem:[#allocation6 + $0x4e8] ss:$20 sps:$4 sm:$0xff]  }
 0x27f   :  { %v7209_v51 = vld [vmem:[#allocation6 + $0x128] ss:$20 sps:$4 sm:$0xff]  }
 0x280   :  { %3703 = vmatpush1.bf16.msra.mxu1 %v7149_v52  ;;  %v7210_v52 = vld [vmem:[#allocation6 + $0x3a8] ss:$20 sps:$4 sm:$0xff]  }
 0x281   :  { %3918 = vmatpush1.bf16.msra.mxu0 %v7152_v53  ;;  %3704 = vmatprep.subr.bf16.mxu1 %v7157_v54  ;;  %v7211_v53 = vld [vmem:[#allocation6 + $0x650] ss:$20 sps:$4 sm:$0xff]  }
 0x282   :  { %3919 = vmatprep.subr.bf16.mxu0 %v7160_v55  ;;  %v7212_v54 = vld [vmem:[#allocation6 + $0x8d0] ss:$20 sps:$4 sm:$0xff]  }
 0x283   :  { %v7213_v55 = vld [vmem:[#allocation6 + $0x510] ss:$20 sps:$4 sm:$0xff]  }
 0x284   :  { %3705 = vmatpush1.bf16.msra.mxu1 %v7155_v57  ;;  %v7214_v57 = vld [vmem:[#allocation6 + $0x790] ss:$20 sps:$4 sm:$0xff]  }
 0x285   :  { %3920 = vmatpush1.bf16.msra.mxu0 %v7158_v58  ;;  %3706 = vmatprep.subr.bf16.mxu1 %v7163_v60  ;;  %v7215_v58 = vld [vmem:[#allocation6 + $0x678] ss:$20 sps:$4 sm:$0xff]  }
 0x286   :  { %3921 = vmatprep.subr.bf16.mxu0 %v7166_v61  ;;  %v7216_v60 = vld [vmem:[#allocation6 + $0x8f8] ss:$20 sps:$4 sm:$0xff]  }
 0x287   :  { %v7217_v61 = vld [vmem:[#allocation6 + $0x538] ss:$20 sps:$4 sm:$0xff]  }
 0x288   :  { %3707 = vmatpush1.bf16.msra.mxu1 %v7161_v62  ;;  %v7218_v62 = vld [vmem:[#allocation6 + $0x7b8] ss:$20 sps:$4 sm:$0xff]  }
 0x289   :  { %3922 = vmatpush1.bf16.msra.mxu0 %v7164_v63  ;;  %3708 = vmatprep.subr.bf16.mxu1 %v7169_v1  ;;  %v7219_v63 = vld [vmem:[#allocation6 + $0x6a0] ss:$20 sps:$4 sm:$0xff]  }
 0x28a   :  { %3923 = vmatprep.subr.bf16.mxu0 %v7172_v2  ;;  %v7220_v1 = vld [vmem:[#allocation6 + $0x920] ss:$20 sps:$4 sm:$0xff]  }
 0x28b   :  { %v7221_v2 = vld [vmem:[#allocation6 + $0x560] ss:$20 sps:$4 sm:$0xff]  }
 0x28c   :  { %3709 = vmatpush1.bf16.msra.mxu1 %v7167_v3  ;;  %v7223_v3 = vld [vmem:[#allocation6 + $0x6c8] ss:$20 sps:$4 sm:$0xff]  }
 0x28d   :  { %3924 = vmatpush1.bf16.msra.mxu0 %v7170_v4  ;;  %3710 = vmatprep.subr.bf16.mxu1 %v7175_v5  ;;  %v7225_v4 = vld [vmem:[#allocation6 + $0x588] ss:$20 sps:$4 sm:$0xff]   ;;  %v7227_v5 = vld [vmem:[#allocation6 + $0x6f0] ss:$20 sps:$4 sm:$0xff]  }
 0x28e   :  { %3925 = vmatprep.subr.bf16.mxu0 %v7178_v6  ;;  %v7228_v6 = vld [vmem:[#allocation6 + $0x970] ss:$20 sps:$4 sm:$0xff]  }
 0x290   :  { %3711 = vmatpush1.bf16.msra.mxu1 %v7173_v7  ;;  %v7230_v7 = vld [vmem:[#allocation6 + $0x830] ss:$20 sps:$4 sm:$0xff]  }
 0x291   :  { %3926 = vmatpush1.bf16.msra.mxu0 %v7176_v9  ;;  %6316 = vmatprep.subr.bf16.mxu1 %v7179_v13  ;;  %v7231_v9 = vld [vmem:[#allocation6 + $0x718] ss:$20 sps:$4 sm:$0xff]  }
 0x292   :  { %6338 = vmatprep.subr.bf16.mxu0 %v7180_v14  ;;  %v7232_v13 = vld [vmem:[#allocation6 + $0x998] ss:$20 sps:$4 sm:$0xff]  }
 0x293   :  { %3713 = vmatmul.mubr.bf16.vlgmr.msra.gmra.mrb[8].mxu1 %v7933_v10  ;;  %v7233_v14 = vld [vmem:[#allocation6 + $0x5d8] ss:$20 sps:$4 sm:$0xff]  }
 0x294   :  { %3928 = vmatmul.mubr.bf16.vlgmr.msra.gmra.mrb[12].mxu0 %v7933_v10  ;;  %6317 = vmatpush3.bf16.msra.mxu1 %v7181_v15  ;;  %v7234_v15 = vld [vmem:[#allocation6 + $0x858] ss:$20 sps:$4 sm:$0xff]  }
 0x295   :  { %3970 = vmatprep.mubr.bf16.mxu1 %v7896_v47  ;;  %6339 = vmatpush3.bf16.msra.mxu0 %v7182_v24  ;;  %v7194_v47 = vld [vmem:[#allocation6 + $0x308] ss:$20 sps:$4 sm:$0xff]   ;;  %v7235_v24 = vld [vmem:[#allocation6 + $0x740] ss:$20 sps:$4 sm:$0xff]  }
 0x296   :  { %4011 = vmatprep.mubr.bf16.mxu0 %v7909_v11  ;;  %6318 = vmatprep.subr.bf16.mxu1 %v7183_v16  ;;  %v7197_v11 = vld [vmem:[#allocation6 + $0xb0] ss:$20 sps:$4 sm:$0xff]   ;;  %v7236_v16 = vld [vmem:[#allocation6 + $0x9c0] ss:$20 sps:$4 sm:$0xff]  }
 0x297   :  { %6340 = vmatprep.subr.bf16.mxu0 %v7184_v17  ;;  %v7237_v17 = vld [vmem:[#allocation6 + $0x600] ss:$20 sps:$4 sm:$0xff]  }
 0x298   :  { %6319 = vmatpush3.bf16.msra.mxu1 %v7185_v19  ;;  %v7238_v19 = vld [vmem:[#allocation6 + $0x880] ss:$20 sps:$4 sm:$0xff]  }
 0x299   :  { %6341 = vmatpush3.bf16.msra.mxu0 %v7186_v20  ;;  %6320 = vmatprep.subr.bf16.mxu1 %v7187_v21  ;;  %v7239_v20 = vld [vmem:[#allocation6 + $0x768] ss:$20 sps:$4 sm:$0xff]  }
 0x29a   :  { %6342 = vmatprep.subr.bf16.mxu0 %v7188_v22  ;;  %v7240_v21 = vld [vmem:[#allocation6 + $0x9e8] ss:$20 sps:$4 sm:$0xff]  }
 0x29b   :  { %v7241_v22 = vld [vmem:[#allocation6 + $0x628] ss:$20 sps:$4 sm:$0xff]  }
 0x29c   :  { %6321 = vmatpush3.bf16.msra.mxu1 %v7189_v28  ;;  %v7242_v28 = vld [vmem:[#allocation6 + $0x8a8] ss:$20 sps:$4 sm:$0xff]  }
 0x29d   :  { %6343 = vmatpush3.bf16.msra.mxu0 %v7190_v30  ;;  %6322 = vmatprep.subr.bf16.mxu1 %v7191_v32  ;;  %v7243_v30 = vld [vmem:[#allocation6 + $0xb50] ss:$20 sps:$4 sm:$0xff]   ;;  %v7261_v32 = vld [vmem:[#allocation9 + $0x4] ss:$12 sps:$4 sm:$0xff]  }
 0x29e   :  { %6344 = vmatprep.subr.bf16.mxu0 %v7192_v33  ;;  %v7244_v33 = vld [vmem:[#allocation6 + $0xa10] ss:$20 sps:$4 sm:$0xff]  }
 0x2a0   :  { %6323 = vmatpush3.bf16.msra.mxu1 %v7193_v34  ;;  %v7245_v34 = vld [vmem:[#allocation6 + $0xb78] ss:$20 sps:$4 sm:$0xff]  }
 0x2a1   :  { %6345 = vmatpush3.bf16.msra.mxu0 %v7194_v47  ;;  %6324 = vmatprep.subr.bf16.mxu1 %v7195_v35  ;;  %v7259_v47 = vld [vmem:[#allocation9] ss:$12 sps:$4 sm:$0xff]   ;;  %v7264_v35 = vld [vmem:[#allocation9 + $0x1c] ss:$12 sps:$4 sm:$0xff]  }
 0x2a2   :  { %6346 = vmatprep.subr.bf16.mxu0 %v7196_v36  ;;  %v7246_v36 = vld [vmem:[#allocation6 + $0xa38] ss:$20 sps:$4 sm:$0xff]  }
 0x2a4   :  { %6325 = vmatpush3.bf16.msra.mxu1 %v7197_v11  ;;  %v7247_v11 = vld [vmem:[#allocation6 + $0xba0] ss:$20 sps:$4 sm:$0xff]  }
 0x2a5   :  { %6347 = vmatpush3.bf16.msra.mxu0 %v7198_v37  ;;  %6326 = vmatprep.subr.bf16.mxu1 %v7199_v39  ;;  %v7262_v37 = vld [vmem:[#allocation9 + $0x18] ss:$12 sps:$4 sm:$0xff]   ;;  %v7267_v39 = vld [vmem:[#allocation9 + $0x34] ss:$12 sps:$4 sm:$0xff]  }
 0x2a6   :  { %6348 = vmatprep.subr.bf16.mxu0 %v7200_v40  ;;  %v7248_v40 = vld [vmem:[#allocation6 + $0xa60] ss:$20 sps:$4 sm:$0xff]  }
 0x2a8   :  { %6327 = vmatpush3.bf16.msra.mxu1 %v7201_v41  ;;  %v7249_v41 = vld [vmem:[#allocation6 + $0xbc8] ss:$20 sps:$4 sm:$0xff]  }
 0x2a9   :  { %6349 = vmatpush3.bf16.msra.mxu0 %v7202_v43  ;;  %6328 = vmatprep.subr.bf16.mxu1 %v7203_v44  ;;  %v7265_v43 = vld [vmem:[#allocation9 + $0x30] ss:$12 sps:$4 sm:$0xff]  }
 0x2aa   :  { %6350 = vmatprep.subr.bf16.mxu0 %v7204_v45  ;;  %v7251_v44 = vld [vmem:[#allocation6 + $0xbf0] ss:$20 sps:$4 sm:$0xff]   ;;  %v7273_v45 = vld [vmem:[#allocation9 + $0x64] ss:$12 sps:$4 sm:$0xff]  }
 0x2ac   :  { %6329 = vmatpush3.bf16.msra.mxu1 %v7205_v29  ;;  %v7252_v29 = vld [vmem:[#allocation6 + $0xab0] ss:$20 sps:$4 sm:$0xff]  }
 0x2ad   :  { %6351 = vmatpush3.bf16.msra.mxu0 %v7206_v48  ;;  %6330 = vmatprep.subr.bf16.mxu1 %v7207_v49  ;;  %v7253_v48 = vld [vmem:[#allocation6 + $0xc18] ss:$20 sps:$4 sm:$0xff]   ;;  %v7271_v49 = vld [vmem:[#allocation9 + $0x60] ss:$12 sps:$4 sm:$0xff]  }
 0x2ae   :  { %6352 = vmatprep.subr.bf16.mxu0 %v7208_v50  ;;  %v7276_v50 = vld [vmem:[#allocation9 + $0x7c] ss:$12 sps:$4 sm:$0xff]  }
 0x2b0   :  { %6331 = vmatpush3.bf16.msra.mxu1 %v7209_v51  ;;  %v7254_v51 = vld [vmem:[#allocation6 + $0xad8] ss:$20 sps:$4 sm:$0xff]  }
 0x2b1   :  { %6353 = vmatpush3.bf16.msra.mxu0 %v7210_v52  ;;  %6360 = vmatprep.subr.bf16.mxu1 %v7211_v53  ;;  %v7255_v52 = vld [vmem:[#allocation6 + $0xc40] ss:$20 sps:$4 sm:$0xff]  }
 0x2b2   :  { %6382 = vmatprep.subr.bf16.mxu0 %v7212_v54  ;;  %v7274_v53 = vld [vmem:[#allocation9 + $0x78] ss:$12 sps:$4 sm:$0xff]   ;;  %v7279_v54 = vld [vmem:[#allocation9 + $0x94] ss:$12 sps:$4 sm:$0xff]  }
 0x2b3   :  { %3971 = vmatmul.mubr.bf16.vlgmr.msra.gmra.mrb[12].mxu1 %v7894_v46  ;;  %v7222_v46 = vld [vmem:[#allocation6 + $0x7e0] ss:$20 sps:$4 sm:$0xff]  }
 0x2b4   :  { %4012 = vmatmul.mubr.bf16.vlgmr.msra.gmra.mrb[16].mxu0 %v7907_v8  ;;  %6361 = vmatpush3.bf16.msra.mxu1 %v7213_v55  ;;  %v7224_v8 = vld [vmem:[#allocation6 + $0x948] ss:$20 sps:$4 sm:$0xff]   ;;  %v7256_v55 = vld [vmem:[#allocation6 + $0xb00] ss:$20 sps:$4 sm:$0xff]  }
 0x2b5   :  { %4052 = vmatprep.mubr.bf16.mxu1 %v7923_v59  ;;  %6383 = vmatpush3.bf16.msra.mxu0 %v7214_v57  ;;  %v7226_v59 = vld [vmem:[#allocation6 + $0x808] ss:$20 sps:$4 sm:$0xff]  }
 0x2b6   :  { %4093 = vmatprep.mubr.bf16.mxu0 %v7929_v31  ;;  %6362 = vmatprep.subr.bf16.mxu1 %v7215_v58  ;;  %v7229_v31 = vld [vmem:[#allocation6 + $0x5b0] ss:$20 sps:$4 sm:$0xff]   ;;  %v7257_v57 = vld [vmem:[#allocation6 + $0xc68] ss:$20 sps:$4 sm:$0xff]  }
 0x2b7   :  { %6384 = vmatprep.subr.bf16.mxu0 %v7216_v60  ;;  %v7277_v58 = vld [vmem:[#allocation9 + $0x90] ss:$12 sps:$4 sm:$0xff]   ;;  %v7282_v60 = vld [vmem:[#allocation9 + $0xac] ss:$12 sps:$4 sm:$0xff]  }
 0x2b8   :  { %6363 = vmatpush3.bf16.msra.mxu1 %v7217_v61  ;;  %v7258_v61 = vld [vmem:[#allocation6 + $0xb28] ss:$20 sps:$4 sm:$0xff]  }
 0x2b9   :  { %6385 = vmatpush3.bf16.msra.mxu0 %v7218_v62  ;;  %6364 = vmatprep.subr.bf16.mxu1 %v7219_v63  ;;  %v7286_v62 = vld [vmem:[#allocation9 + $0xc8] ss:$12 sps:$4 sm:$0xff]  }
 0x2ba   :  { %6386 = vmatprep.subr.bf16.mxu0 %v7220_v1  ;;  %v7280_v63 = vld [vmem:[#allocation9 + $0xa8] ss:$12 sps:$4 sm:$0xff]   ;;  %v7285_v1 = vld [vmem:[#allocation9 + $0xc4] ss:$12 sps:$4 sm:$0xff]  }
 0x2bc   :  { %6365 = vmatpush3.bf16.msra.mxu1 %v7221_v2  ;;  %v7287_v2 = vld [vmem:[#allocation9 + $0x8] ss:$12 sps:$4 sm:$0xff]  }
 0x2bd   :  { %6387 = vmatpush3.bf16.msra.mxu0 %v7222_v46  ;;  %6366 = vmatprep.subr.bf16.mxu1 %v7223_v3  ;;  %v7291_v46 = vld [vmem:[#allocation9 + $0xe0] ss:$12 sps:$4 sm:$0xff]  }
 0x2be   :  { %6388 = vmatprep.subr.bf16.mxu0 %v7224_v8  ;;  %v7283_v3 = vld [vmem:[#allocation9 + $0xc0] ss:$12 sps:$4 sm:$0xff]   ;;  %v7290_v8 = vld [vmem:[#allocation9 + $0xdc] ss:$12 sps:$4 sm:$0xff]  }
 0x2c0   :  { %6367 = vmatpush3.bf16.msra.mxu1 %v7225_v4  ;;  %v7292_v4 = vld [vmem:[#allocation9 + $0x20] ss:$12 sps:$4 sm:$0xff]  }
 0x2c1   :  { %6389 = vmatpush3.bf16.msra.mxu0 %v7226_v59  ;;  %6368 = vmatprep.subr.bf16.mxu1 %v7227_v5  ;;  %v7296_v59 = vld [vmem:[#allocation9 + $0xf8] ss:$12 sps:$4 sm:$0xff]  }
 0x2c2   :  { %6390 = vmatprep.subr.bf16.mxu0 %v7228_v6  ;;  %v7288_v5 = vld [vmem:[#allocation9 + $0xd8] ss:$12 sps:$4 sm:$0xff]   ;;  %v7295_v6 = vld [vmem:[#allocation9 + $0xf4] ss:$12 sps:$4 sm:$0xff]  }
 0x2c4   :  { %6369 = vmatpush3.bf16.msra.mxu1 %v7229_v31  ;;  %v7297_v31 = vld [vmem:[#allocation9 + $0x38] ss:$12 sps:$4 sm:$0xff]  }
 0x2c5   :  { %6391 = vmatpush3.bf16.msra.mxu0 %v7230_v7  ;;  %6370 = vmatprep.subr.bf16.mxu1 %v7231_v9  ;;  %v7301_v7 = vld [vmem:[#allocation9 + $0x110] ss:$12 sps:$4 sm:$0xff]  }
 0x2c6   :  { %6392 = vmatprep.subr.bf16.mxu0 %v7232_v13  ;;  %v7293_v9 = vld [vmem:[#allocation9 + $0xf0] ss:$12 sps:$4 sm:$0xff]   ;;  %v7300_v13 = vld [vmem:[#allocation9 + $0x10c] ss:$12 sps:$4 sm:$0xff]  }
 0x2c8   :  { %6371 = vmatpush3.bf16.msra.mxu1 %v7233_v14  ;;  %v7306_v14 = vld [vmem:[#allocation9 + $0x128] ss:$12 sps:$4 sm:$0xff]  }
 0x2c9   :  { %6393 = vmatpush3.bf16.msra.mxu0 %v7234_v15  ;;  %6372 = vmatprep.subr.bf16.mxu1 %v7235_v24  ;;  %v7298_v15 = vld [vmem:[#allocation9 + $0x108] ss:$12 sps:$4 sm:$0xff]   ;;  %v7305_v24 = vld [vmem:[#allocation9 + $0x124] ss:$12 sps:$4 sm:$0xff]  }
 0x2ca   :  { %6394 = vmatprep.subr.bf16.mxu0 %v7236_v16  ;;  %v7307_v16 = vld [vmem:[#allocation9 + $0x68] ss:$12 sps:$4 sm:$0xff]  }
 0x2cc   :  { %6373 = vmatpush3.bf16.msra.mxu1 %v7237_v17  ;;  %v7311_v17 = vld [vmem:[#allocation9 + $0x140] ss:$12 sps:$4 sm:$0xff]  }
 0x2cd   :  { %6395 = vmatpush3.bf16.msra.mxu0 %v7238_v19  ;;  %6374 = vmatprep.subr.bf16.mxu1 %v7239_v20  ;;  %v7303_v19 = vld [vmem:[#allocation9 + $0x120] ss:$12 sps:$4 sm:$0xff]   ;;  %v7310_v20 = vld [vmem:[#allocation9 + $0x13c] ss:$12 sps:$4 sm:$0xff]  }
 0x2ce   :  { %6396 = vmatprep.subr.bf16.mxu0 %v7240_v21  ;;  %v7312_v21 = vld [vmem:[#allocation9 + $0x80] ss:$12 sps:$4 sm:$0xff]  }
 0x2d0   :  { %6375 = vmatpush3.bf16.msra.mxu1 %v7241_v22  ;;  %v7316_v22 = vld [vmem:[#allocation9 + $0x158] ss:$12 sps:$4 sm:$0xff]  }
 0x2d1   :  { %6397 = vmatpush3.bf16.msra.mxu0 %v7242_v28  ;;  %6404 = vmatprep.subr.bf16.mxu1 %v7243_v30  ;;  %v7308_v28 = vld [vmem:[#allocation9 + $0x138] ss:$12 sps:$4 sm:$0xff]   ;;  %v7315_v30 = vld [vmem:[#allocation9 + $0x154] ss:$12 sps:$4 sm:$0xff]  }
 0x2d2   :  { %4975 = vmatprep.subr.bf16.mxu0 %v7261_v32  ;;  %v7317_v32 = vld [vmem:[#allocation9 + $0x98] ss:$12 sps:$4 sm:$0xff]  }
 0x2d3   :  { %4053 = vmatmul.mubr.bf16.vlgmr.msra.gmra.mrb[16].mxu1 %v7921_v56  ;;  %v7270_v56 = vld [vmem:[#allocation9 + $0x4c] ss:$12 sps:$4 sm:$0xff]  }
 0x2d4   :  { %4094 = vmatmul.mubr.bf16.vlgmr.msra.gmra.mrb[20].mxu0 %v7927_v27  ;;  %6405 = vmatpush3.bf16.msra.mxu1 %v7244_v33  ;;  %v7250_v27 = vld [vmem:[#allocation6 + $0xa88] ss:$20 sps:$4 sm:$0xff]   ;;  %v7321_v33 = vld [vmem:[#allocation9 + $0x170] ss:$12 sps:$4 sm:$0xff]  }
 0x2d5   :  { %4134 = vmatprep.mubr.bf16.mxu1 %v7935_v12  ;;  %6406 = vmatprep.subr.bf16.mxu1 %v7245_v34  ;;  %v7268_v12 = vld [vmem:[#allocation9 + $0x48] ss:$12 sps:$4 sm:$0xff]   ;;  %v7313_v34 = vld [vmem:[#allocation9 + $0x150] ss:$12 sps:$4 sm:$0xff]  }
 0x2d6   :  { %4976 = vmatpush1.bf16.msra.mxu0 %v7259_v47  ;;  %v7320_v47 = vld [vmem:[#allocation9 + $0x16c] ss:$12 sps:$4 sm:$0xff]  }
 0x2d7   :  { %4977 = vmatprep.subr.bf16.mxu0 %v7264_v35  ;;  %v7322_v35 = vld [vmem:[#allocation9 + $0xb0] ss:$12 sps:$4 sm:$0xff]  }
 0x2d8   :  { %6407 = vmatpush3.bf16.msra.mxu1 %v7246_v36  ;;  %v7326_v36 = vld [vmem:[#allocation9 + $0x248] ss:$12 sps:$4 sm:$0xff]  }
 0x2d9   :  { %6408 = vmatprep.subr.bf16.mxu1 %v7247_v11  ;;  %v7318_v11 = vld [vmem:[#allocation9 + $0x168] ss:$12 sps:$4 sm:$0xff]  }
 0x2da   :  { %4978 = vmatpush1.bf16.msra.mxu0 %v7262_v37  ;;  %v7325_v37 = vld [vmem:[#allocation9 + $0x184] ss:$12 sps:$4 sm:$0xff]  }
 0x2db   :  { %4979 = vmatprep.subr.bf16.mxu0 %v7267_v39  ;;  %v7961_v39 = vld [vmem:[#allocation7] sm:$0x1f] }
 0x2dc   :  { %6409 = vmatpush3.bf16.msra.mxu1 %v7248_v40  ;;  %v1406_v40 = vrot.slane %v7961_v39, %v7881_v25 }
 0x2dd   :  { %6410 = vmatprep.subr.bf16.mxu1 %v7249_v41  ;;  %v1414_v41 = vrot.slane %v7961_v39, %v7891_v38 }
 0x2de   :  { %4980 = vmatpush1.bf16.msra.mxu0 %v7265_v43  ;;  %v1410_v43 = vrot.slane %v7961_v39, %v7884_v26 }
 0x2df   :  { %4981 = vmatprep.subr.bf16.mxu0 %v7270_v56  ;;  %v1418_v56 = vrot.slane %v7961_v39, %v234_v42 }
 0x2e0   :  { %6411 = vmatpush3.bf16.msra.mxu1 %v7250_v27 }
 0x2e1   :  { %6412 = vmatprep.subr.bf16.mxu1 %v7251_v44 }
 0x2e2   :  { %4982 = vmatpush1.bf16.msra.mxu0 %v7268_v12 }
 0x2e3   :  { %4983 = vmatprep.subr.bf16.mxu0 %v7273_v45 }
 0x2e4   :  { %6413 = vmatpush3.bf16.msra.mxu1 %v7252_v29 }
 0x2e5   :  { %6414 = vmatprep.subr.bf16.mxu1 %v7253_v48 }
 0x2e6   :  { %4984 = vmatpush1.bf16.msra.mxu0 %v7271_v49 }
 0x2e7   :  { %4985 = vmatprep.subr.bf16.mxu0 %v7276_v50 }
 0x2e8   :  { %6415 = vmatpush3.bf16.msra.mxu1 %v7254_v51 }
 0x2e9   :  { %6416 = vmatprep.subr.bf16.mxu1 %v7255_v52 }
 0x2ea   :  { %4986 = vmatpush1.bf16.msra.mxu0 %v7274_v53 }
 0x2eb   :  { %4987 = vmatprep.subr.bf16.mxu0 %v7279_v54 }
 0x2ec   :  { %6417 = vmatpush3.bf16.msra.mxu1 %v7256_v55 }
 0x2ed   :  { %6418 = vmatprep.subr.bf16.mxu1 %v7257_v57 }
 0x2ee   :  { %4988 = vmatpush1.bf16.msra.mxu0 %v7277_v58 }
 0x2ef   :  { %4989 = vmatprep.subr.bf16.mxu0 %v7282_v60 }
 0x2f0   :  { %6419 = vmatpush3.bf16.msra.mxu1 %v7258_v61 }
 0x2f1   :  { %6426 = vmatprep.subr.bf16.mxu1 %v7286_v62 }
 0x2f2   :  { %4990 = vmatpush1.bf16.msra.mxu0 %v7280_v63 }
 0x2f3   :  { %4135 = vmatmul.mubr.bf16.vlgmr.msra.gmra.mrb[20].mxu1 %v7933_v10  ;;  %4991 = vmatprep.subr.bf16.mxu0 %v7285_v1  ;;  %v7302_v10 = vld [vmem:[#allocation9 + $0x50] ss:$12 sps:$4 sm:$0xff]  }
 0x2f4   :  { %6427 = vmatpush3.bf16.msra.mxu1 %v7287_v2 }
 0x2f5   :  { %6428 = vmatprep.subr.bf16.mxu1 %v7291_v46 }
 0x2f6   :  { %4992 = vmatpush1.bf16.msra.mxu0 %v7283_v3 }
 0x2f7   :  { %4993 = vmatprep.subr.bf16.mxu0 %v7290_v8 }
 0x2f8   :  { %6429 = vmatpush3.bf16.msra.mxu1 %v7292_v4 }
 0x2f9   :  { %6430 = vmatprep.subr.bf16.mxu1 %v7296_v59 }
 0x2fa   :  { %4994 = vmatpush1.bf16.msra.mxu0 %v7288_v5  ;;  %v7323_v5 = vld [vmem:[#allocation9 + $0x180] ss:$12 sps:$4 sm:$0xff]  }
 0x2fb   :  { %4995 = vmatprep.subr.bf16.mxu0 %v7295_v6  ;;  %v7327_v6 = vld [vmem:[#allocation9 + $0x188] ss:$12 sps:$4 sm:$0xff]  }
 0x2fc   :  { %6431 = vmatpush3.bf16.msra.mxu1 %v7297_v31 }
 0x2fd   :  { %6432 = vmatprep.subr.bf16.mxu1 %v7301_v7  ;;  %v7330_v7 = vld [vmem:[#allocation9 + $0x19c] ss:$12 sps:$4 sm:$0xff]  }
 0x2fe   :  { %4996 = vmatpush1.bf16.msra.mxu0 %v7293_v9  ;;  %v7331_v9 = vld [vmem:[#allocation9 + $0x260] ss:$12 sps:$4 sm:$0xff]  }
 0x2ff   :  { %4997 = vmatprep.subr.bf16.mxu0 %v7300_v13  ;;  %v7328_v13 = vld [vmem:[#allocation9 + $0x198] ss:$12 sps:$4 sm:$0xff]  }
 0x300   :  { %6433 = vmatpush3.bf16.msra.mxu1 %v7302_v10  ;;  %v7332_v10 = vld [vmem:[#allocation9 + $0x1a0] ss:$12 sps:$4 sm:$0xff]  }
 0x301   :  { %6434 = vmatprep.subr.bf16.mxu1 %v7306_v14  ;;  %v7335_v14 = vld [vmem:[#allocation9 + $0x1b4] ss:$12 sps:$4 sm:$0xff]  }
 0x302   :  { %4998 = vmatpush1.bf16.msra.mxu0 %v7298_v15  ;;  %v7336_v15 = vld [vmem:[#allocation9 + $0x278] ss:$12 sps:$4 sm:$0xff]  }
 0x303   :  { %4999 = vmatprep.subr.bf16.mxu0 %v7305_v24  ;;  %v7333_v24 = vld [vmem:[#allocation9 + $0x1b0] ss:$12 sps:$4 sm:$0xff]  }
 0x304   :  { %6435 = vmatpush3.bf16.msra.mxu1 %v7307_v16  ;;  %v7337_v16 = vld [vmem:[#allocation9 + $0x1b8] ss:$12 sps:$4 sm:$0xff]  }
 0x305   :  { %6436 = vmatprep.subr.bf16.mxu1 %v7311_v17  ;;  %v7340_v17 = vld [vmem:[#allocation9 + $0x1cc] ss:$12 sps:$4 sm:$0xff]  }
 0x306   :  { %5000 = vmatpush1.bf16.msra.mxu0 %v7303_v19  ;;  %v7341_v19 = vld [vmem:[#allocation9 + $0x290] ss:$12 sps:$4 sm:$0xff]  }
 0x307   :  { %5001 = vmatprep.subr.bf16.mxu0 %v7310_v20  ;;  %v7338_v20 = vld [vmem:[#allocation9 + $0x1c8] ss:$12 sps:$4 sm:$0xff]  }
 0x308   :  { %6437 = vmatpush3.bf16.msra.mxu1 %v7312_v21  ;;  %v7342_v21 = vld [vmem:[#allocation9 + $0x1d0] ss:$12 sps:$4 sm:$0xff]  }
 0x309   :  { %6438 = vmatprep.subr.bf16.mxu1 %v7316_v22  ;;  %v7345_v22 = vld [vmem:[#allocation9 + $0x1e4] ss:$12 sps:$4 sm:$0xff]  }
 0x30a   :  { %5002 = vmatpush1.bf16.msra.mxu0 %v7308_v28  ;;  %v7346_v28 = vld [vmem:[#allocation9 + $0x2a8] ss:$12 sps:$4 sm:$0xff]  }
 0x30b   :  { %5003 = vmatprep.subr.bf16.mxu0 %v7315_v30  ;;  %v7343_v30 = vld [vmem:[#allocation9 + $0x1e0] ss:$12 sps:$4 sm:$0xff]  }
 0x30c   :  { %6439 = vmatpush3.bf16.msra.mxu1 %v7317_v32  ;;  %v7347_v32 = vld [vmem:[#allocation9 + $0x1e8] ss:$12 sps:$4 sm:$0xff]  }
 0x30d   :  { %6440 = vmatprep.subr.bf16.mxu1 %v7321_v33  ;;  %v7350_v33 = vld [vmem:[#allocation9 + $0x1fc] ss:$12 sps:$4 sm:$0xff]  }
 0x30e   :  { %5004 = vmatpush1.bf16.msra.mxu0 %v7313_v34  ;;  %v7351_v34 = vld [vmem:[#allocation9 + $0x2c0] ss:$12 sps:$4 sm:$0xff]  }
 0x30f   :  { %5005 = vmatprep.subr.bf16.mxu0 %v7320_v47  ;;  %v7348_v47 = vld [vmem:[#allocation9 + $0x1f8] ss:$12 sps:$4 sm:$0xff]  }
 0x310   :  { %6441 = vmatpush3.bf16.msra.mxu1 %v7322_v35  ;;  %v7352_v35 = vld [vmem:[#allocation9 + $0x200] ss:$12 sps:$4 sm:$0xff]  }
 0x311   :  { %6448 = vmatprep.subr.bf16.mxu1 %v7326_v36  ;;  %v7355_v36 = vld [vmem:[#allocation9 + $0x214] ss:$12 sps:$4 sm:$0xff]  }
 0x312   :  { %5006 = vmatpush1.bf16.msra.mxu0 %v7318_v11  ;;  %v7356_v11 = vld [vmem:[#allocation9 + $0x2d8] ss:$12 sps:$4 sm:$0xff]  }
 0x313   :  { %5018 = vmatprep.subr.bf16.mxu0 %v7325_v37 }
 0x366   :  { %v3714_v27 = vpop.f32.mrb[8].mxu1 }
 0x367   :  { %v6499_v44 = vadd.f32 %v3714_v27, %v1406_v40  ;;  %v3929_v12 = vpop.f32.mrb[12].mxu0  ;;  %v3716_v45 = vpop.f32.mrb[9].mxu1 }
 0x368   :  { %v6503_v29 = vadd.f32 %v3929_v12, %v1414_v41  ;;  %v6500_v48 = vadd.f32 %v3716_v45, %v1410_v43  ;;  %v3931_v49 = vpop.f32.mrb[13].mxu0  ;;  %v3718_v50 = vpop.f32.mrb[10].mxu1  ;;  %v7361_v12 = vld [vmem:[#allocation9 + $0x2f0] ss:$12 sps:$4 sm:$0xff]  }
 0x369   :  { %v6504_v51 = vadd.f32 %v3931_v49, %v1418_v56  ;;  %v6501_v52 = vadd.f32 %v3718_v50, %v1406_v40  ;;  %v3933_v53 = vpop.f32.mrb[14].mxu0  ;;  %v3720_v54 = vpop.f32.mrb[11].mxu1  ;;  %v4143_v60 = vmax.f32 %v6499_v44, 0.0  ;;  %v1422_v40 = vrot.slane %v7961_v39, %v238_v18  ;;  %v7360_v44 = vld [vmem:[#allocation9 + $0x22c] ss:$12 sps:$4 sm:$0xff]  }
 0x36a   :  { %v6505_v55 = vadd.f32 %v3933_v53, %v1414_v41  ;;  %v6502_v57 = vadd.f32 %v3720_v54, %v1410_v43  ;;  %v3935_v58 = vpop.f32.mrb[15].mxu0  ;;  %v4145_v63 = vmax.f32 %v6503_v29, 0.0  ;;  %v4144_v42 = vmax.f32 %v6500_v48, 0.0  ;;  %v7353_v41 = vld [vmem:[#allocation9 + $0x210] ss:$12 sps:$4 sm:$0xff]  }
 0x36b   :  { %v4148_v61 = vmax.f32 %v6501_v52, 0.0  ;;  %v6506_v62 = vadd.f32 %v3935_v58, %v1418_v56  ;;  %v4146_v46 = vmax.f32 %v6504_v51, 0.0  ;;  %v7357_v43 = vld [vmem:[#allocation9 + $0x218] ss:$12 sps:$4 sm:$0xff]   ;;  %v7362_v18 = vld [vmem:[#allocation9 + $0x230] ss:$12 sps:$4 sm:$0xff]  }
 0x36c   :  { %v4150_v1 = vmax.f32 %v6505_v55, 0.0  ;;  %v4149_v2 = vmax.f32 %v6502_v57, 0.0  ;;  %v7365_v55 = vld [vmem:[#allocation9 + $0x244] ss:$12 sps:$4 sm:$0xff]  }
 0x36d   :  { %v4153_v3 = vpack.c.bf16 %v4148_v61, %v4143_v60  ;;  %v4151_v8 = vmax.f32 %v6506_v62, 0.0  ;;  %v7363_v61 = vld [vmem:[#allocation9 + $0x240] ss:$12 sps:$4 sm:$0xff]   ;;  %v7390_v62 = vld [vmem:[#allocation9 + $0x308] ss:$12 sps:$4 sm:$0xff]  }
 0x36e   :  { %v7972_v4 = vpack.c.bf16 %v4150_v1, %v4145_v63  ;;  %v4154_v59 = vpack.c.bf16 %v4149_v2, %v4144_v42  ;;  %v7368_v63 = vld [vmem:[#allocation9 + $0x25c] ss:$12 sps:$4 sm:$0xff]   ;;  %v7706_v42 = vmov 0.0   ;;  %v7366_v1 = vld [vmem:[#allocation9 + $0x258] ss:$12 sps:$4 sm:$0xff]  }
 0x36f   :  { %v4156_v31 = vpack.c.bf16 %v4151_v8, %v4146_v46  ;;  %v7394_v2 = vld [vmem:[#allocation9 + $0x320] ss:$12 sps:$4 sm:$0xff]   ;;  %v7398_v8 = vld [vmem:[#allocation9 + $0x338] ss:$12 sps:$4 sm:$0xff]  }
 0x370   :  { %5007 = vmatprep.mubr.bf16.mxu0 %v4154_v59  ;;  %5136 = vmatprep.mubr.bf16.mxu1 %v4154_v59  ;;  %v7371_v46 = vld [vmem:[#allocation9 + $0x274] ss:$12 sps:$4 sm:$0xff]   ;;  %v7374_v59 = vld [vmem:[#allocation9 + $0x28c] ss:$12 sps:$4 sm:$0xff]  }
 0x371   :  { %5008 = vmatmul.mubr.bf16.vlgmr.msra.gmra.mrb[24].mxu0 %v4153_v3  ;;  %5137 = vmatmul.mubr.bf16.vlgmr.msra.gmra.mrb[24].mxu1 %v4153_v3  ;;  %v7369_v3 = vld [vmem:[#allocation9 + $0x270] ss:$12 sps:$4 sm:$0xff]  }
 0x372   :  { %5019 = vmatpush1.bf16.msra.mxu0 %v7323_v5  ;;  %6449 = vmatpush3.bf16.msra.mxu1 %v7327_v6  ;;  %v7372_v5 = vld [vmem:[#allocation9 + $0x288] ss:$12 sps:$4 sm:$0xff]   ;;  %v7402_v6 = vld [vmem:[#allocation9 + $0x350] ss:$12 sps:$4 sm:$0xff]  }
 0x373   :  { %5050 = vmatprep.mubr.bf16.mxu0 %v4156_v31  ;;  %5177 = vmatprep.mubr.bf16.mxu1 %v4156_v31  ;;  %v7377_v31 = vld [vmem:[#allocation9 + $0x2a4] ss:$12 sps:$4 sm:$0xff]  }
 0x374   :  { %5020 = vmatprep.subr.bf16.mxu0 %v7330_v7  ;;  %6450 = vmatprep.subr.bf16.mxu1 %v7331_v9  ;;  %v7375_v7 = vld [vmem:[#allocation9 + $0x2a0] ss:$12 sps:$4 sm:$0xff]   ;;  %v7406_v9 = vld [vmem:[#allocation9 + $0x368] ss:$12 sps:$4 sm:$0xff]  }
 0x376   :  { %5021 = vmatpush1.bf16.msra.mxu0 %v7328_v13  ;;  %6451 = vmatpush3.bf16.msra.mxu1 %v7332_v10  ;;  %v7380_v13 = vld [vmem:[#allocation9 + $0x2bc] ss:$12 sps:$4 sm:$0xff]   ;;  %v7378_v10 = vld [vmem:[#allocation9 + $0x2b8] ss:$12 sps:$4 sm:$0xff]  }
 0x377   :  { %5022 = vmatprep.subr.bf16.mxu0 %v7335_v14  ;;  %6452 = vmatprep.subr.bf16.mxu1 %v7336_v15  ;;  %v7410_v14 = vld [vmem:[#allocation9 + $0x380] ss:$12 sps:$4 sm:$0xff]  }
 0x378   :  { %v7383_v15 = vld [vmem:[#allocation9 + $0x2d4] ss:$12 sps:$4 sm:$0xff]  }
 0x37a   :  { %5023 = vmatpush1.bf16.msra.mxu0 %v7333_v24  ;;  %6453 = vmatpush3.bf16.msra.mxu1 %v7337_v16  ;;  %v7381_v16 = vld [vmem:[#allocation9 + $0x2d0] ss:$12 sps:$4 sm:$0xff]  }
 0x37b   :  { %5024 = vmatprep.subr.bf16.mxu0 %v7340_v17  ;;  %6454 = vmatprep.subr.bf16.mxu1 %v7341_v19  ;;  %v7414_v17 = vld [vmem:[#allocation9 + $0x398] ss:$12 sps:$4 sm:$0xff]  }
 0x37e   :  { %5025 = vmatpush1.bf16.msra.mxu0 %v7338_v20  ;;  %6455 = vmatpush3.bf16.msra.mxu1 %v7342_v21  ;;  %v7386_v21 = vld [vmem:[#allocation9 + $0x2ec] ss:$12 sps:$4 sm:$0xff]  }
 0x37f   :  { %5026 = vmatprep.subr.bf16.mxu0 %v7345_v22  ;;  %6456 = vmatprep.subr.bf16.mxu1 %v7346_v28 }
 0x382   :  { %5027 = vmatpush1.bf16.msra.mxu0 %v7343_v30  ;;  %6457 = vmatpush3.bf16.msra.mxu1 %v7347_v32 }
 0x383   :  { %5028 = vmatprep.subr.bf16.mxu0 %v7350_v33  ;;  %6458 = vmatprep.subr.bf16.mxu1 %v7351_v34 }
 0x386   :  { %5029 = vmatpush1.bf16.msra.mxu0 %v7348_v47  ;;  %6459 = vmatpush3.bf16.msra.mxu1 %v7352_v35  ;;  %v6332_v37 = vpop.f32.mrb[12].mxu1 }
 0x387   :  { %v6354_v56 = vpop.f32.mrb[16].mxu0  ;;  %v6333_v27 = vpop.f32.mrb[13].mxu1  ;;  %5030 = vmatprep.subr.bf16.mxu0 %v7355_v36  ;;  %6460 = vmatprep.subr.bf16.mxu1 %v7356_v11  ;;  %v7384_v11 = vld [vmem:[#allocation9 + $0x2e8] ss:$12 sps:$4 sm:$0xff]  }
 0x388   :  { %v6334_v45 = vadd.f32 %v6333_v27, %v6332_v37  ;;  %v6355_v29 = vpop.f32.mrb[17].mxu0  ;;  %v6335_v48 = vpop.f32.mrb[14].mxu1  ;;  %v7418_v37 = vld [vmem:[#allocation9 + $0x3b0] ss:$12 sps:$4 sm:$0xff]  }
 0x389   :  { %v6356_v49 = vadd.f32 %v6355_v29, %v6354_v56  ;;  %v6357_v50 = vpop.f32.mrb[18].mxu0  ;;  %v6336_v51 = vpop.f32.mrb[15].mxu1  ;;  %v7397_v29 = vld [vmem:[#allocation9 + $0x334] ss:$12 sps:$4 sm:$0xff]  }
 0x38a   :  { %v3973_v52 = vadd.f32 %v6334_v45, %v1422_v40  ;;  %v6337_v53 = vadd.f32 %v6336_v51, %v6335_v48  ;;  %v6358_v54 = vpop.f32.mrb[19].mxu0  ;;  %5031 = vmatpush1.bf16.msra.mxu0 %v7353_v41  ;;  %6461 = vmatpush3.bf16.msra.mxu1 %v7357_v43  ;;  %v7389_v41 = vld [vmem:[#allocation9 + $0x304] ss:$12 sps:$4 sm:$0xff]  }
 0x38b   :  { %v6359_v39 = vadd.f32 %v6358_v54, %v6357_v50  ;;  %5032 = vmatprep.subr.bf16.mxu0 %v7360_v44  ;;  %6462 = vmatprep.subr.bf16.mxu1 %v7361_v12  ;;  %v7387_v44 = vld [vmem:[#allocation9 + $0x300] ss:$12 sps:$4 sm:$0xff]   ;;  %v7393_v12 = vld [vmem:[#allocation9 + $0x31c] ss:$12 sps:$4 sm:$0xff]   ;;  %v7391_v45 = vld [vmem:[#allocation9 + $0x318] ss:$12 sps:$4 sm:$0xff]  }
 0x38c   :  { %v7977_v57 = vadd.f32 %v6356_v49, %v3973_v52  ;;  %v3976_v58 = vadd.f32 %v6337_v53, %v1422_v40  ;;  %v7395_v48 = vld [vmem:[#allocation9 + $0x330] ss:$12 sps:$4 sm:$0xff]   ;;  %v7401_v49 = vld [vmem:[#allocation9 + $0x34c] ss:$12 sps:$4 sm:$0xff]   ;;  %v7399_v50 = vld [vmem:[#allocation9 + $0x348] ss:$12 sps:$4 sm:$0xff]  }
 0x38d   :  { %v7405_v51 = vld [vmem:[#allocation9 + $0x364] ss:$12 sps:$4 sm:$0xff]   ;;  %v7403_v52 = vld [vmem:[#allocation9 + $0x360] ss:$12 sps:$4 sm:$0xff]   ;;  %v7409_v53 = vld [vmem:[#allocation9 + $0x37c] ss:$12 sps:$4 sm:$0xff]  }
 0x38e   :  { %v7979_v60 = vadd.f32 %v6359_v39, %v3976_v58  ;;  %5033 = vmatpush1.bf16.msra.mxu0 %v7358_v23  ;;  %6463 = vmatpush3.bf16.msra.mxu1 %v7362_v18  ;;  %v7413_v54 = vld [vmem:[#allocation9 + $0x394] ss:$12 sps:$4 sm:$0xff]   ;;  %v7411_v18 = vld [vmem:[#allocation9 + $0x390] ss:$12 sps:$4 sm:$0xff]  }
 0x38f   :  { %5034 = vmatprep.subr.bf16.mxu0 %v7365_v55  ;;  %6479 = vmatprep.subr.bf16.mxu1 %v7706_v42  ;;  %v7417_v55 = vld [vmem:[#allocation9 + $0x3ac] ss:$12 sps:$4 sm:$0xff]  }
 0x391   :  { %5178 = vmatmul.mubr.bf16.vlgmr.msra.gmra.mrb[28].mxu1 %v7972_v4 }
 0x392   :  { %5035 = vmatpush1.bf16.msra.mxu0 %v7363_v61  ;;  %6480 = vmatpush3.bf16.msra.mxu1 %v7390_v62 }
 0x393   :  { %5036 = vmatprep.subr.bf16.mxu0 %v7368_v63  ;;  %6481 = vmatprep.subr.bf16.mxu1 %v7706_v42  ;;  %v7415_v63 = vld [vmem:[#allocation9 + $0x3a8] ss:$12 sps:$4 sm:$0xff]  }
 0x394   :  { %6495 = vmatprep.mubr.msk.bf16.mxu1 %vm7707_vm0, %v7706_v42 }
 0x396   :  { %5037 = vmatpush1.bf16.msra.mxu0 %v7366_v1  ;;  %6482 = vmatpush3.bf16.msra.mxu1 %v7394_v2 }
 0x397   :  { %5038 = vmatprep.subr.bf16.mxu0 %v7371_v46  ;;  %6483 = vmatprep.subr.bf16.mxu1 %v7706_v42 }
 0x39a   :  { %5039 = vmatpush1.bf16.msra.mxu0 %v7369_v3  ;;  %6484 = vmatpush3.bf16.msra.mxu1 %v7398_v8  ;;  %v7419_v3 = vld [vmem:[#allocation12] ss:$8 sps:$4 sm:$0xff]   ;;  %v7421_v8 = vld [vmem:[#allocation12 + $0x4] ss:$8 sps:$4 sm:$0xff]  }
 0x39b   :  { %5040 = vmatprep.subr.bf16.mxu0 %v7374_v59  ;;  %6485 = vmatprep.subr.bf16.mxu1 %v7706_v42  ;;  %v7424_v59 = vld [vmem:[#allocation12 + $0x14] ss:$8 sps:$4 sm:$0xff]  }
 0x39e   :  { %5041 = vmatpush1.bf16.msra.mxu0 %v7372_v5  ;;  %6486 = vmatpush3.bf16.msra.mxu1 %v7402_v6  ;;  %v7422_v5 = vld [vmem:[#allocation12 + $0x10] ss:$8 sps:$4 sm:$0xff]   ;;  %v7427_v6 = vld [vmem:[#allocation12 + $0x24] ss:$8 sps:$4 sm:$0xff]  }
 0x39f   :  { %5042 = vmatprep.subr.bf16.mxu0 %v7377_v31  ;;  %6487 = vmatprep.subr.bf16.mxu1 %v7706_v42  ;;  %v7425_v31 = vld [vmem:[#allocation12 + $0x20] ss:$8 sps:$4 sm:$0xff]  }
 0x3a2   :  { %5043 = vmatpush1.bf16.msra.mxu0 %v7375_v7  ;;  %6488 = vmatpush3.bf16.msra.mxu1 %v7406_v9  ;;  %v7430_v7 = vld [vmem:[#allocation12 + $0x34] ss:$8 sps:$4 sm:$0xff]   ;;  %v7428_v9 = vld [vmem:[#allocation12 + $0x30] ss:$8 sps:$4 sm:$0xff]  }
 0x3a3   :  { %5044 = vmatprep.subr.bf16.mxu0 %v7380_v13  ;;  %6489 = vmatprep.subr.bf16.mxu1 %v7706_v42  ;;  %v7433_v13 = vld [vmem:[#allocation12 + $0x44] ss:$8 sps:$4 sm:$0xff]  }
 0x3a6   :  { %5045 = vmatpush1.bf16.msra.mxu0 %v7378_v10  ;;  %v6376_v24 = vpop.f32.mrb[16].mxu1  ;;  %6490 = vmatpush3.bf16.msra.mxu1 %v7410_v14  ;;  %v7431_v10 = vld [vmem:[#allocation12 + $0x40] ss:$8 sps:$4 sm:$0xff]   ;;  %v7436_v14 = vld [vmem:[#allocation12 + $0x54] ss:$8 sps:$4 sm:$0xff]  }
 0x3a7   :  { %v6398_v19 = vpop.f32.mrb[20].mxu0  ;;  %v6377_v20 = vpop.f32.mrb[17].mxu1  ;;  %5046 = vmatprep.subr.bf16.mxu0 %v7383_v15  ;;  %6491 = vmatprep.subr.bf16.mxu1 %v7706_v42  ;;  %v7434_v15 = vld [vmem:[#allocation12 + $0x50] ss:$8 sps:$4 sm:$0xff]  }
 0x3a8   :  { %v6378_v22 = vadd.f32 %v6377_v20, %v6376_v24  ;;  %v6399_v28 = vpop.f32.mrb[21].mxu0  ;;  %v6379_v30 = vpop.f32.mrb[18].mxu1  ;;  %v7439_v24 = vld [vmem:[#allocation12 + $0x64] ss:$8 sps:$4 sm:$0xff]  }
 0x3a9   :  { %v6400_v32 = vadd.f32 %v6399_v28, %v6398_v19  ;;  %v6401_v33 = vpop.f32.mrb[22].mxu0  ;;  %v6380_v34 = vpop.f32.mrb[19].mxu1  ;;  %v7440_v19 = vld [vmem:[#allocation12 + $0x70] ss:$8 sps:$4 sm:$0xff]   ;;  %v7445_v20 = vld [vmem:[#allocation12 + $0x84] ss:$8 sps:$4 sm:$0xff]  }
 0x3aa   :  { %v4055_v47 = vadd.f32 %v6378_v22, %v7977_v57  ;;  %v6381_v35 = vadd.f32 %v6380_v34, %v6379_v30  ;;  %v6402_v36 = vpop.f32.mrb[23].mxu0  ;;  %5047 = vmatpush1.bf16.msra.mxu0 %v7381_v16  ;;  %6492 = vmatpush3.bf16.msra.mxu1 %v7414_v17  ;;  %v7437_v16 = vld [vmem:[#allocation12 + $0x60] ss:$8 sps:$4 sm:$0xff]   ;;  %v7442_v17 = vld [vmem:[#allocation12 + $0x74] ss:$8 sps:$4 sm:$0xff]  }
 0x3ab   :  { %v6403_v40 = vadd.f32 %v6402_v36, %v6401_v33  ;;  %5048 = vmatprep.subr.bf16.mxu0 %v7386_v21  ;;  %6493 = vmatprep.subr.bf16.mxu1 %v7706_v42  ;;  %v7443_v21 = vld [vmem:[#allocation12 + $0x80] ss:$8 sps:$4 sm:$0xff]   ;;  %v7448_v22 = vld [vmem:[#allocation12 + $0x94] ss:$8 sps:$4 sm:$0xff]   ;;  %v7446_v28 = vld [vmem:[#allocation12 + $0x90] ss:$8 sps:$4 sm:$0xff]  }
 0x3ac   :  { %v4096_v43 = vadd.f32 %v6400_v32, %v4055_v47  ;;  %v4058_v56 = vadd.f32 %v6381_v35, %v7979_v60  ;;  %v7451_v30 = vld [vmem:[#allocation12 + $0xa4] ss:$8 sps:$4 sm:$0xff]   ;;  %v7449_v32 = vld [vmem:[#allocation12 + $0xa0] ss:$8 sps:$4 sm:$0xff]   ;;  %v7454_v33 = vld [vmem:[#allocation12 + $0xb4] ss:$8 sps:$4 sm:$0xff]  }
 0x3ad   :  { %v7452_v34 = vld [vmem:[#allocation12 + $0xb0] ss:$8 sps:$4 sm:$0xff]   ;;  %v7457_v47 = vld [vmem:[#allocation12 + $0xc4] ss:$8 sps:$4 sm:$0xff]   ;;  %v7455_v35 = vld [vmem:[#allocation12 + $0xc0] ss:$8 sps:$4 sm:$0xff]  }
 0x3ae   :  { %v4099_v27 = vadd.f32 %v6403_v40, %v4058_v56  ;;  %5049 = vmatpush1.bf16.msra.mxu0 %v7384_v11  ;;  %6494 = vmatpush3.bf16.msra.mxu1 %v7418_v37  ;;  %v7460_v36 = vld [vmem:[#allocation12 + $0xd4] ss:$8 sps:$4 sm:$0xff]   ;;  %v7458_v11 = vld [vmem:[#allocation12 + $0xd0] ss:$8 sps:$4 sm:$0xff]   ;;  %v7463_v37 = vld [vmem:[#allocation12 + $0xe4] ss:$8 sps:$4 sm:$0xff]  }
 0x3af   :  { %5061 = vmatprep.subr.bf16.mxu0 %v7389_v41  ;;  %5536 = vmatprep.subr.bf16.mxu1 %v7421_v8  ;;  %v7461_v40 = vld [vmem:[#allocation12 + $0xe0] ss:$8 sps:$4 sm:$0xff]   ;;  %v7466_v41 = vld [vmem:[#allocation12 + $0xf4] ss:$8 sps:$4 sm:$0xff]   ;;  %v7469_v56 = vld [vmem:[#allocation12 + $0x104] ss:$8 sps:$4 sm:$0xff]  }
 0x3b1   :  { %5051 = vmatmul.mubr.bf16.vlgmr.msra.gmra.mrb[24].mxu0 %v7972_v4  ;;  %v7407_v4 = vld [vmem:[#allocation9 + $0x378] ss:$12 sps:$4 sm:$0xff]  }
 0x3b2   :  { %5062 = vmatpush1.bf16.msra.mxu0 %v7387_v44  ;;  %5093 = vmatprep.mubr.bf16.mxu0 %v7705_v0 }
 0x3b3   :  { %5063 = vmatprep.subr.bf16.mxu0 %v7393_v12 }
 0x3b6   :  { %5064 = vmatpush1.bf16.msra.mxu0 %v7391_v45 }
 0x3b7   :  { %5065 = vmatprep.subr.bf16.mxu0 %v7397_v29 }
 0x3ba   :  { %5066 = vmatpush1.bf16.msra.mxu0 %v7395_v48 }
 0x3bb   :  { %5067 = vmatprep.subr.bf16.mxu0 %v7401_v49  ;;  %v4318_v49 = vld [vmem:[#allocation10] sm:$0x7] }
 0x3be   :  { %5068 = vmatpush1.bf16.msra.mxu0 %v7399_v50  ;;  %v4331_v50 = vrot.slane %v4318_v49, %v7891_v38 }
 0x3bf   :  { %5069 = vmatprep.subr.bf16.mxu0 %v7405_v51 }
 0x3c2   :  { %5070 = vmatpush1.bf16.msra.mxu0 %v7403_v52 }
 0x3c3   :  { %5071 = vmatprep.subr.bf16.mxu0 %v7409_v53 }
 0x3c6   :  { %v6420_v23 = vpop.f32.mrb[20].mxu1  ;;  %5072 = vmatpush1.bf16.msra.mxu0 %v7407_v4 }
 0x3c7   :  { %v6421_v39 = vpop.f32.mrb[21].mxu1  ;;  %5073 = vmatprep.subr.bf16.mxu0 %v7413_v54 }
 0x3c8   :  { %v6422_v57 = vadd.f32 %v6421_v39, %v6420_v23  ;;  %v6423_v58 = vpop.f32.mrb[22].mxu1 }
 0x3c9   :  { %v6424_v60 = vpop.f32.mrb[23].mxu1 }
 0x3ca   :  { %v4137_v61 = vadd.f32 %v6422_v57, %v4096_v43  ;;  %v6425_v62 = vadd.f32 %v6424_v60, %v6423_v58  ;;  %5074 = vmatpush1.bf16.msra.mxu0 %v7411_v18  ;;  %v7464_v43 = vld [vmem:[#allocation12 + $0xf0] ss:$8 sps:$4 sm:$0xff]   ;;  %v4323_v58 = vrot.slane %v4318_v49, %v7881_v25  ;;  %v4327_v60 = vrot.slane %v4318_v49, %v7884_v26 }
 0x3cb   :  { %5075 = vmatprep.subr.bf16.mxu0 %v7417_v55 }
 0x3cc   :  { %v4140_v42 = vadd.f32 %v6425_v62, %v4099_v27  ;;  %v4147_v1 = vmax.f32 %v4137_v61, 0.0 }
 0x3ce   :  { %v4152_v2 = vmax.f32 %v4140_v42, 0.0  ;;  %5076 = vmatpush1.bf16.msra.mxu0 %v7415_v63 }
 0x3d0   :  { %v4157_v46 = vpack.c.bf16 %v4152_v2, %v4147_v1 }
 0x3d2   :  { %5094 = vmatmul.mubr.bf16.vlgmr.msra.gmra.mrb[24].mxu0 %v4157_v46  ;;  %6496 = vmatmul.mubr.bf16.vlgmr.msra.gmra.mrb[32].mxu1 %v4157_v46 }
 0x3d3   :  { %5537 = vmatpush1.bf16.msra.mxu1 %v7419_v3 }
 0x3d4   :  { %5538 = vmatprep.subr.bf16.mxu1 %v7424_v59 }
 0x3d7   :  { %5539 = vmatpush1.bf16.msra.mxu1 %v7422_v5 }
 0x3d8   :  { %5540 = vmatprep.subr.bf16.mxu1 %v7427_v6 }
 0x3db   :  { %5541 = vmatpush1.bf16.msra.mxu1 %v7425_v31 }
 0x3dc   :  { %5542 = vmatprep.subr.bf16.mxu1 %v7430_v7 }
 0x3df   :  { %5543 = vmatpush1.bf16.msra.mxu1 %v7428_v9 }
 0x3e0   :  { %5544 = vmatprep.subr.bf16.mxu1 %v7433_v13 }
 0x3e3   :  { %5545 = vmatpush1.bf16.msra.mxu1 %v7431_v10 }
 0x3e4   :  { %5546 = vmatprep.subr.bf16.mxu1 %v7436_v14 }
 0x3e7   :  { %5547 = vmatpush1.bf16.msra.mxu1 %v7434_v15 }
 0x3e8   :  { %5548 = vmatprep.subr.bf16.mxu1 %v7439_v24 }
 0x3eb   :  { %5549 = vmatpush1.bf16.msra.mxu1 %v7437_v16 }
 0x3ec   :  { %5550 = vmatprep.subr.bf16.mxu1 %v7442_v17 }
 0x3ef   :  { %5551 = vmatpush1.bf16.msra.mxu1 %v7440_v19  ;;  %v7467_v19 = vld [vmem:[#allocation12 + $0x100] ss:$8 sps:$4 sm:$0xff]  }
 0x3f0   :  { %5552 = vmatprep.subr.bf16.mxu1 %v7445_v20  ;;  %v7472_v20 = vld [vmem:[#allocation12 + $0x114] ss:$8 sps:$4 sm:$0xff]  }
 0x3f3   :  { %5553 = vmatpush1.bf16.msra.mxu1 %v7443_v21  ;;  %v7470_v21 = vld [vmem:[#allocation12 + $0x110] ss:$8 sps:$4 sm:$0xff]  }
 0x3f4   :  { %5554 = vmatprep.subr.bf16.mxu1 %v7448_v22  ;;  %v7475_v22 = vld [vmem:[#allocation12 + $0x124] ss:$8 sps:$4 sm:$0xff]  }
 0x3f7   :  { %5555 = vmatpush1.bf16.msra.mxu1 %v7446_v28  ;;  %v7473_v28 = vld [vmem:[#allocation12 + $0x120] ss:$8 sps:$4 sm:$0xff]  }
 0x3f8   :  { %5556 = vmatprep.subr.bf16.mxu1 %v7451_v30  ;;  %v7478_v30 = vld [vmem:[#allocation12 + $0x134] ss:$8 sps:$4 sm:$0xff]  }
 0x3fb   :  { %5557 = vmatpush1.bf16.msra.mxu1 %v7449_v32  ;;  %v7476_v32 = vld [vmem:[#allocation12 + $0x130] ss:$8 sps:$4 sm:$0xff]  }
 0x3fc   :  { %5558 = vmatprep.subr.bf16.mxu1 %v7454_v33  ;;  %v7481_v33 = vld [vmem:[#allocation12 + $0x144] ss:$8 sps:$4 sm:$0xff]  }
 0x3ff   :  { %5559 = vmatpush1.bf16.msra.mxu1 %v7452_v34  ;;  %v7479_v34 = vld [vmem:[#allocation12 + $0x140] ss:$8 sps:$4 sm:$0xff]  }
 0x400   :  { %5560 = vmatprep.subr.bf16.mxu1 %v7457_v47  ;;  %v7484_v47 = vld [vmem:[#allocation12 + $0x154] ss:$8 sps:$4 sm:$0xff]  }
 0x403   :  { %5561 = vmatpush1.bf16.msra.mxu1 %v7455_v35  ;;  %v7482_v35 = vld [vmem:[#allocation12 + $0x150] ss:$8 sps:$4 sm:$0xff]  }
 0x404   :  { %5562 = vmatprep.subr.bf16.mxu1 %v7460_v36  ;;  %v7487_v36 = vld [vmem:[#allocation12 + $0x164] ss:$8 sps:$4 sm:$0xff]  }
 0x407   :  { %5563 = vmatpush1.bf16.msra.mxu1 %v7458_v11  ;;  %v7490_v11 = vld [vmem:[#allocation12 + $0x174] ss:$8 sps:$4 sm:$0xff]  }
 0x408   :  { %5564 = vmatprep.subr.bf16.mxu1 %v7463_v37  ;;  %v7488_v37 = vld [vmem:[#allocation12 + $0x170] ss:$8 sps:$4 sm:$0xff]  }
 0x40b   :  { %5565 = vmatpush1.bf16.msra.mxu1 %v7461_v40  ;;  %v5284_v40 = vld [vmem:[#allocation13] sm:$0x3] }
 0x40c   :  { %5566 = vmatprep.subr.bf16.mxu1 %v7466_v41  ;;  %v5289_v41 = vrot.slane %v5284_v40, %v7881_v25 }
 0x40f   :  { %5567 = vmatpush1.bf16.msra.mxu1 %v7464_v43  ;;  %v5293_v43 = vrot.slane %v5284_v40, %v7884_v26 }
 0x410   :  { %5579 = vmatprep.subr.bf16.mxu1 %v7469_v56 }
 0x444   :  { %v6442_v27 = vpop.f32.mrb[24].mxu1 }
 0x445   :  { %v6443_v44 = vpop.f32.mrb[25].mxu1 }
 0x446   :  { %v6444_v12 = vadd.f32 %v6443_v44, %v6442_v27  ;;  %v6445_v45 = vpop.f32.mrb[26].mxu1 }
 0x447   :  { %v6446_v29 = vpop.f32.mrb[27].mxu1 }
 0x448   :  { %v6447_v48 = vadd.f32 %v6446_v29, %v6445_v45  ;;  %v5139_v53 = vadd.f32 %v6444_v12, %v4331_v50 }
 0x44a   :  { %v5142_v18 = vadd.f32 %v6447_v48, %v4331_v50 }
 0x464   :  { %v6464_v51 = vpop.f32.mrb[28].mxu1 }
 0x465   :  { %v6465_v52 = vpop.f32.mrb[29].mxu1 }
 0x466   :  { %v6466_v4 = vadd.f32 %v6465_v52, %v6464_v51  ;;  %v6467_v54 = vpop.f32.mrb[30].mxu1 }
 0x467   :  { %v6468_v23 = vpop.f32.mrb[31].mxu1 }
 0x468   :  { %v6469_v39 = vadd.f32 %v6468_v23, %v6467_v54  ;;  %v5180_v55 = vadd.f32 %v6466_v4, %v5139_v53 }
 0x46a   :  { %v5183_v57 = vadd.f32 %v6469_v39, %v5142_v18 }
 0x4a5   :  { %v5095_v61 = vpop.f32.mrb[24].mxu0  ;;  %v5220_v62 = vpop.f32.mrb[32].mxu1 }
 0x4a6   :  { %v6507_v63 = vadd.f32 %v5095_v61, %v4323_v58  ;;  %v5221_v42 = vadd.f32 %v5220_v62, %v5180_v55  ;;  %v5097_v1 = vpop.f32.mrb[25].mxu0  ;;  %v6497_v38 = vpop.f32.mrb[33].mxu1 }
 0x4a7   :  { %v6508_v2 = vadd.f32 %v5097_v1, %v4327_v60  ;;  %v5099_v46 = vpop.f32.mrb[26].mxu0  ;;  %v5223_v3 = vpop.f32.mrb[34].mxu1 }
 0x4a8   :  { %v6509_v8 = vadd.f32 %v5099_v46, %v4323_v58  ;;  %v5224_v59 = vadd.f32 %v5223_v3, %v5183_v57  ;;  %v5101_v5 = vpop.f32.mrb[27].mxu0  ;;  %v6498_v6 = vpop.f32.mrb[35].mxu1  ;;  %v5227_v7 = vmax.f32 %v6507_v63, 0.0  ;;  %v5229_v9 = vmax.f32 %v5221_v42, 0.0 }
 0x4a9   :  { %v6510_v31 = vadd.f32 %v5101_v5, %v4327_v60  ;;  %v5228_v14 = vmax.f32 %v6508_v2, 0.0 }
 0x4aa   :  { %v5230_v13 = vmax.f32 %v6509_v8, 0.0  ;;  %v5232_v10 = vmax.f32 %v5224_v59, 0.0 }
 0x4ab   :  { %v5231_v15 = vmax.f32 %v6510_v31, 0.0 }
 0x4ac   :  { %v5233_v24 = vpack.c.bf16 %v5230_v13, %v5227_v7  ;;  %v5235_v16 = vpack.c.bf16 %v5232_v10, %v5229_v9 }
 0x4ad   :  { %v5234_v17 = vpack.c.bf16 %v5231_v15, %v5228_v14 }
 0x4af   :  { %5568 = vmatprep.mubr.bf16.mxu1 %v5234_v17 }
 0x4b0   :  { %5569 = vmatmul.mubr.bf16.vlgmr.msra.gmra.mrb[36].mxu1 %v5233_v24 }
 0x4b1   :  { %5580 = vmatpush1.bf16.msra.mxu1 %v7467_v19  ;;  %5611 = vmatprep.mubr.bf16.mxu1 %v7705_v0  ;;  %v7485_v0 = vld [vmem:[#allocation12 + $0x160] ss:$8 sps:$4 sm:$0xff]  }
 0x4b2   :  { %5581 = vmatprep.subr.bf16.mxu1 %v7472_v20 }
 0x4b5   :  { %5582 = vmatpush1.bf16.msra.mxu1 %v7470_v21 }
 0x4b6   :  { %5583 = vmatprep.subr.bf16.mxu1 %v7475_v22 }
 0x4b9   :  { %5584 = vmatpush1.bf16.msra.mxu1 %v7473_v28 }
 0x4ba   :  { %5585 = vmatprep.subr.bf16.mxu1 %v7478_v30 }
 0x4bd   :  { %5586 = vmatpush1.bf16.msra.mxu1 %v7476_v32 }
 0x4be   :  { %5587 = vmatprep.subr.bf16.mxu1 %v7481_v33 }
 0x4c1   :  { %5588 = vmatpush1.bf16.msra.mxu1 %v7479_v34 }
 0x4c2   :  { %5589 = vmatprep.subr.bf16.mxu1 %v7484_v47 }
 0x4c5   :  { %5590 = vmatpush1.bf16.msra.mxu1 %v7482_v35 }
 0x4c6   :  { %5591 = vmatprep.subr.bf16.mxu1 %v7487_v36 }
 0x4c9   :  { %5592 = vmatpush1.bf16.msra.mxu1 %v7485_v0 }
 0x4ca   :  { %5593 = vmatprep.subr.bf16.mxu1 %v7490_v11 }
 0x4cd   :  { %5594 = vmatpush1.bf16.msra.mxu1 %v7488_v37 }
 0x4d0   :  { %5612 = vmatmul.mubr.bf16.vlgmr.msra.gmra.mrb[36].mxu1 %v5235_v16 }
 0x5a3   :  { %v5613_v56 = vpop.f32.mrb[36].mxu1 }
 0x5a4   :  { %v6511_v27 = vadd.f32 %v5613_v56, %v5289_v41  ;;  %v5615_v44 = vpop.f32.mrb[37].mxu1 }
 0x5a5   :  { %v6512_v12 = vadd.f32 %v5615_v44, %v5293_v43  ;;  %v5617_v45 = vpop.f32.mrb[38].mxu1 }
 0x5a6   :  { %v5619_v29 = vpop.f32.mrb[39].mxu1  ;;  %v6513_v48 = vadd.f32 %v5617_v45, %v5289_v41 }
 0x5a7   :  { %v6514_v49 = vadd.f32 %v5619_v29, %v5293_v43  ;;  %v5622_v50 = vmax.f32 %v6511_v27, %v6512_v12 }
 0x5a9   :  { %5623 = vmax.xlane.f32.xlu0 %v5622_v50  ;;  %v5625_v51 = vmax.f32 %v6513_v48, %v6514_v49 }
 0x5ad   :  { %5626 = vmax.xlane.f32.xlu0 %v5625_v51 }
 0x636   :  { %v5624_v52 = vpop.xlane.xlu0 %5623 }
 0x637   :  { %v5628_v53 = vsub.f32 %v6511_v27, %v5624_v52  ;;  %v5629_v4 = vsub.f32 %v6512_v12, %v5624_v52 }
 0x639   :  { %v5632_v54 = vmul.f32 1.442695, %v5628_v53  ;;  %v5634_v23 = vmul.f32 1.442695, %v5629_v4 }
 0x63a   :  { %v5627_v25 = vpop.xlane.xlu0 %5626 }
 0x63b   :  { %7491 = vpow2.f32 %v5632_v54  ;;  %v5630_v26 = vsub.f32 %v6513_v48, %v5627_v25  ;;  %v5631_v18 = vsub.f32 %v6514_v49, %v5627_v25 }
 0x63c   :  { %7493 = vpow2.f32 %v5634_v23 }
 0x63d   :  { %v5636_v39 = vmul.f32 1.442695, %v5630_v26  ;;  %v5638_v55 = vmul.f32 1.442695, %v5631_v18 }
 0x63f   :  { %7495 = vpow2.f32 %v5636_v39 }
 0x640   :  { %7497 = vpow2.f32 %v5638_v55 }
 0x645   :  { %v7492_v57 = vpop.eup %7491 }
 0x646   :  { %v7494_v58 = vpop.eup %7493 }
 0x647   :  { %v5640_v60 = vadd.f32 %v7494_v58, %v7492_v57 }
 0x649   :  { %v7496_v61 = vpop.eup %7495  ;;  %5641 = vadd.xlane.f32.xlu1 %v5640_v60 }
 0x64a   :  { %v7498_v62 = vpop.eup %7497 }
 0x64b   :  { %v5643_v63 = vadd.f32 %v7498_v62, %v7496_v61 }
 0x64d   :  { %5644 = vadd.xlane.f32.xlu1 %v5643_v63 }
 0x6d6   :  { %v5642_v42 = vpop.xlane.xlu1 %5641 }
 0x6d7   :  { %7499 = vlog2.f32 %v5642_v42 }
 0x6da   :  { %v5645_v1 = vpop.xlane.xlu1 %5644 }
 0x6db   :  { %7501 = vlog2.f32 %v5645_v1 }
 0x6e1   :  { %v7500_v38 = vpop.eup %7499 }
 0x6e2   :  { %v5647_v2 = vmul.f32 0.6931472, %v7500_v38 }
 0x6e4   :  { %v5650_v46 = vsub.f32 %v5628_v53, %v5647_v2  ;;  %v5651_v3 = vsub.f32 %v5629_v4, %v5647_v2 }
 0x6e5   :  { %v7502_v8 = vpop.eup %7501 }
 0x6e6   :  { %5654 = vst [vmem:[%s8022_s9] sm:$0xff] %v5650_v46  ;;  %5655 = vst [vmem:[%s8022_s9 + $0x8] sm:$0xff] %v5651_v3  ;;  %v5649_v59 = vmul.f32 0.6931472, %v7502_v8 }
 0x6e8   :  { %v5652_v5 = vsub.f32 %v5630_v26, %v5649_v59  ;;  %v5653_v6 = vsub.f32 %v5631_v18, %v5649_v59 }
 0x6ea   :  { %5656 = vst [vmem:[%s8022_s9 + $0x10] sm:$0xff] %v5652_v5  ;;  %5657 = vst [vmem:[%s8022_s9 + $0x18] sm:$0xff] %v5653_v6 }
 0x6eb   :  { %5662 = vsyncpa [#allocation3], 1 }
 0x6ec   :  { %5663 = vsyncpa [#allocation5], 1 }
 0x6ed   :  { %5664 = vsyncpa [#allocation8], 1 }
 0x6ee   :  { %5665 = vsyncpa [#allocation11], 1 }
 0x6ef   :  { %5666 = vsyncpa [#allocation14], 1 }

</bundles_post_ra>
